<compile_context>
chip_gen: v5e
topology: v5e:2x2
jax: 0.10.0
libtpu: 0.0.40
codegen_flags: <defaults>
</compile_context>

<pallas_src>
import jax
import jax.numpy as jnp
from jax.experimental import pallas as pl
from jax.experimental.pallas import tpu as pltpu


# --------------------------- in-kernel helpers ---------------------------
def _conv3x3_taps(h, w_ref, cols_ref):
    """3x3 'same' conv of one (H, W, C) image vs w_ref (3, 3*C, Cout) bf16.

    cols_ref is an (H+2, W, 3*C) bf16 VMEM scratch.  Three kw-shifted copies
    of the bf16-cast image are stored into the lane-blocked scratch (the only
    image-sized relayout copies), the thin halo strips are zeroed, and the
    result is accumulated with three MXU matmuls (K = 3*C, bf16 operands,
    f32 accumulation) whose kh offsets are free leading-axis slices.
    Returns the (H*W, Cout) f32 conv result.
    """
    H, W, C = h.shape
    Cout = w_ref.shape[2]
    hb = h.astype(jnp.bfloat16)

    # Halo strips (never touched by the interior stores below) -> zero.
    cols_ref[0:1, :, :] = jnp.zeros((1, W, 3 * C), jnp.bfloat16)
    cols_ref[H + 1:H + 2, :, :] = jnp.zeros((1, W, 3 * C), jnp.bfloat16)
    cols_ref[1:H + 1, 0:1, 0:C] = jnp.zeros((H, 1, C), jnp.bfloat16)
    cols_ref[1:H + 1, W - 1:W, 2 * C:3 * C] = jnp.zeros((H, 1, C), jnp.bfloat16)

    # Three kw-shifted copies of the image.
    cols_ref[1:H + 1, 1:W, 0:C] = hb[:, 0:W - 1, :]           # tap x[.., w-1]
    cols_ref[1:H + 1, :, C:2 * C] = hb                         # tap x[.., w  ]
    cols_ref[1:H + 1, 0:W - 1, 2 * C:3 * C] = hb[:, 1:W, :]    # tap x[.., w+1]

    acc = jnp.zeros((H * W, Cout), jnp.float32)
    for kh in range(3):                                        # kh slice = free
        patches = cols_ref[kh:kh + H, :, :].reshape(H * W, 3 * C)
        acc = acc + jnp.dot(patches, w_ref[kh],
                            preferred_element_type=jnp.float32)
    return acc


# --------------------------- Pallas kernels ---------------------------
def _conv1_stats_kernel(x_ref, w_ref, y_ref, ssum_ref, ssq_ref, cols_ref):
    H, W, C = x_ref.shape
    y = _conv3x3_taps(x_ref[...], w_ref, cols_ref)             # (H*W, Cout) f32
    y_ref[...] = y.reshape(H, W, y.shape[-1]).astype(y_ref.dtype)
    # One-pass per-image BN partial statistics (from the f32 accumulator).
    ssum_ref[...] = jnp.sum(y, axis=0, keepdims=True)
    ssq_ref[...] = jnp.sum(y * y, axis=0, keepdims=True)


def _bnrelu_conv2_stats_kernel(y1_ref, scale_ref, shift_ref, w_ref,
                               y_ref, ssum_ref, ssq_ref, cols_ref):
    H, W, C = y1_ref.shape
    # bn1 as a fused scale/shift FMA (f32) + ReLU, applied on the fly.
    h = jnp.maximum(y1_ref[...].astype(jnp.float32) * scale_ref[...]
                    + shift_ref[...], 0.0)
    y = _conv3x3_taps(h, w_ref, cols_ref)
    y_ref[...] = y.reshape(H, W, y.shape[-1]).astype(y_ref.dtype)
    ssum_ref[...] = jnp.sum(y, axis=0, keepdims=True)
    ssq_ref[...] = jnp.sum(y * y, axis=0, keepdims=True)


def _bn2_residual_relu_kernel(y2_ref, x_ref, scale_ref, shift_ref, out_ref):
    out_ref[...] = jnp.maximum(
        y2_ref[...] * scale_ref[...] + shift_ref[...] + x_ref[...], 0.0)


# --------------------------- wrapper ---------------------------
def _bn_scale_shift(ssum, ssq, gamma, beta, count, eps):
    """Finalize training-mode BN from per-image (sum, sumsq) partials (tiny)."""
    total = jnp.sum(ssum, axis=0)                        # (1, C)
    total_sq = jnp.sum(ssq, axis=0)                      # (1, C)
    mean = total / count
    var = jnp.maximum(total_sq / count - mean * mean, 0.0)   # biased variance
    scale = gamma * jax.lax.rsqrt(var + eps)
    shift = beta - mean * scale
    return scale, shift


def _pick_vmem_limit(step_bytes):
    """Generation-aware scoped-VMEM request with ample headroom."""
    try:
        cap = int(pltpu.get_tpu_info().vmem_capacity_bytes)
    except Exception:
        cap = 128 << 20
    hi = max(16 << 20, min(40 << 20, cap // 2))          # <=40 MiB; <=cap/2
    return int(min(hi, max(16 << 20, step_bytes + (4 << 20))))


def basic_block_forward(x_nchw, w1_oihw, g1, b1, w2_oihw, g2, b2, *, eps=1e-5):
    """BasicBlock forward (stride=1, downsample=None). x_nchw: (N,C,H,W) f32."""
    # TODO(synk): stride != 1 / downsample branch of BasicBlock not implemented
    # (the module's default configuration is stride=1, downsample=None).
    x = jnp.transpose(x_nchw, (0, 2, 3, 1)).astype(jnp.float32)   # NCHW -> NHWC
    N, H, W, C = x.shape
    assert w1_oihw.shape[0] == C, "downsample=None requires inplanes == planes"

    def prep_w(w_oihw):      # OIHW -> (3, 3*C, C) bf16, [kh, kw*C+c, o] layout
        w = jnp.transpose(w_oihw, (2, 3, 1, 0)).astype(jnp.float32)  # (kh,kw,I,O)
        return w.reshape(3, 3 * C, C).astype(jnp.bfloat16)

    def prep_v(v):           # (C,) -> (1, C) f32
        return v.astype(jnp.float32).reshape(1, C)

    w1p, w2p = prep_w(w1_oihw), prep_w(w2_oihw)
    g1p, b1p, g2p, b2p = prep_v(g1), prep_v(b1), prep_v(g2), prep_v(b2)

    # ---- BlockSpecs shared by the three batch-gridded kernels ----
    img_spec = pl.BlockSpec((None, H, W, C), lambda i: (i, 0, 0, 0))
    stat_spec = pl.BlockSpec((None, 1, C), lambda i: (i, 0, 0))
    vec_spec = pl.BlockSpec((1, C), lambda i: (0, 0))
    w_spec = pl.BlockSpec((3, 3 * C, C), lambda i: (0, 0, 0))

    img_f32 = H * W * C * 4
    img_bf16 = H * W * C * 2
    cols_bytes = (H + 2) * W * 3 * C * 2
    w_bytes = 3 * 3 * C * C * 2
    # double-buffered in/out image blocks + scratch + weights + temporaries
    step_bytes = (2 * (img_f32 + img_bf16) + 2 * img_f32 + cols_bytes
                  + 2 * w_bytes + 6 * img_f32)
    cparams = pltpu.CompilerParams(dimension_semantics=("parallel",),
                                   vmem_limit_bytes=_pick_vmem_limit(step_bytes))

    conv_flops = 2 * N * H * W * 9 * C * C
    cols_scratch = pltpu.VMEM((H + 2, W, 3 * C), jnp.bfloat16)
    stat_struct = jax.ShapeDtypeStruct((N, 1, C), jnp.float32)

    # ---- pass 1: conv1 + per-image BN1 partial stats (y1 stored as bf16) ----
    y1, s1, q1 = pl.pallas_call(
        _conv1_stats_kernel,
        grid=(N,),
        in_specs=[img_spec, w_spec],
        out_specs=[img_spec, stat_spec, stat_spec],
        out_shape=[jax.ShapeDtypeStruct((N, H, W, C), jnp.bfloat16),
                   stat_struct, stat_struct],
        scratch_shapes=[cols_scratch],
        compiler_params=cparams,
        cost_estimate=pl.CostEstimate(
            flops=conv_flops, transcendentals=0,
            bytes_accessed=N * (img_f32 + img_bf16) + w_bytes + 2 * N * C * 4),
    )(x, w1p)

    scale1, shift1 = _bn_scale_shift(s1, q1, g1p, b1p, float(N * H * W), eps)

    # ---- pass 2: bn1(FMA)+ReLU -> conv2 + per-image BN2 partial stats ----
    y2, s2, q2 = pl.pallas_call(
        _bnrelu_conv2_stats_kernel,
        grid=(N,),
        in_specs=[img_spec, vec_spec, vec_spec, w_spec],
        out_specs=[img_spec, stat_spec, stat_spec],
        out_shape=[jax.ShapeDtypeStruct((N, H, W, C), jnp.float32),
                   stat_struct, stat_struct],
        scratch_shapes=[cols_scratch],
        compiler_params=cparams,
        cost_estimate=pl.CostEstimate(
            flops=conv_flops, transcendentals=0,
            bytes_accessed=N * (img_bf16 + img_f32) + w_bytes + 2 * N * C * 4),
    )(y1, scale1, shift1, w2p)

    scale2, shift2 = _bn_scale_shift(s2, q2, g2p, b2p, float(N * H * W), eps)

    # ---- pass 3: bn2(FMA) + residual add + ReLU (output aliased onto y2) ----
    out = pl.pallas_call(
        _bn2_residual_relu_kernel,
        grid=(N,),
        in_specs=[img_spec, img_spec, vec_spec, vec_spec],
        out_specs=img_spec,
        out_shape=jax.ShapeDtypeStruct((N, H, W, C), jnp.float32),
        input_output_aliases={0: 0},
        compiler_params=cparams,
        cost_estimate=pl.CostEstimate(
            flops=4 * N * H * W * C, transcendentals=0,
            bytes_accessed=3 * N * img_f32),
    )(y2, x, scale2, shift2)

    return jnp.transpose(out, (0, 3, 1, 2))                 # NHWC -> NCHW


# ---------------- pure-JAX reference (NCHW, mirrors PyTorch semantics) ----------------
def _bn_train_ref(x, g, b, eps=1e-5):
    mean = jnp.mean(x, axis=(0, 2, 3), keepdims=True)
    var = jnp.mean((x - mean) ** 2, axis=(0, 2, 3), keepdims=True)
    xn = (x - mean) * jax.lax.rsqrt(var + eps)
    return xn * g.reshape(1, -1, 1, 1) + b.reshape(1, -1, 1, 1)


def _conv3x3_ref(x, w, matmul_dtype):
    return jax.lax.conv_general_dilated(
        x.astype(matmul_dtype), w.astype(matmul_dtype),
        window_strides=(1, 1), padding=((1, 1), (1, 1)),
        dimension_numbers=("NCHW", "OIHW", "NCHW"),
        preferred_element_type=jnp.float32)


def _basic_block_ref(x, w1, g1, b1, w2, g2, b2, matmul_dtype=jnp.float32):
    out = jnp.maximum(_bn_train_ref(_conv3x3_ref(x, w1, matmul_dtype), g1, b1), 0.0)
    out = _bn_train_ref(_conv3x3_ref(out, w2, matmul_dtype), g2, b2)
    return jnp.maximum(out + x, 0.0)


if __name__ == "__main__":
    key = jax.random.PRNGKey(0)
    N, C, H, W = 2, 8, 16, 16          # inplanes == planes (stride=1, downsample=None)
    planes = C

    k1, k2, k3, k4, k5 = jax.random.split(key, 5)
    x = jax.random.normal(k1, (N, C, H, W), jnp.float32)
    w1 = 0.1 * jax.random.normal(k2, (planes, C, 3, 3), jnp.float32)       # conv1 OIHW
    w2 = 0.1 * jax.random.normal(k3, (planes, planes, 3, 3), jnp.float32)  # conv2 OIHW
    g1 = 1.0 + 0.1 * jax.random.normal(k4, (planes,), jnp.float32)         # bn1 weight
    b1 = 0.1 * jax.random.normal(k5, (planes,), jnp.float32)               # bn1 bias
    g2 = jnp.ones((planes,), jnp.float32)                                  # bn2 weight
    b2 = jnp.zeros((planes,), jnp.float32)                                 # bn2 bias

    fwd = jax.jit(basic_block_forward)
    out = jax.block_until_ready(fwd(x, w1, g1, b1, w2, g2, b2))
    assert out.shape == (N, C, H, W)
    assert bool(jnp.all(jnp.isfinite(out)))

    # Check vs a reference using bf16 matmul operands / f32 accumulation
    # (the kernel additionally stores y1 in bf16, hence the 2e-2 tolerance).
    ref_bf16 = _basic_block_ref(x, w1, g1, b1, w2, g2, b2, matmul_dtype=jnp.bfloat16)
    assert jnp.allclose(out, ref_bf16, atol=2e-2, rtol=2e-2), \
        "mismatch vs bf16-operand reference"
    # Looser sanity check vs the exact f32 reference.
    ref_f32 = _basic_block_ref(x, w1, g1, b1, w2, g2, b2, matmul_dtype=jnp.float32)
    assert jnp.allclose(out, ref_f32, atol=1e-1, rtol=1e-1), \
        "mismatch vs f32 reference"
    print("KERNEL_OK")
</pallas_src>

<mosaic_0001>
module attributes {stable_mosaic.version = 11 : i64} {
  func.func @_bn2_residual_relu_kernel(%arg0: i32, %arg1: memref<1x16x16x8xf32, #tpu.memory_space<vmem>>, %arg2: memref<1x16x16x8xf32, #tpu.memory_space<vmem>>, %arg3: memref<1x8xf32, #tpu.memory_space<vmem>>, %arg4: memref<1x8xf32, #tpu.memory_space<vmem>>, %arg5: memref<1x16x16x8xf32, #tpu.memory_space<vmem>>) attributes {dimension_semantics = [#tpu.dimension_semantics<parallel>], iteration_bounds = array<i64: 2>, scalar_prefetch = 0 : i64, scratch_operands = 0 : i64, tpu.core_type = #tpu.core_type<tc>, window_params = [{transform_indices = @transform_0, window_bounds = array<i64: 1, 16, 16, 8>}, {transform_indices = @transform_1, window_bounds = array<i64: 1, 16, 16, 8>}, {pipeline_mode = #tpu.pipeline_mode<synchronous>, transform_indices = @transform_2, window_bounds = array<i64: 1, 8>}, {pipeline_mode = #tpu.pipeline_mode<synchronous>, transform_indices = @transform_3, window_bounds = array<i64: 1, 8>}, {transform_indices = @transform_4, window_bounds = array<i64: 1, 16, 16, 8>}]} {
    %c0 = arith.constant 0 : index
    %c0_0 = arith.constant 0 : index
    %c0_1 = arith.constant 0 : index
    %c0_2 = arith.constant 0 : index
    %0 = vector.load %arg1[%c0, %c0_0, %c0_1, %c0_2] : memref<1x16x16x8xf32, #tpu.memory_space<vmem>>, vector<1x16x16x8xf32>
    %1 = vector.shape_cast %0 : vector<1x16x16x8xf32> to vector<16x16x8xf32>
    %c0_3 = arith.constant 0 : index
    %c0_4 = arith.constant 0 : index
    %2 = vector.load %arg3[%c0_3, %c0_4] : memref<1x8xf32, #tpu.memory_space<vmem>>, vector<1x8xf32>
    %3 = vector.shape_cast %2 : vector<1x8xf32> to vector<1x1x8xf32>
    %4 = vector.broadcast %3 : vector<1x1x8xf32> to vector<16x16x8xf32>
    %5 = arith.mulf %1, %4 : vector<16x16x8xf32>
    %c0_5 = arith.constant 0 : index
    %c0_6 = arith.constant 0 : index
    %6 = vector.load %arg4[%c0_5, %c0_6] : memref<1x8xf32, #tpu.memory_space<vmem>>, vector<1x8xf32>
    %7 = vector.shape_cast %6 : vector<1x8xf32> to vector<1x1x8xf32>
    %8 = vector.broadcast %7 : vector<1x1x8xf32> to vector<16x16x8xf32>
    %9 = arith.addf %5, %8 : vector<16x16x8xf32>
    %c0_7 = arith.constant 0 : index
    %c0_8 = arith.constant 0 : index
    %c0_9 = arith.constant 0 : index
    %c0_10 = arith.constant 0 : index
    %10 = vector.load %arg2[%c0_7, %c0_8, %c0_9, %c0_10] : memref<1x16x16x8xf32, #tpu.memory_space<vmem>>, vector<1x16x16x8xf32>
    %11 = vector.shape_cast %10 : vector<1x16x16x8xf32> to vector<16x16x8xf32>
    %12 = arith.addf %9, %11 : vector<16x16x8xf32>
    %cst = arith.constant 0.000000e+00 : f32
    %13 = vector.broadcast %cst : f32 to vector<16x16x8xf32>
    %14 = arith.maximumf %12, %13 : vector<16x16x8xf32>
    %c0_11 = arith.constant 0 : index
    %c0_12 = arith.constant 0 : index
    %c0_13 = arith.constant 0 : index
    %c0_14 = arith.constant 0 : index
    %15 = vector.load %arg5[%c0_11, %c0_12, %c0_13, %c0_14] : memref<1x16x16x8xf32, #tpu.memory_space<vmem>>, vector<1x16x16x8xf32>
    %16 = vector.shape_cast %15 : vector<1x16x16x8xf32> to vector<16x16x8xf32>
    %17 = vector.shape_cast %14 : vector<16x16x8xf32> to vector<1x16x16x8xf32>
    tpu.vector_store %arg5[%c0_11, %c0_12, %c0_13, %c0_14], %17 {strides = array<i32>} : memref<1x16x16x8xf32, #tpu.memory_space<vmem>>, vector<1x16x16x8xf32>,
    return
  }
  func.func @transform_0(%arg0: i32) -> (i32, i32, i32, i32) {
    %c0_i32 = arith.constant 0 : i32
    %c0_i32_0 = arith.constant 0 : i32
    %c0_i32_1 = arith.constant 0 : i32
    %c0_i32_2 = arith.constant 0 : i32
    return %arg0, %c0_i32, %c0_i32_0, %c0_i32_1 : i32, i32, i32, i32
  }
  func.func @transform_1(%arg0: i32) -> (i32, i32, i32, i32) {
    %c0_i32 = arith.constant 0 : i32
    %c0_i32_0 = arith.constant 0 : i32
    %c0_i32_1 = arith.constant 0 : i32
    %c0_i32_2 = arith.constant 0 : i32
    return %arg0, %c0_i32, %c0_i32_0, %c0_i32_1 : i32, i32, i32, i32
  }
  func.func @transform_2(%arg0: i32) -> (i32, i32) {
    %c0_i32 = arith.constant 0 : i32
    %c0_i32_0 = arith.constant 0 : i32
    %c0_i32_1 = arith.constant 0 : i32
    return %c0_i32, %c0_i32_0 : i32, i32
  }
  func.func @transform_3(%arg0: i32) -> (i32, i32) {
    %c0_i32 = arith.constant 0 : i32
    %c0_i32_0 = arith.constant 0 : i32
    %c0_i32_1 = arith.constant 0 : i32
    return %c0_i32, %c0_i32_0 : i32, i32
  }
  func.func @transform_4(%arg0: i32) -> (i32, i32, i32, i32) {
    %c0_i32 = arith.constant 0 : i32
    %c0_i32_0 = arith.constant 0 : i32
    %c0_i32_1 = arith.constant 0 : i32
    %c0_i32_2 = arith.constant 0 : i32
    return %arg0, %c0_i32, %c0_i32_0, %c0_i32_1 : i32, i32, i32, i32
  }
}

module attributes {stable_mosaic.version = 11 : i64} {
  func.func @_conv1_stats_kernel(%arg0: i32, %arg1: memref<1x16x16x8xf32, #tpu.memory_space<vmem>>, %arg2: memref<3x24x8xbf16, #tpu.memory_space<vmem>>, %arg3: memref<1x16x16x8xbf16, #tpu.memory_space<vmem>>, %arg4: memref<1x1x8xf32, #tpu.memory_space<vmem>>, %arg5: memref<1x1x8xf32, #tpu.memory_space<vmem>>, %arg6: memref<18x16x24xbf16, #tpu.memory_space<vmem>>) attributes {dimension_semantics = [#tpu.dimension_semantics<parallel>], iteration_bounds = array<i64: 2>, scalar_prefetch = 0 : i64, scratch_operands = 1 : i64, tpu.core_type = #tpu.core_type<tc>, window_params = [{transform_indices = @transform_0, window_bounds = array<i64: 1, 16, 16, 8>}, {pipeline_mode = #tpu.pipeline_mode<synchronous>, transform_indices = @transform_1, window_bounds = array<i64: 3, 24, 8>}, {transform_indices = @transform_2, window_bounds = array<i64: 1, 16, 16, 8>}, {transform_indices = @transform_3, window_bounds = array<i64: 1, 1, 8>}, {transform_indices = @transform_4, window_bounds = array<i64: 1, 1, 8>}]} {
    %c0 = arith.constant 0 : index
    %c0_0 = arith.constant 0 : index
    %c0_1 = arith.constant 0 : index
    %c0_2 = arith.constant 0 : index
    %0 = vector.load %arg1[%c0, %c0_0, %c0_1, %c0_2] : memref<1x16x16x8xf32, #tpu.memory_space<vmem>>, vector<1x16x16x8xf32>
    %1 = vector.shape_cast %0 : vector<1x16x16x8xf32> to vector<16x16x8xf32>
    %2 = arith.truncf %1 : vector<16x16x8xf32> to vector<16x16x8xbf16>
    %cst = arith.constant 0.000000e+00 : bf16
    %3 = vector.broadcast %cst : bf16 to vector<1x16x24xbf16>
    %c0_3 = arith.constant 0 : index
    %c0_4 = arith.constant 0 : index
    %c0_5 = arith.constant 0 : index
    %4 = vector.load %arg6[%c0_3, %c0_4, %c0_5] : memref<18x16x24xbf16, #tpu.memory_space<vmem>>, vector<1x16x24xbf16>
    tpu.vector_store %arg6[%c0_3, %c0_4, %c0_5], %3 {strides = array<i32>} : memref<18x16x24xbf16, #tpu.memory_space<vmem>>, vector<1x16x24xbf16>,
    %cst_6 = arith.constant 0.000000e+00 : bf16
    %5 = vector.broadcast %cst_6 : bf16 to vector<1x16x24xbf16>
    %c17 = arith.constant 17 : index
    %c0_7 = arith.constant 0 : index
    %c0_8 = arith.constant 0 : index
    %6 = vector.load %arg6[%c17, %c0_7, %c0_8] : memref<18x16x24xbf16, #tpu.memory_space<vmem>>, vector<1x16x24xbf16>
    tpu.vector_store %arg6[%c17, %c0_7, %c0_8], %5 {strides = array<i32>} : memref<18x16x24xbf16, #tpu.memory_space<vmem>>, vector<1x16x24xbf16>,
    %cst_9 = arith.constant 0.000000e+00 : bf16
    %7 = vector.broadcast %cst_9 : bf16 to vector<16x1x8xbf16>
    %c1 = arith.constant 1 : index
    %c0_10 = arith.constant 0 : index
    %c0_11 = arith.constant 0 : index
    %8 = vector.load %arg6[%c1, %c0_10, %c0_11] : memref<18x16x24xbf16, #tpu.memory_space<vmem>>, vector<16x1x8xbf16>
    tpu.vector_store %arg6[%c1, %c0_10, %c0_11], %7 {strides = array<i32>} : memref<18x16x24xbf16, #tpu.memory_space<vmem>>, vector<16x1x8xbf16>,
    %cst_12 = arith.constant 0.000000e+00 : bf16
    %9 = vector.broadcast %cst_12 : bf16 to vector<16x1x8xbf16>
    %c1_13 = arith.constant 1 : index
    %c15 = arith.constant 15 : index
    %c16 = arith.constant 16 : index
    %10 = vector.load %arg6[%c1_13, %c15, %c16] : memref<18x16x24xbf16, #tpu.memory_space<vmem>>, vector<16x1x8xbf16>
    tpu.vector_store %arg6[%c1_13, %c15, %c16], %9 {strides = array<i32>} : memref<18x16x24xbf16, #tpu.memory_space<vmem>>, vector<16x1x8xbf16>,
    %11 = vector.extract_strided_slice %2 {offsets = [0, 0, 0], sizes = [16, 15, 8], strides = [1, 1, 1]} : vector<16x16x8xbf16> to vector<16x15x8xbf16>
    %c1_14 = arith.constant 1 : index
    %c1_15 = arith.constant 1 : index
    %c0_16 = arith.constant 0 : index
    %12 = vector.load %arg6[%c1_14, %c1_15, %c0_16] : memref<18x16x24xbf16, #tpu.memory_space<vmem>>, vector<16x15x8xbf16>
    tpu.vector_store %arg6[%c1_14, %c1_15, %c0_16], %11 {strides = array<i32>} : memref<18x16x24xbf16, #tpu.memory_space<vmem>>, vector<16x15x8xbf16>,
    %c1_17 = arith.constant 1 : index
    %c0_18 = arith.constant 0 : index
    %c8 = arith.constant 8 : index
    %13 = vector.load %arg6[%c1_17, %c0_18, %c8] : memref<18x16x24xbf16, #tpu.memory_space<vmem>>, vector<16x16x8xbf16>
    tpu.vector_store %arg6[%c1_17, %c0_18, %c8], %2 {strides = array<i32>} : memref<18x16x24xbf16, #tpu.memory_space<vmem>>, vector<16x16x8xbf16>,
    %14 = vector.extract_strided_slice %2 {offsets = [0, 1, 0], sizes = [16, 15, 8], strides = [1, 1, 1]} : vector<16x16x8xbf16> to vector<16x15x8xbf16>
    %c1_19 = arith.constant 1 : index
    %c0_20 = arith.constant 0 : index
    %c16_21 = arith.constant 16 : index
    %15 = vector.load %arg6[%c1_19, %c0_20, %c16_21] : memref<18x16x24xbf16, #tpu.memory_space<vmem>>, vector<16x15x8xbf16>
    tpu.vector_store %arg6[%c1_19, %c0_20, %c16_21], %14 {strides = array<i32>} : memref<18x16x24xbf16, #tpu.memory_space<vmem>>, vector<16x15x8xbf16>,
    %cst_22 = arith.constant 0.000000e+00 : f32
    %16 = vector.broadcast %cst_22 : f32 to vector<256x8xf32>
    %c0_23 = arith.constant 0 : index
    %c0_24 = arith.constant 0 : index
    %c0_25 = arith.constant 0 : index
    %17 = vector.load %arg6[%c0_23, %c0_24, %c0_25] : memref<18x16x24xbf16, #tpu.memory_space<vmem>>, vector<16x16x24xbf16>
    %18 = vector.shape_cast %17 : vector<16x16x24xbf16> to vector<256x24xbf16>
    %c0_26 = arith.constant 0 : index
    %c0_27 = arith.constant 0 : index
    %c0_28 = arith.constant 0 : index
    %19 = vector.load %arg2[%c0_26, %c0_27, %c0_28] : memref<3x24x8xbf16, #tpu.memory_space<vmem>>, vector<1x24x8xbf16>
    %20 = vector.shape_cast %19 : vector<1x24x8xbf16> to vector<24x8xbf16>
    %cst_29 = arith.constant dense<0.000000e+00> : vector<256x8xf32>
    %21 = tpu.matmul %18, %20, %cst_29 {dimension_numbers = #tpu.dot_dimension_numbers<[1], [0], [0], [1], [0, 0, 1, 1], [], []>} : vector<256x24xbf16>, vector<24x8xbf16>, vector<256x8xf32> -> vector<256x8xf32>
    %22 = arith.addf %16, %21 : vector<256x8xf32>
    %c1_30 = arith.constant 1 : index
    %c0_31 = arith.constant 0 : index
    %c0_32 = arith.constant 0 : index
    %23 = vector.load %arg6[%c1_30, %c0_31, %c0_32] : memref<18x16x24xbf16, #tpu.memory_space<vmem>>, vector<16x16x24xbf16>
    %24 = vector.shape_cast %23 : vector<16x16x24xbf16> to vector<256x24xbf16>
    %c1_33 = arith.constant 1 : index
    %c0_34 = arith.constant 0 : index
    %c0_35 = arith.constant 0 : index
    %25 = vector.load %arg2[%c1_33, %c0_34, %c0_35] : memref<3x24x8xbf16, #tpu.memory_space<vmem>>, vector<1x24x8xbf16>
    %26 = vector.shape_cast %25 : vector<1x24x8xbf16> to vector<24x8xbf16>
    %cst_36 = arith.constant dense<0.000000e+00> : vector<256x8xf32>
    %27 = tpu.matmul %24, %26, %cst_36 {dimension_numbers = #tpu.dot_dimension_numbers<[1], [0], [0], [1], [0, 0, 1, 1], [], []>} : vector<256x24xbf16>, vector<24x8xbf16>, vector<256x8xf32> -> vector<256x8xf32>
    %28 = arith.addf %22, %27 : vector<256x8xf32>
    %c2 = arith.constant 2 : index
    %c0_37 = arith.constant 0 : index
    %c0_38 = arith.constant 0 : index
    %29 = vector.load %arg6[%c2, %c0_37, %c0_38] : memref<18x16x24xbf16, #tpu.memory_space<vmem>>, vector<16x16x24xbf16>
    %30 = vector.shape_cast %29 : vector<16x16x24xbf16> to vector<256x24xbf16>
    %c2_39 = arith.constant 2 : index
    %c0_40 = arith.constant 0 : index
    %c0_41 = arith.constant 0 : index
    %31 = vector.load %arg2[%c2_39, %c0_40, %c0_41] : memref<3x24x8xbf16, #tpu.memory_space<vmem>>, vector<1x24x8xbf16>
    %32 = vector.shape_cast %31 : vector<1x24x8xbf16> to vector<24x8xbf16>
    %cst_42 = arith.constant dense<0.000000e+00> : vector<256x8xf32>
    %33 = tpu.matmul %30, %32, %cst_42 {dimension_numbers = #tpu.dot_dimension_numbers<[1], [0], [0], [1], [0, 0, 1, 1], [], []>} : vector<256x24xbf16>, vector<24x8xbf16>, vector<256x8xf32> -> vector<256x8xf32>
    %34 = arith.addf %28, %33 : vector<256x8xf32>
    %35 = vector.shape_cast %34 : vector<256x8xf32> to vector<16x16x8xf32>
    %36 = arith.truncf %35 : vector<16x16x8xf32> to vector<16x16x8xbf16>
    %c0_43 = arith.constant 0 : index
    %c0_44 = arith.constant 0 : index
    %c0_45 = arith.constant 0 : index
    %c0_46 = arith.constant 0 : index
    %37 = vector.load %arg3[%c0_43, %c0_44, %c0_45, %c0_46] : memref<1x16x16x8xbf16, #tpu.memory_space<vmem>>, vector<1x16x16x8xbf16>
    %38 = vector.shape_cast %37 : vector<1x16x16x8xbf16> to vector<16x16x8xbf16>
    %39 = vector.shape_cast %36 : vector<16x16x8xbf16> to vector<1x16x16x8xbf16>
    tpu.vector_store %arg3[%c0_43, %c0_44, %c0_45, %c0_46], %39 {strides = array<i32>} : memref<1x16x16x8xbf16, #tpu.memory_space<vmem>>, vector<1x16x16x8xbf16>,
    %cst_47 = arith.constant dense<0.000000e+00> : vector<8xf32>
    %40 = vector.multi_reduction <add>, %34, %cst_47 [0] : vector<256x8xf32> to vector<8xf32>
    %41 = vector.shape_cast %40 : vector<8xf32> to vector<1x8xf32>
    %c0_48 = arith.constant 0 : index
    %c0_49 = arith.constant 0 : index
    %c0_50 = arith.constant 0 : index
    %42 = vector.load %arg4[%c0_48, %c0_49, %c0_50] : memref<1x1x8xf32, #tpu.memory_space<vmem>>, vector<1x1x8xf32>
    %43 = vector.shape_cast %42 : vector<1x1x8xf32> to vector<1x8xf32>
    %44 = vector.shape_cast %41 : vector<1x8xf32> to vector<1x1x8xf32>
    tpu.vector_store %arg4[%c0_48, %c0_49, %c0_50], %44 {strides = array<i32>} : memref<1x1x8xf32, #tpu.memory_space<vmem>>, vector<1x1x8xf32>,
    %45 = arith.mulf %34, %34 : vector<256x8xf32>
    %cst_51 = arith.constant dense<0.000000e+00> : vector<8xf32>
    %46 = vector.multi_reduction <add>, %45, %cst_51 [0] : vector<256x8xf32> to vector<8xf32>
    %47 = vector.shape_cast %46 : vector<8xf32> to vector<1x8xf32>
    %c0_52 = arith.constant 0 : index
    %c0_53 = arith.constant 0 : index
    %c0_54 = arith.constant 0 : index
    %48 = vector.load %arg5[%c0_52, %c0_53, %c0_54] : memref<1x1x8xf32, #tpu.memory_space<vmem>>, vector<1x1x8xf32>
    %49 = vector.shape_cast %48 : vector<1x1x8xf32> to vector<1x8xf32>
    %50 = vector.shape_cast %47 : vector<1x8xf32> to vector<1x1x8xf32>
    tpu.vector_store %arg5[%c0_52, %c0_53, %c0_54], %50 {strides = array<i32>} : memref<1x1x8xf32, #tpu.memory_space<vmem>>, vector<1x1x8xf32>,
    return
  }
  func.func @transform_0(%arg0: i32) -> (i32, i32, i32, i32) {
    %c0_i32 = arith.constant 0 : i32
    %c0_i32_0 = arith.constant 0 : i32
    %c0_i32_1 = arith.constant 0 : i32
    %c0_i32_2 = arith.constant 0 : i32
    return %arg0, %c0_i32, %c0_i32_0, %c0_i32_1 : i32, i32, i32, i32
  }
  func.func @transform_1(%arg0: i32) -> (i32, i32, i32) {
    %c0_i32 = arith.constant 0 : i32
    %c0_i32_0 = arith.constant 0 : i32
    %c0_i32_1 = arith.constant 0 : i32
    %c0_i32_2 = arith.constant 0 : i32
    return %c0_i32, %c0_i32_0, %c0_i32_1 : i32, i32, i32
  }
  func.func @transform_2(%arg0: i32) -> (i32, i32, i32, i32) {
    %c0_i32 = arith.constant 0 : i32
    %c0_i32_0 = arith.constant 0 : i32
    %c0_i32_1 = arith.constant 0 : i32
    %c0_i32_2 = arith.constant 0 : i32
    return %arg0, %c0_i32, %c0_i32_0, %c0_i32_1 : i32, i32, i32, i32
  }
  func.func @transform_3(%arg0: i32) -> (i32, i32, i32) {
    %c0_i32 = arith.constant 0 : i32
    %c0_i32_0 = arith.constant 0 : i32
    %c0_i32_1 = arith.constant 0 : i32
    return %arg0, %c0_i32, %c0_i32_0 : i32, i32, i32
  }
  func.func @transform_4(%arg0: i32) -> (i32, i32, i32) {
    %c0_i32 = arith.constant 0 : i32
    %c0_i32_0 = arith.constant 0 : i32
    %c0_i32_1 = arith.constant 0 : i32
    return %arg0, %c0_i32, %c0_i32_0 : i32, i32, i32
  }
}

module attributes {stable_mosaic.version = 11 : i64} {
  func.func @_bnrelu_conv2_stats_kernel(%arg0: i32, %arg1: memref<1x16x16x8xbf16, #tpu.memory_space<vmem>>, %arg2: memref<1x8xf32, #tpu.memory_space<vmem>>, %arg3: memref<1x8xf32, #tpu.memory_space<vmem>>, %arg4: memref<3x24x8xbf16, #tpu.memory_space<vmem>>, %arg5: memref<1x16x16x8xf32, #tpu.memory_space<vmem>>, %arg6: memref<1x1x8xf32, #tpu.memory_space<vmem>>, %arg7: memref<1x1x8xf32, #tpu.memory_space<vmem>>, %arg8: memref<18x16x24xbf16, #tpu.memory_space<vmem>>) attributes {dimension_semantics = [#tpu.dimension_semantics<parallel>], iteration_bounds = array<i64: 2>, scalar_prefetch = 0 : i64, scratch_operands = 1 : i64, tpu.core_type = #tpu.core_type<tc>, window_params = [{transform_indices = @transform_0, window_bounds = array<i64: 1, 16, 16, 8>}, {pipeline_mode = #tpu.pipeline_mode<synchronous>, transform_indices = @transform_1, window_bounds = array<i64: 1, 8>}, {pipeline_mode = #tpu.pipeline_mode<synchronous>, transform_indices = @transform_2, window_bounds = array<i64: 1, 8>}, {pipeline_mode = #tpu.pipeline_mode<synchronous>, transform_indices = @transform_3, window_bounds = array<i64: 3, 24, 8>}, {transform_indices = @transform_4, window_bounds = array<i64: 1, 16, 16, 8>}, {transform_indices = @transform_5, window_bounds = array<i64: 1, 1, 8>}, {transform_indices = @transform_6, window_bounds = array<i64: 1, 1, 8>}]} {
    %c0 = arith.constant 0 : index
    %c0_0 = arith.constant 0 : index
    %c0_1 = arith.constant 0 : index
    %c0_2 = arith.constant 0 : index
    %0 = vector.load %arg1[%c0, %c0_0, %c0_1, %c0_2] : memref<1x16x16x8xbf16, #tpu.memory_space<vmem>>, vector<1x16x16x8xbf16>
    %1 = vector.shape_cast %0 : vector<1x16x16x8xbf16> to vector<16x16x8xbf16>
    %2 = arith.extf %1 : vector<16x16x8xbf16> to vector<16x16x8xf32>
    %c0_3 = arith.constant 0 : index
    %c0_4 = arith.constant 0 : index
    %3 = vector.load %arg2[%c0_3, %c0_4] : memref<1x8xf32, #tpu.memory_space<vmem>>, vector<1x8xf32>
    %4 = vector.shape_cast %3 : vector<1x8xf32> to vector<1x1x8xf32>
    %5 = vector.broadcast %4 : vector<1x1x8xf32> to vector<16x16x8xf32>
    %6 = arith.mulf %2, %5 : vector<16x16x8xf32>
    %c0_5 = arith.constant 0 : index
    %c0_6 = arith.constant 0 : index
    %7 = vector.load %arg3[%c0_5, %c0_6] : memref<1x8xf32, #tpu.memory_space<vmem>>, vector<1x8xf32>
    %8 = vector.shape_cast %7 : vector<1x8xf32> to vector<1x1x8xf32>
    %9 = vector.broadcast %8 : vector<1x1x8xf32> to vector<16x16x8xf32>
    %10 = arith.addf %6, %9 : vector<16x16x8xf32>
    %cst = arith.constant 0.000000e+00 : f32
    %11 = vector.broadcast %cst : f32 to vector<16x16x8xf32>
    %12 = arith.maximumf %10, %11 : vector<16x16x8xf32>
    %13 = arith.truncf %12 : vector<16x16x8xf32> to vector<16x16x8xbf16>
    %cst_7 = arith.constant 0.000000e+00 : bf16
    %14 = vector.broadcast %cst_7 : bf16 to vector<1x16x24xbf16>
    %c0_8 = arith.constant 0 : index
    %c0_9 = arith.constant 0 : index
    %c0_10 = arith.constant 0 : index
    %15 = vector.load %arg8[%c0_8, %c0_9, %c0_10] : memref<18x16x24xbf16, #tpu.memory_space<vmem>>, vector<1x16x24xbf16>
    tpu.vector_store %arg8[%c0_8, %c0_9, %c0_10], %14 {strides = array<i32>} : memref<18x16x24xbf16, #tpu.memory_space<vmem>>, vector<1x16x24xbf16>,
    %cst_11 = arith.constant 0.000000e+00 : bf16
    %16 = vector.broadcast %cst_11 : bf16 to vector<1x16x24xbf16>
    %c17 = arith.constant 17 : index
    %c0_12 = arith.constant 0 : index
    %c0_13 = arith.constant 0 : index
    %17 = vector.load %arg8[%c17, %c0_12, %c0_13] : memref<18x16x24xbf16, #tpu.memory_space<vmem>>, vector<1x16x24xbf16>
    tpu.vector_store %arg8[%c17, %c0_12, %c0_13], %16 {strides = array<i32>} : memref<18x16x24xbf16, #tpu.memory_space<vmem>>, vector<1x16x24xbf16>,
    %cst_14 = arith.constant 0.000000e+00 : bf16
    %18 = vector.broadcast %cst_14 : bf16 to vector<16x1x8xbf16>
    %c1 = arith.constant 1 : index
    %c0_15 = arith.constant 0 : index
    %c0_16 = arith.constant 0 : index
    %19 = vector.load %arg8[%c1, %c0_15, %c0_16] : memref<18x16x24xbf16, #tpu.memory_space<vmem>>, vector<16x1x8xbf16>
    tpu.vector_store %arg8[%c1, %c0_15, %c0_16], %18 {strides = array<i32>} : memref<18x16x24xbf16, #tpu.memory_space<vmem>>, vector<16x1x8xbf16>,
    %cst_17 = arith.constant 0.000000e+00 : bf16
    %20 = vector.broadcast %cst_17 : bf16 to vector<16x1x8xbf16>
    %c1_18 = arith.constant 1 : index
    %c15 = arith.constant 15 : index
    %c16 = arith.constant 16 : index
    %21 = vector.load %arg8[%c1_18, %c15, %c16] : memref<18x16x24xbf16, #tpu.memory_space<vmem>>, vector<16x1x8xbf16>
    tpu.vector_store %arg8[%c1_18, %c15, %c16], %20 {strides = array<i32>} : memref<18x16x24xbf16, #tpu.memory_space<vmem>>, vector<16x1x8xbf16>,
    %22 = vector.extract_strided_slice %13 {offsets = [0, 0, 0], sizes = [16, 15, 8], strides = [1, 1, 1]} : vector<16x16x8xbf16> to vector<16x15x8xbf16>
    %c1_19 = arith.constant 1 : index
    %c1_20 = arith.constant 1 : index
    %c0_21 = arith.constant 0 : index
    %23 = vector.load %arg8[%c1_19, %c1_20, %c0_21] : memref<18x16x24xbf16, #tpu.memory_space<vmem>>, vector<16x15x8xbf16>
    tpu.vector_store %arg8[%c1_19, %c1_20, %c0_21], %22 {strides = array<i32>} : memref<18x16x24xbf16, #tpu.memory_space<vmem>>, vector<16x15x8xbf16>,
    %c1_22 = arith.constant 1 : index
    %c0_23 = arith.constant 0 : index
    %c8 = arith.constant 8 : index
    %24 = vector.load %arg8[%c1_22, %c0_23, %c8] : memref<18x16x24xbf16, #tpu.memory_space<vmem>>, vector<16x16x8xbf16>
    tpu.vector_store %arg8[%c1_22, %c0_23, %c8], %13 {strides = array<i32>} : memref<18x16x24xbf16, #tpu.memory_space<vmem>>, vector<16x16x8xbf16>,
    %25 = vector.extract_strided_slice %13 {offsets = [0, 1, 0], sizes = [16, 15, 8], strides = [1, 1, 1]} : vector<16x16x8xbf16> to vector<16x15x8xbf16>
    %c1_24 = arith.constant 1 : index
    %c0_25 = arith.constant 0 : index
    %c16_26 = arith.constant 16 : index
    %26 = vector.load %arg8[%c1_24, %c0_25, %c16_26] : memref<18x16x24xbf16, #tpu.memory_space<vmem>>, vector<16x15x8xbf16>
    tpu.vector_store %arg8[%c1_24, %c0_25, %c16_26], %25 {strides = array<i32>} : memref<18x16x24xbf16, #tpu.memory_space<vmem>>, vector<16x15x8xbf16>,
    %cst_27 = arith.constant 0.000000e+00 : f32
    %27 = vector.broadcast %cst_27 : f32 to vector<256x8xf32>
    %c0_28 = arith.constant 0 : index
    %c0_29 = arith.constant 0 : index
    %c0_30 = arith.constant 0 : index
    %28 = vector.load %arg8[%c0_28, %c0_29, %c0_30] : memref<18x16x24xbf16, #tpu.memory_space<vmem>>, vector<16x16x24xbf16>
    %29 = vector.shape_cast %28 : vector<16x16x24xbf16> to vector<256x24xbf16>
    %c0_31 = arith.constant 0 : index
    %c0_32 = arith.constant 0 : index
    %c0_33 = arith.constant 0 : index
    %30 = vector.load %arg4[%c0_31, %c0_32, %c0_33] : memref<3x24x8xbf16, #tpu.memory_space<vmem>>, vector<1x24x8xbf16>
    %31 = vector.shape_cast %30 : vector<1x24x8xbf16> to vector<24x8xbf16>
    %cst_34 = arith.constant dense<0.000000e+00> : vector<256x8xf32>
    %32 = tpu.matmul %29, %31, %cst_34 {dimension_numbers = #tpu.dot_dimension_numbers<[1], [0], [0], [1], [0, 0, 1, 1], [], []>} : vector<256x24xbf16>, vector<24x8xbf16>, vector<256x8xf32> -> vector<256x8xf32>
    %33 = arith.addf %27, %32 : vector<256x8xf32>
    %c1_35 = arith.constant 1 : index
    %c0_36 = arith.constant 0 : index
    %c0_37 = arith.constant 0 : index
    %34 = vector.load %arg8[%c1_35, %c0_36, %c0_37] : memref<18x16x24xbf16, #tpu.memory_space<vmem>>, vector<16x16x24xbf16>
    %35 = vector.shape_cast %34 : vector<16x16x24xbf16> to vector<256x24xbf16>
    %c1_38 = arith.constant 1 : index
    %c0_39 = arith.constant 0 : index
    %c0_40 = arith.constant 0 : index
    %36 = vector.load %arg4[%c1_38, %c0_39, %c0_40] : memref<3x24x8xbf16, #tpu.memory_space<vmem>>, vector<1x24x8xbf16>
    %37 = vector.shape_cast %36 : vector<1x24x8xbf16> to vector<24x8xbf16>
    %cst_41 = arith.constant dense<0.000000e+00> : vector<256x8xf32>
    %38 = tpu.matmul %35, %37, %cst_41 {dimension_numbers = #tpu.dot_dimension_numbers<[1], [0], [0], [1], [0, 0, 1, 1], [], []>} : vector<256x24xbf16>, vector<24x8xbf16>, vector<256x8xf32> -> vector<256x8xf32>
    %39 = arith.addf %33, %38 : vector<256x8xf32>
    %c2 = arith.constant 2 : index
    %c0_42 = arith.constant 0 : index
    %c0_43 = arith.constant 0 : index
    %40 = vector.load %arg8[%c2, %c0_42, %c0_43] : memref<18x16x24xbf16, #tpu.memory_space<vmem>>, vector<16x16x24xbf16>
    %41 = vector.shape_cast %40 : vector<16x16x24xbf16> to vector<256x24xbf16>
    %c2_44 = arith.constant 2 : index
    %c0_45 = arith.constant 0 : index
    %c0_46 = arith.constant 0 : index
    %42 = vector.load %arg4[%c2_44, %c0_45, %c0_46] : memref<3x24x8xbf16, #tpu.memory_space<vmem>>, vector<1x24x8xbf16>
    %43 = vector.shape_cast %42 : vector<1x24x8xbf16> to vector<24x8xbf16>
    %cst_47 = arith.constant dense<0.000000e+00> : vector<256x8xf32>
    %44 = tpu.matmul %41, %43, %cst_47 {dimension_numbers = #tpu.dot_dimension_numbers<[1], [0], [0], [1], [0, 0, 1, 1], [], []>} : vector<256x24xbf16>, vector<24x8xbf16>, vector<256x8xf32> -> vector<256x8xf32>
    %45 = arith.addf %39, %44 : vector<256x8xf32>
    %46 = vector.shape_cast %45 : vector<256x8xf32> to vector<16x16x8xf32>
    %c0_48 = arith.constant 0 : index
    %c0_49 = arith.constant 0 : index
    %c0_50 = arith.constant 0 : index
    %c0_51 = arith.constant 0 : index
    %47 = vector.load %arg5[%c0_48, %c0_49, %c0_50, %c0_51] : memref<1x16x16x8xf32, #tpu.memory_space<vmem>>, vector<1x16x16x8xf32>
    %48 = vector.shape_cast %47 : vector<1x16x16x8xf32> to vector<16x16x8xf32>
    %49 = vector.shape_cast %46 : vector<16x16x8xf32> to vector<1x16x16x8xf32>
    tpu.vector_store %arg5[%c0_48, %c0_49, %c0_50, %c0_51], %49 {strides = array<i32>} : memref<1x16x16x8xf32, #tpu.memory_space<vmem>>, vector<1x16x16x8xf32>,
    %cst_52 = arith.constant dense<0.000000e+00> : vector<8xf32>
    %50 = vector.multi_reduction <add>, %45, %cst_52 [0] : vector<256x8xf32> to vector<8xf32>
    %51 = vector.shape_cast %50 : vector<8xf32> to vector<1x8xf32>
    %c0_53 = arith.constant 0 : index
    %c0_54 = arith.constant 0 : index
    %c0_55 = arith.constant 0 : index
    %52 = vector.load %arg6[%c0_53, %c0_54, %c0_55] : memref<1x1x8xf32, #tpu.memory_space<vmem>>, vector<1x1x8xf32>
    %53 = vector.shape_cast %52 : vector<1x1x8xf32> to vector<1x8xf32>
    %54 = vector.shape_cast %51 : vector<1x8xf32> to vector<1x1x8xf32>
    tpu.vector_store %arg6[%c0_53, %c0_54, %c0_55], %54 {strides = array<i32>} : memref<1x1x8xf32, #tpu.memory_space<vmem>>, vector<1x1x8xf32>,
    %55 = arith.mulf %45, %45 : vector<256x8xf32>
    %cst_56 = arith.constant dense<0.000000e+00> : vector<8xf32>
    %56 = vector.multi_reduction <add>, %55, %cst_56 [0] : vector<256x8xf32> to vector<8xf32>
    %57 = vector.shape_cast %56 : vector<8xf32> to vector<1x8xf32>
    %c0_57 = arith.constant 0 : index
    %c0_58 = arith.constant 0 : index
    %c0_59 = arith.constant 0 : index
    %58 = vector.load %arg7[%c0_57, %c0_58, %c0_59] : memref<1x1x8xf32, #tpu.memory_space<vmem>>, vector<1x1x8xf32>
    %59 = vector.shape_cast %58 : vector<1x1x8xf32> to vector<1x8xf32>
    %60 = vector.shape_cast %57 : vector<1x8xf32> to vector<1x1x8xf32>
    tpu.vector_store %arg7[%c0_57, %c0_58, %c0_59], %60 {strides = array<i32>} : memref<1x1x8xf32, #tpu.memory_space<vmem>>, vector<1x1x8xf32>,
    return
  }
  func.func @transform_0(%arg0: i32) -> (i32, i32, i32, i32) {
    %c0_i32 = arith.constant 0 : i32
    %c0_i32_0 = arith.constant 0 : i32
    %c0_i32_1 = arith.constant 0 : i32
    %c0_i32_2 = arith.constant 0 : i32
    return %arg0, %c0_i32, %c0_i32_0, %c0_i32_1 : i32, i32, i32, i32
  }
  func.func @transform_1(%arg0: i32) -> (i32, i32) {
    %c0_i32 = arith.constant 0 : i32
    %c0_i32_0 = arith.constant 0 : i32
    %c0_i32_1 = arith.constant 0 : i32
    return %c0_i32, %c0_i32_0 : i32, i32
  }
  func.func @transform_2(%arg0: i32) -> (i32, i32) {
    %c0_i32 = arith.constant 0 : i32
    %c0_i32_0 = arith.constant 0 : i32
    %c0_i32_1 = arith.constant 0 : i32
    return %c0_i32, %c0_i32_0 : i32, i32
  }
  func.func @transform_3(%arg0: i32) -> (i32, i32, i32) {
    %c0_i32 = arith.constant 0 : i32
    %c0_i32_0 = arith.constant 0 : i32
    %c0_i32_1 = arith.constant 0 : i32
    %c0_i32_2 = arith.constant 0 : i32
    return %c0_i32, %c0_i32_0, %c0_i32_1 : i32, i32, i32
  }
  func.func @transform_4(%arg0: i32) -> (i32, i32, i32, i32) {
    %c0_i32 = arith.constant 0 : i32
    %c0_i32_0 = arith.constant 0 : i32
    %c0_i32_1 = arith.constant 0 : i32
    %c0_i32_2 = arith.constant 0 : i32
    return %arg0, %c0_i32, %c0_i32_0, %c0_i32_1 : i32, i32, i32, i32
  }
  func.func @transform_5(%arg0: i32) -> (i32, i32, i32) {
    %c0_i32 = arith.constant 0 : i32
    %c0_i32_0 = arith.constant 0 : i32
    %c0_i32_1 = arith.constant 0 : i32
    return %arg0, %c0_i32, %c0_i32_0 : i32, i32, i32
  }
  func.func @transform_6(%arg0: i32) -> (i32, i32, i32) {
    %c0_i32 = arith.constant 0 : i32
    %c0_i32_0 = arith.constant 0 : i32
    %c0_i32_1 = arith.constant 0 : i32
    return %arg0, %c0_i32, %c0_i32_0 : i32, i32, i32
  }
}

</mosaic_0001>

<bundles_post_ra>
// kernel: basic_block_forward.5
= control target key start
LH: loop header
LB: loop body
LE: loop exit
PB: predicated region body
PF: predicated region fallthrough
CT: control target
= control target key end

     0   :  { %s577_s15 = smov 0   ;;  %s843_s0 = inlined_call_operand.vmem [shape: f32[2,16,16,8], index: 0, kind: input, shape index: {}, may-alias: {0,4}]   ;;  %s844_s1 = inlined_call_operand.vmem [shape: f32[2,16,16,8], index: 1, kind: input, shape index: {}]   ;;  %s845_s2 = inlined_call_operand.vmem [shape: f32[1,8], index: 2, kind: input, shape index: {}]   ;;  %s846_s3 = inlined_call_operand.vmem [shape: f32[1,8], index: 3, kind: input, shape index: {}]   ;;  %s847_s4 = inlined_call_operand.vmem [shape: f32[2,16,16,8], index: 4, kind: output, shape index: {}, may-alias: {0,4}]  }
   0x1 LB: > { %s518_s16 = sadd.s32 4294967295, %s550_s15   ;;  %p522_p0 = scmp.ge.s32.totalorder %s550_s15, 1  ;;  %s550_s15 = sphi %s577_s15, %s14_s15  }
   0x2   : > { %p172_p1 = scmp.lt.s32.totalorder %s550_s15, 3 }
   0x4   : > { %p173_p2 = pnand %p522_p0, %p172_p1 }
   0x5   : > { %p203_p3 = scmp.lt.s32.totalorder (!%p173_p2), %s518_s16, 1 }
   0x6   : > { %176 = sbr.rel (%p173_p2) target bundleno = 60 (0x3c), region = 36 }
   0xb   : > { %s849_s16 = smov (!%p203_p3, %s518_s16), 1  ;;  %v596_v0 = vld [vmem:[%s845_s2] ss:$0 sm:$0xff]  ;;  %vm418_vm0 = vcmask 64512  }
   0xc   : > { %s585_s17 = sshll.u32 %s849_s16, 8  ;;  %v612_v12 = vld [vmem:[%s846_s3] ss:$0 sm:$0xff] }
   0xd   : > { %s591_s20 = scalar_lea.vmem %s843_s0, %s585_s17  ;;  %s629_s27 = scalar_lea.vmem %s844_s1, %s585_s17 }
   0xe   : > { %v218_v1 = vld [vmem:[%s591_s20] sm:$0xff]  ;;  %v219_v2 = vld [vmem:[%s591_s20 + $0x8] sm:$0xff]  ;;  %v220_v3 = vld [vmem:[%s591_s20 + $0x10] sm:$0xff]  ;;  %s662_s30 = scalar_lea.vmem %s847_s4, %s585_s17 }
   0xf   : > { %v221_v4 = vld [vmem:[%s591_s20 + $0x18] sm:$0xff]  ;;  %v222_v5 = vld [vmem:[%s591_s20 + $0x20] sm:$0xff]  ;;  %v223_v6 = vld [vmem:[%s591_s20 + $0x28] sm:$0xff]  ;;  %v254_v11 = vmul.f32 %v596_v0, %v218_v1  ;;  %v255_v15 = vmul.f32 %v596_v0, %v219_v2  ;;  %v256_v16 = vmul.f32 %v596_v0, %v220_v3 }
  0x10   : > { %v224_v7 = vld [vmem:[%s591_s20 + $0x30] sm:$0xff]  ;;  %v225_v8 = vld [vmem:[%s591_s20 + $0x38] sm:$0xff]  ;;  %v226_v9 = vld [vmem:[%s591_s20 + $0x40] sm:$0xff]  ;;  %v257_v17 = vmul.f32 %v596_v0, %v221_v4  ;;  %v258_v18 = vmul.f32 %v596_v0, %v222_v5  ;;  %v259_v19 = vmul.f32 %v596_v0, %v223_v6 }
  0x11   : > { %v227_v10 = vld [vmem:[%s591_s20 + $0x48] sm:$0xff]  ;;  %v228_v13 = vld [vmem:[%s591_s20 + $0x50] sm:$0xff]  ;;  %v229_v14 = vld [vmem:[%s591_s20 + $0x58] sm:$0xff]  ;;  %v260_v20 = vmul.f32 %v596_v0, %v224_v7  ;;  %v261_v21 = vmul.f32 %v596_v0, %v225_v8  ;;  %v262_v22 = vmul.f32 %v596_v0, %v226_v9  ;;  %v290_v26 = vadd.f32 %v612_v12, %v254_v11 }
  0x12   : > { %v263_v23 = vmul.f32 %v596_v0, %v227_v10  ;;  %v230_v24 = vld [vmem:[%s591_s20 + $0x60] sm:$0xff]  ;;  %v231_v25 = vld [vmem:[%s591_s20 + $0x68] sm:$0xff]  ;;  %v264_v27 = vmul.f32 %v596_v0, %v228_v13  ;;  %v265_v28 = vmul.f32 %v596_v0, %v229_v14  ;;  %v232_v29 = vld [vmem:[%s591_s20 + $0x70] sm:$0xff]  ;;  %v291_v30 = vadd.f32 %v612_v12, %v255_v15 }
  0x13   : > { %v292_v31 = vadd.f32 %v612_v12, %v256_v16  ;;  %v293_v32 = vadd.f32 %v612_v12, %v257_v17  ;;  %v233_v33 = vld [vmem:[%s591_s20 + $0x78] sm:$0xff]  ;;  %v294_v34 = vadd.f32 %v612_v12, %v258_v18  ;;  %v295_v35 = vadd.f32 %v612_v12, %v259_v19  ;;  %v234_v38 = vld [vmem:[%s591_s20 + $0x80] sm:$0xff]  ;;  %v235_v44 = vld [vmem:[%s591_s20 + $0x88] sm:$0xff] }
  0x14   : > { %v296_v36 = vadd.f32 %v612_v12, %v260_v20  ;;  %v297_v37 = vadd.f32 %v612_v12, %v261_v21  ;;  %v322_v39 = vld [vmem:[%s629_s27] sm:$0xff]  ;;  %v298_v40 = vadd.f32 %v612_v12, %v262_v22  ;;  %v299_v41 = vadd.f32 %v612_v12, %v263_v23  ;;  %v323_v46 = vld [vmem:[%s629_s27 + $0x8] sm:$0xff]  ;;  %v324_v47 = vld [vmem:[%s629_s27 + $0x10] sm:$0xff] }
  0x15   : > { %v266_v42 = vmul.f32 %v596_v0, %v230_v24  ;;  %v267_v43 = vmul.f32 %v596_v0, %v231_v25  ;;  %v354_v45 = vadd.f32 %v322_v39, %v290_v26  ;;  %v325_v48 = vld [vmem:[%s629_s27 + $0x18] sm:$0xff]  ;;  %v300_v49 = vadd.f32 %v612_v12, %v264_v27  ;;  %v236_v52 = vld [vmem:[%s591_s20 + $0x90] sm:$0xff]  ;;  %v238_v54 = vld [vmem:[%s591_s20 + $0xa0] sm:$0xff] }
  0x16   : > { %v301_v50 = vadd.f32 %v612_v12, %v265_v28  ;;  %v268_v51 = vmul.f32 %v596_v0, %v232_v29  ;;  %v237_v53 = vld [vmem:[%s591_s20 + $0x98] sm:$0xff]  ;;  %v668_v55 = vld [vmem:[%s591_s20 + $0xa8] sm:$0xff]  ;;  %v671_v56 = vld [vmem:[%s591_s20 + $0xb0] sm:$0xff]  ;;  %v355_v1 = vadd.f32 %v323_v46, %v291_v30  ;;  %v356_v2 = vadd.f32 %v324_v47, %v292_v31 }
  0x17   : > { %v674_v57 = vld [vmem:[%s591_s20 + $0xb8] sm:$0xff]  ;;  %v677_v58 = vld [vmem:[%s591_s20 + $0xc0] sm:$0xff]  ;;  %v680_v59 = vld [vmem:[%s591_s20 + $0xc8] sm:$0xff]  ;;  %v357_v3 = vadd.f32 %v325_v48, %v293_v32  ;;  %v269_v7 = vmul.f32 %v596_v0, %v233_v33  ;;  %v386_v8 = vmax.f32 %v354_v45, 0.0  ;;  %v302_v26 = vadd.f32 %v612_v12, %v266_v42 }
  0x18   : > { %v683_v60 = vld [vmem:[%s591_s20 + $0xd0] sm:$0xff]  ;;  %v686_v61 = vld [vmem:[%s591_s20 + $0xd8] sm:$0xff]  ;;  %v689_v62 = vld [vmem:[%s591_s20 + $0xe0] sm:$0xff]  ;;  %v387_v18 = vmax.f32 %v355_v1, 0.0  ;;  %v388_v19 = vmax.f32 %v356_v2, 0.0  ;;  %v270_v27 = vmul.f32 %v596_v0, %v234_v38  ;;  %v303_v31 = vadd.f32 %v612_v12, %v267_v43 }
  0x19   : > { %v692_v63 = vld [vmem:[%s591_s20 + $0xe8] sm:$0xff]  ;;  %v326_v4 = vld [vmem:[%s629_s27 + $0x20] sm:$0xff]  ;;  %v328_v6 = vld [vmem:[%s629_s27 + $0x30] sm:$0xff]  ;;  %v389_v20 = vmax.f32 %v357_v3, 0.0  ;;  %v271_v32 = vmul.f32 %v596_v0, %v235_v44  ;;  %v273_v42 = vmul.f32 %v596_v0, %v237_v53  ;;  %v274_v47 = vmul.f32 %v596_v0, %v238_v54 }
  0x1a   : > { %v327_v5 = vld [vmem:[%s629_s27 + $0x28] sm:$0xff]  ;;  %v358_v9 = vadd.f32 %v326_v4, %v294_v34  ;;  %v360_v11 = vadd.f32 %v328_v6, %v296_v36  ;;  %v329_v13 = vld [vmem:[%s629_s27 + $0x38] sm:$0xff]  ;;  %v330_v14 = vld [vmem:[%s629_s27 + $0x40] sm:$0xff]  ;;  %v304_v36 = vadd.f32 %v612_v12, %v268_v51  ;;  %v306_v46 = vadd.f32 %v612_v12, %v270_v27 }
  0x1b   : > { %v359_v10 = vadd.f32 %v327_v5, %v295_v35  ;;  %v331_v15 = vld [vmem:[%s629_s27 + $0x48] sm:$0xff]  ;;  %v702_v16 = vld [vmem:[%s591_s20 + $0xf0] sm:$0xff]  ;;  %v705_v17 = vld [vmem:[%s591_s20 + $0xf8] sm:$0xff]  ;;  %v361_v21 = vadd.f32 %v329_v13, %v297_v37  ;;  %v362_v24 = vadd.f32 %v330_v14, %v298_v40  ;;  %v272_v37 = vmul.f32 %v596_v0, %v236_v52 }
  0x1c   : > { %v332_v22 = vld [vmem:[%s629_s27 + $0x50] sm:$0xff]  ;;  %419 = vst.msk [vmem:[%s662_s30] sm:$0xff] %vm418_vm0, %v386_v8  ;;  %v390_v23 = vmax.f32 %v358_v9, 0.0  ;;  %v333_v25 = vld [vmem:[%s629_s27 + $0x58] sm:$0xff]  ;;  %v363_v29 = vadd.f32 %v331_v15, %v299_v41  ;;  %v334_v30 = vld [vmem:[%s629_s27 + $0x60] sm:$0xff]  ;;  %v392_v33 = vmax.f32 %v360_v11, 0.0  ;;  %v305_v41 = vadd.f32 %v612_v12, %v269_v7 }
  0x1d   : > { %420 = vst.msk [vmem:[%s662_s30 + $0x8] sm:$0xff] %vm418_vm0, %v387_v18  ;;  %v391_v28 = vmax.f32 %v359_v10, 0.0  ;;  %v364_v34 = vadd.f32 %v332_v22, %v300_v49  ;;  %v335_v35 = vld [vmem:[%s629_s27 + $0x68] sm:$0xff]  ;;  %v393_v38 = vmax.f32 %v361_v21, 0.0  ;;  %v365_v39 = vadd.f32 %v333_v25, %v301_v50  ;;  %v336_v40 = vld [vmem:[%s629_s27 + $0x70] sm:$0xff]  ;;  %v337_v45 = vld [vmem:[%s629_s27 + $0x78] sm:$0xff] }
  0x1e   : > { %421 = vst.msk [vmem:[%s662_s30 + $0x10] sm:$0xff] %vm418_vm0, %v388_v19  ;;  %v394_v43 = vmax.f32 %v362_v24, 0.0  ;;  %v366_v44 = vadd.f32 %v334_v30, %v302_v26  ;;  %v395_v48 = vmax.f32 %v363_v29, 0.0  ;;  %v367_v49 = vadd.f32 %v335_v35, %v303_v31  ;;  %v338_v50 = vld [vmem:[%s629_s27 + $0x80] sm:$0xff]  ;;  %v339_v2 = vld [vmem:[%s629_s27 + $0x88] sm:$0xff]  ;;  %v340_v6 = vld [vmem:[%s629_s27 + $0x90] sm:$0xff] }
  0x1f   : > { %422 = vst.msk [vmem:[%s662_s30 + $0x18] sm:$0xff] %vm418_vm0, %v389_v20  ;;  %v307_v51 = vadd.f32 %v612_v12, %v271_v32  ;;  %v275_v52 = vmul.f32 %v596_v0, %v668_v55  ;;  %v396_v53 = vmax.f32 %v364_v34, 0.0  ;;  %v368_v1 = vadd.f32 %v336_v40, %v304_v36  ;;  %v341_v10 = vld [vmem:[%s629_s27 + $0x98] sm:$0xff]  ;;  %v342_v15 = vld [vmem:[%s629_s27 + $0xa0] sm:$0xff]  ;;  %v343_v21 = vld [vmem:[%s629_s27 + $0xa8] sm:$0xff] }
  0x20   : > { %423 = vst.msk [vmem:[%s662_s30 + $0x20] sm:$0xff] %vm418_vm0, %v390_v23  ;;  %v308_v54 = vadd.f32 %v612_v12, %v272_v37  ;;  %v276_v3 = vmul.f32 %v596_v0, %v671_v56  ;;  %v397_v4 = vmax.f32 %v365_v39, 0.0  ;;  %v369_v5 = vadd.f32 %v337_v45, %v305_v41  ;;  %v344_v25 = vld [vmem:[%s629_s27 + $0xb0] sm:$0xff]  ;;  %v345_v29 = vld [vmem:[%s629_s27 + $0xb8] sm:$0xff]  ;;  %v347_v37 = vld [vmem:[%s629_s27 + $0xc8] sm:$0xff] }
  0x21   : > { %424 = vst.msk [vmem:[%s662_s30 + $0x28] sm:$0xff] %vm418_vm0, %v391_v28  ;;  %v309_v55 = vadd.f32 %v612_v12, %v273_v42  ;;  %v277_v7 = vmul.f32 %v596_v0, %v674_v57  ;;  %v398_v8 = vmax.f32 %v366_v44, 0.0  ;;  %v370_v9 = vadd.f32 %v338_v50, %v306_v46  ;;  %v348_v41 = vld [vmem:[%s629_s27 + $0xd0] sm:$0xff]  ;;  %v349_v45 = vld [vmem:[%s629_s27 + $0xd8] sm:$0xff]  ;;  %v351_v50 = vld [vmem:[%s629_s27 + $0xe8] sm:$0xff] }
  0x22   : > { %425 = vst.msk [vmem:[%s662_s30 + $0x30] sm:$0xff] %vm418_vm0, %v392_v33  ;;  %v310_v56 = vadd.f32 %v612_v12, %v274_v47  ;;  %v278_v11 = vmul.f32 %v596_v0, %v677_v58  ;;  %v399_v13 = vmax.f32 %v367_v49, 0.0  ;;  %v371_v14 = vadd.f32 %v339_v2, %v307_v51  ;;  %v346_v33 = vld [vmem:[%s629_s27 + $0xc0] sm:$0xff] }
  0x23   : > { %426 = vst.msk [vmem:[%s662_s30 + $0x38] sm:$0xff] %vm418_vm0, %v393_v38  ;;  %v311_v57 = vadd.f32 %v612_v12, %v275_v52  ;;  %v279_v18 = vmul.f32 %v596_v0, %v680_v59  ;;  %v400_v19 = vmax.f32 %v368_v1, 0.0  ;;  %v372_v20 = vadd.f32 %v340_v6, %v308_v54  ;;  %v352_v1 = vld [vmem:[%s629_s27 + $0xf0] sm:$0xff] }
  0x24   : > { %427 = vst.msk [vmem:[%s662_s30 + $0x40] sm:$0xff] %vm418_vm0, %v394_v43  ;;  %v312_v58 = vadd.f32 %v612_v12, %v276_v3  ;;  %v280_v22 = vmul.f32 %v596_v0, %v683_v60  ;;  %v401_v23 = vmax.f32 %v369_v5, 0.0  ;;  %v373_v24 = vadd.f32 %v341_v10, %v309_v55 }
  0x25   : > { %428 = vst.msk [vmem:[%s662_s30 + $0x48] sm:$0xff] %vm418_vm0, %v395_v48  ;;  %v313_v59 = vadd.f32 %v612_v12, %v277_v7  ;;  %v281_v26 = vmul.f32 %v596_v0, %v686_v61  ;;  %v402_v27 = vmax.f32 %v370_v9, 0.0  ;;  %v374_v28 = vadd.f32 %v342_v15, %v310_v56  ;;  %v350_v48 = vld [vmem:[%s629_s27 + $0xe0] sm:$0xff] }
  0x26   : > { %429 = vst.msk [vmem:[%s662_s30 + $0x50] sm:$0xff] %vm418_vm0, %v396_v53  ;;  %v314_v60 = vadd.f32 %v612_v12, %v278_v11  ;;  %v282_v30 = vmul.f32 %v596_v0, %v689_v62  ;;  %v403_v31 = vmax.f32 %v371_v14, 0.0  ;;  %v375_v32 = vadd.f32 %v343_v21, %v311_v57 }
  0x27   : > { %430 = vst.msk [vmem:[%s662_s30 + $0x58] sm:$0xff] %vm418_vm0, %v397_v4  ;;  %v315_v61 = vadd.f32 %v612_v12, %v279_v18  ;;  %v283_v34 = vmul.f32 %v596_v0, %v692_v63  ;;  %v404_v35 = vmax.f32 %v372_v20, 0.0  ;;  %v376_v36 = vadd.f32 %v344_v25, %v312_v58  ;;  %v353_v4 = vld [vmem:[%s629_s27 + $0xf8] sm:$0xff] }
  0x28   : > { %431 = vst.msk [vmem:[%s662_s30 + $0x60] sm:$0xff] %vm418_vm0, %v398_v8  ;;  %v316_v62 = vadd.f32 %v612_v12, %v280_v22  ;;  %v284_v38 = vmul.f32 %v596_v0, %v702_v16  ;;  %v405_v39 = vmax.f32 %v373_v24, 0.0  ;;  %v377_v40 = vadd.f32 %v345_v29, %v313_v59 }
  0x29   : > { %432 = vst.msk [vmem:[%s662_s30 + $0x68] sm:$0xff] %vm418_vm0, %v399_v13  ;;  %v317_v63 = vadd.f32 %v612_v12, %v281_v26  ;;  %v285_v42 = vmul.f32 %v596_v0, %v705_v17  ;;  %v406_v43 = vmax.f32 %v374_v28, 0.0  ;;  %v378_v44 = vadd.f32 %v346_v33, %v314_v60 }
  0x2a   : > { %433 = vst.msk [vmem:[%s662_s30 + $0x70] sm:$0xff] %vm418_vm0, %v400_v19  ;;  %v318_v16 = vadd.f32 %v612_v12, %v282_v30  ;;  %v407_v46 = vmax.f32 %v375_v32, 0.0  ;;  %v379_v47 = vadd.f32 %v347_v37, %v315_v61  ;;  %v319_v49 = vadd.f32 %v612_v12, %v283_v34 }
  0x2b   : > { %434 = vst.msk [vmem:[%s662_s30 + $0x78] sm:$0xff] %vm418_vm0, %v401_v23  ;;  %v408_v0 = vmax.f32 %v376_v36, 0.0  ;;  %v380_v17 = vadd.f32 %v348_v41, %v316_v62  ;;  %v320_v51 = vadd.f32 %v612_v12, %v284_v38  ;;  %v409_v52 = vmax.f32 %v377_v40, 0.0 }
  0x2c   : > { %435 = vst.msk [vmem:[%s662_s30 + $0x80] sm:$0xff] %vm418_vm0, %v402_v27  ;;  %v381_v53 = vadd.f32 %v349_v45, %v317_v63  ;;  %v321_v2 = vadd.f32 %v612_v12, %v285_v42  ;;  %v410_v54 = vmax.f32 %v378_v44, 0.0  ;;  %v382_v3 = vadd.f32 %v350_v48, %v318_v16 }
  0x2d   : > { %436 = vst.msk [vmem:[%s662_s30 + $0x88] sm:$0xff] %vm418_vm0, %v403_v31  ;;  %v411_v5 = vmax.f32 %v379_v47, 0.0  ;;  %v383_v6 = vadd.f32 %v351_v50, %v319_v49  ;;  %v412_v55 = vmax.f32 %v380_v17, 0.0  ;;  %v384_v12 = vadd.f32 %v352_v1, %v320_v51 }
  0x2e   : > { %437 = vst.msk [vmem:[%s662_s30 + $0x90] sm:$0xff] %vm418_vm0, %v404_v35  ;;  %v413_v7 = vmax.f32 %v381_v53, 0.0  ;;  %v385_v8 = vadd.f32 %v353_v4, %v321_v2  ;;  %v414_v9 = vmax.f32 %v382_v3, 0.0 }
  0x2f   : > { %438 = vst.msk [vmem:[%s662_s30 + $0x98] sm:$0xff] %vm418_vm0, %v405_v39  ;;  %v415_v10 = vmax.f32 %v383_v6, 0.0  ;;  %v416_v56 = vmax.f32 %v384_v12, 0.0 }
  0x30   : > { %439 = vst.msk [vmem:[%s662_s30 + $0xa0] sm:$0xff] %vm418_vm0, %v406_v43  ;;  %v417_v11 = vmax.f32 %v385_v8, 0.0 }
  0x31   : > { %440 = vst.msk [vmem:[%s662_s30 + $0xa8] sm:$0xff] %vm418_vm0, %v407_v46 }
  0x32   : > { %441 = vst.msk [vmem:[%s662_s30 + $0xb0] sm:$0xff] %vm418_vm0, %v408_v0 }
  0x33   : > { %442 = vst.msk [vmem:[%s662_s30 + $0xb8] sm:$0xff] %vm418_vm0, %v409_v52 }
  0x34   : > { %443 = vst.msk [vmem:[%s662_s30 + $0xc0] sm:$0xff] %vm418_vm0, %v410_v54 }
  0x35   : > { %444 = vst.msk [vmem:[%s662_s30 + $0xc8] sm:$0xff] %vm418_vm0, %v411_v5 }
  0x36   : > { %445 = vst.msk [vmem:[%s662_s30 + $0xd0] sm:$0xff] %vm418_vm0, %v412_v55 }
  0x37   : > { %446 = vst.msk [vmem:[%s662_s30 + $0xd8] sm:$0xff] %vm418_vm0, %v413_v7 }
  0x38   : > { %447 = vst.msk [vmem:[%s662_s30 + $0xe0] sm:$0xff] %vm418_vm0, %v414_v9 }
  0x39   : > { %448 = vst.msk [vmem:[%s662_s30 + $0xe8] sm:$0xff] %vm418_vm0, %v415_v10 }
  0x3a   : > { %449 = vst.msk [vmem:[%s662_s30 + $0xf0] sm:$0xff] %vm418_vm0, %v416_v56 }
  0x3b   : > { %450 = vst.msk [vmem:[%s662_s30 + $0xf8] sm:$0xff] %vm418_vm0, %v417_v11 }
  0x3c PF: > { %s14_s15 = sadd.s32 1, %s550_s15  }
  0x3d   : > { %p11_p4 = scmp.ge.s32.totalorder %s14_s15, 4  }
  0x3f   :  { %13 = sbr.rel (!%p11_p4) target bundleno = 1 (0x1), region = 69 }

// kernel: basic_block_forward.4
= control target key start
LH: loop header
LB: loop body
LE: loop exit
PB: predicated region body
PF: predicated region fallthrough
CT: control target
= control target key end

     0   :  { %s3016_s21 = smov 0   ;;  %s4270_s0 = inlined_call_operand.vmem [shape: bf16[2,16,16,8], index: 0, kind: input, shape index: {}]   ;;  %s4271_s1 = inlined_call_operand.vmem [shape: f32[1,8], index: 1, kind: input, shape index: {}]   ;;  %s4272_s2 = inlined_call_operand.vmem [shape: f32[1,8], index: 2, kind: input, shape index: {}]   ;;  %s4273_s3 = inlined_call_operand.vmem [shape: bf16[3,24,8], index: 3, kind: input, shape index: {}]   ;;  %s4274_s4 = inlined_call_operand.vmem [shape: f32[2,16,16,8], index: 4, kind: output, shape index: {0}]   ;;  %s4275_s5 = inlined_call_operand.vmem [shape: f32[2,1,8], index: 5, kind: output, shape index: {1}]   ;;  %s4276_s6 = inlined_call_operand.vmem [shape: f32[2,1,8], index: 6, kind: output, shape index: {2}]  }
   0x1 LB: > { %s2548_s22 = sadd.s32 4294967295, %s2976_s21   ;;  %p2552_p0 = scmp.ge.s32.totalorder %s2976_s21, 1  ;;  %s2976_s21 = sphi %s3016_s21, %s17_s21  }
   0x2   : > { %p217_p1 = scmp.lt.s32.totalorder %s2976_s21, 3 }
   0x4   : > { %p218_p2 = pnand %p2552_p0, %p217_p1 }
   0x5   : > { %p253_p3 = scmp.lt.s32.totalorder (!%p218_p2), %s2548_s22, 1  ;;  %s2978_s7 = smov (!%p218_p2), 8  }
   0x6   : > { %221 = sbr.rel (%p218_p2) target bundleno = 543 (0x21f), region = 36  ;;  %s2979_s8 = smov (!%p218_p2), 16  }
   0xb   : > { %s4312_s22 = smov (!%p253_p3, %s2548_s22), 1  ;;  %v3035_v0 = vld [vmem:[%s4271_s1] ss:$0 sm:$0xff]  ;;  %vm1098_vm0 = vsmask.f32 3328  ;;  %vm477_vm3 = vcmask 57344  }
   0xc   : > { %s2817_s23 = sshll.u32 %s4312_s22, 7  ;;  %v3043_v5 = vld [vmem:[%s4272_s2] ss:$0 sm:$0xff]  ;;  %vm1099_vm1 = vsmask.f32 7440  ;;  %vm869_vm6 = vcmask 60416   ;;  %s265_s9 = scalar_lea.vmem %s4275_s5, %s4312_s22 }
   0xd   : > { %s3030_s26 = scalar_lea.vmem %s4270_s0, %s2817_s23  ;;  %vm3127_vm2 = vmor %vm1098_vm0, %vm1099_vm1  ;;  %vm478_vm4 = vsmask.f32 256  ;;  %vm870_vm7 = vsmask.f32 7938  ;;  %vm528_vm9 = vcmask 191619   ;;  %vm1065_vm14 = vcmask 126016   ;;  %s268_s12 = scalar_lea.vmem %s4276_s6, %s4312_s22 }
   0xe   : > { %v2934_v1 = vld [vmem:[%s3030_s26 + $0x8] sm:$0xff]   ;;  %v2935_v2 = vld [vmem:[%s3030_s26 + $0x10] sm:$0xff]   ;;  %v2871_v3 = vld [vmem:[%s3030_s26] sm:$0xff]   ;;  %vm529_vm10 = vsmask.f32 7950  ;;  %vm1617_vm15 = vcmask 1043456  }
   0xf   : > { %v2877_v4 = vunpack.c.h.bf16 %v2934_v1  ;;  %v2876_v6 = vunpack.c.l.bf16 %v2934_v1  ;;  %v2880_v7 = vunpack.c.l.bf16 %v2935_v2  ;;  %v2873_v8 = vunpack.c.h.bf16 %v2871_v3  ;;  %v2945_v9 = vld [vmem:[%s3030_s26 + $0x60] sm:$0xff]   ;;  %vm3364_vm5 = vmand %vm477_vm3, %vm478_vm4 }
  0x10   : > { %v2921_v10 = vunpack.c.h.bf16 %v2945_v9  ;;  %v2872_v11 = vunpack.c.l.bf16 %v2871_v3  ;;  %v2881_v12 = vunpack.c.h.bf16 %v2935_v2  ;;  %v2920_v35 = vunpack.c.l.bf16 %v2945_v9  ;;  %v2936_v3 = vld [vmem:[%s3030_s26 + $0x18] sm:$0xff]   ;;  %vm3399_vm8 = vmand %vm869_vm6, %vm870_vm7 }
  0x11   : > { %v341_v13 = vmul.f32 %v3035_v0, %v2877_v4  ;;  %v340_v14 = vmul.f32 %v3035_v0, %v2876_v6  ;;  %v342_v15 = vmul.f32 %v3035_v0, %v2880_v7  ;;  %v339_v16 = vmul.f32 %v3035_v0, %v2873_v8  ;;  %vm3408_vm11 = vmand %vm528_vm9, %vm529_vm10 }
  0x12   : > { %v338_v17 = vmul.f32 %v3035_v0, %v2872_v11  ;;  %v343_v18 = vmul.f32 %v3035_v0, %v2881_v12  ;;  %v363_v22 = vmul.f32 %v3035_v0, %v2921_v10  ;;  %v362_v43 = vmul.f32 %v3035_v0, %v2920_v35  ;;  %v2946_v11 = vld [vmem:[%s3030_s26 + $0x68] sm:$0xff]  }
  0x13   : > { %v377_v19 = vadd.f32 %v3043_v5, %v341_v13  ;;  %v376_v20 = vadd.f32 %v3043_v5, %v340_v14  ;;  %v375_v21 = vadd.f32 %v3043_v5, %v339_v16  ;;  %v378_v23 = vadd.f32 %v3043_v5, %v342_v15 }
  0x14   : > { %v374_v24 = vadd.f32 %v3043_v5, %v338_v17  ;;  %v379_v27 = vadd.f32 %v3043_v5, %v343_v18  ;;  %v399_v32 = vadd.f32 %v3043_v5, %v363_v22  ;;  %v398_v54 = vadd.f32 %v3043_v5, %v362_v43 }
  0x15   : > { %v409_v25 = vmax.f32 %v377_v19, 0.0  ;;  %v408_v26 = vmax.f32 %v376_v20, 0.0  ;;  %v407_v31 = vmax.f32 %v375_v21, 0.0  ;;  %v410_v33 = vmax.f32 %v378_v23, 0.0 }
  0x16   : > { %v406_v28 = vmax.f32 %v374_v24, 0.0  ;;  %v411_v36 = vmax.f32 %v379_v27, 0.0  ;;  %v431_v40 = vmax.f32 %v399_v32, 0.0  ;;  %v430_v6 = vmax.f32 %v398_v54, 0.0 }
  0x17   : > { %v441_v29 = vpack.c.bf16 %v409_v25, %v409_v25  ;;  %v3059_v30 = vpack.c.bf16 %v408_v26, %v408_v26  ;;  %v439_v39 = vpack.c.bf16 %v407_v31, %v407_v31  ;;  %v3069_v41 = vpack.c.bf16 %v410_v33, %v410_v33  ;;  %v495_v31 = vld [vmem:[#allocation2 + $0x30] sm:$0x1] }
  0x18   : > { %v3062_v34 = vpack.c.bf16 %v406_v28, %v406_v28  ;;  %v3074_v47 = vpack.c.bf16 %v411_v36, %v411_v36  ;;  %v463_v52 = vpack.c.bf16 %v431_v40, %v431_v40  ;;  %v2885_v14 = vunpack.c.h.bf16 %v2936_v3 }
  0x19   : > { %975 = vrot.lane.b32.xlu0 %v441_v29, %s2978_s7  ;;  %973 = vrot.lane.b32.xlu1 %v3059_v30, %s2978_s7  ;;  %v606_v37 = vshrl.u32 %v441_v29, 16  ;;  %v609_v38 = vshll.u32 %v441_v29, 16  ;;  %v590_v46 = vshrl.u32 %v439_v39, 16  ;;  %v593_v51 = vshll.u32 %v439_v39, 16 }
  0x1a   : > { %969 = vrot.lane.b32.xlu2 %v3062_v34, %s2978_s7  ;;  %v582_v49 = vshrl.u32 %v3062_v34, 16  ;;  %v585_v50 = vshll.u32 %v3062_v34, 16  ;;  %v598_v55 = vshrl.u32 %v3059_v30, 16  ;;  %v782_v58 = vshrl.u32 %v463_v52, 16 }
  0x1b   : > { %v608_v42 = vrot.slane %v606_v37, 7  ;;  %v3072_v44 = vrot.slane %v609_v38, 5  ;;  %v1116_v45 = vrot.slane %v606_v37, 4  ;;  %v592_v53 = vrot.slane %v590_v46, 7 }
  0x1c   : > { %v3088_v59 = vrot.slane %v593_v51, 5  ;;  %v1107_v60 = vrot.slane %v590_v46, 4  ;;  %v1101_v61 = vrot.slane %v582_v49, 4  ;;  %v1102_v62 = vrot.slane %v585_v50, 5 }
  0x1d   : > { %v3076_v48 = vor.u32 %v609_v38, %v608_v42  ;;  %v1117_v56 = vor.u32 %v1116_v45, %v3072_v44  ;;  %v3086_v57 = vor.u32 %v593_v51, %v592_v53  ;;  %v601_v63 = vshll.u32 %v3059_v30, 16 }
  0x1e   : > { %v784_v1 = vrot.slane %v782_v58, 7  ;;  %v785_v2 = vshll.u32 %v463_v52, 16  ;;  %v625_v4 = vshll.u32 %v3074_v47, 16  ;;  %v622_v8 = vshrl.u32 %v3074_v47, 16 }
  0x1f   : > { %v1118_v7 = vrot.slane %v1117_v56, 4  ;;  %v1110_v10 = vrot.slane %v598_v55, 4  ;;  %v1108_v12 = vor.u32 %v1107_v60, %v3088_v59  ;;  %v1103_v13 = vor.u32 %v1102_v62, %v1101_v61  ;;  %v2937_v56 = vld [vmem:[%s3030_s26 + $0x20] sm:$0xff]  }
  0x20   : > { %v3100_v9 = vor.u32 %v785_v2, %v784_v1  ;;  %v614_v15 = vshrl.u32 %v3069_v41, 16  ;;  %v1111_v16 = vrot.slane %v601_v63, 5  ;;  %v2884_v17 = vunpack.c.l.bf16 %v2936_v3 }
  0x21   : > { %977 = vrot.lane.b32.xlu1 %v3069_v41, %s2978_s7  ;;  %971 = vrot.lane.b32.xlu0 %v439_v39, %s2978_s7  ;;  %v4279_v18 = vshll.u32 %v3069_v41, 16  ;;  %v3112_v19 = vrot.slane %v625_v4, 5  ;;  %v3114_v20 = vpack.c.bf16 %v430_v6, %v430_v6  ;;  %v2924_v21 = vunpack.c.l.bf16 %v2946_v11 }
  0x22   : > { %979 = vrot.lane.b32.xlu2 %v3074_v47, %s2978_s7  ;;  %v1125_v22 = vrot.slane %v622_v8, 4  ;;  %v1112_v23 = vor.u32 %v1111_v16, %v1110_v10  ;;  %v344_v24 = vmul.f32 %v3035_v0, %v2884_v17  ;;  %v2925_v25 = vunpack.c.h.bf16 %v2946_v11 }
  0x23   : > { %v1109_v26 = vrot.slane %v1108_v12, 4  ;;  %v1104_v27 = vrot.slane %v1103_v13, 4  ;;  %v345_v28 = vmul.f32 %v3035_v0, %v2885_v14  ;;  %v364_v29 = vmul.f32 %v3035_v0, %v2924_v21 }
  0x24   : > { %v3131_v32 = vrot.slane %v785_v2, 5  ;;  %v1113_v33 = vrot.slane %v1112_v23, 4  ;;  %v380_v35 = vadd.f32 %v3043_v5, %v344_v24  ;;  %v365_v36 = vmul.f32 %v3035_v0, %v2925_v25 }
  0x25   : > { %v1215_v37 = vrot.slane %v782_v58, 4  ;;  %v400_v38 = vadd.f32 %v3043_v5, %v364_v29  ;;  %v1119_v39 = vrot.slane %v614_v15, 4  ;;  %v1120_v40 = vrot.slane %v4279_v18, 5 }
  0x26   : > { %v1126_v42 = vor.u32 %v1125_v22, %v3112_v19  ;;  %v4278_v43 = vshrl.u32 %v3114_v20, 16  ;;  %v412_v45 = vmax.f32 %v380_v35, 0.0  ;;  %v401_v46 = vadd.f32 %v3043_v5, %v365_v36 }
  0x27   : > { %v1106_v51 = vsel %vm3127_vm2, %v1104_v27, %v3088_v59  ;;  %v381_v53 = vadd.f32 %v3043_v5, %v345_v28  ;;  %v432_v54 = vmax.f32 %v400_v38, 0.0  ;;  %v1115_v58 = vsel %vm3127_vm2, %v1113_v33, %v3072_v44 }
  0x28   : > { %v3152_v60 = vpack.c.bf16 %v412_v45, %v412_v45  ;;  %v433_v61 = vmax.f32 %v401_v46, 0.0  ;;  %v1121_v62 = vor.u32 %v1120_v40, %v1119_v39  ;;  %v1216_v1 = vor.u32 %v1215_v37, %v3131_v32  ;;  %v2947_v40 = vld [vmem:[%s3030_s26 + $0x70] sm:$0xff]  }
  0x29   : > { %1251 = vrot.lane.b32.xlu1 %v1118_v7, %s2979_s8  ;;  %1019 = vrot.lane.b32.xlu0 %v463_v52, %s2978_s7  ;;  %v4277_v52 = vshll.u32 %v3114_v20, 16  ;;  %v3155_v2 = vpack.c.bf16 %v432_v54, %v432_v54  ;;  %v2889_v3 = vunpack.c.h.bf16 %v2937_v56  ;;  %v1127_v59 = vrot.slane %v1126_v42, 4 }
  0x2a   : > { %1017 = vrot.lane.b32.xlu2 %v3114_v20, %s2978_s7  ;;  %v1209_v6 = vrot.slane %v4278_v43, 4  ;;  %v630_v7 = vshrl.u32 %v3152_v60, 16  ;;  %v3162_v44 = vpack.c.bf16 %v433_v61, %v433_v61  ;;  %v413_v11 = vmax.f32 %v381_v53, 0.0 }
  0x2b   : > { %v1210_v10 = vrot.slane %v4277_v52, 5  ;;  %v790_v12 = vshrl.u32 %v3155_v2, 16  ;;  %v2888_v13 = vunpack.c.l.bf16 %v2937_v56  ;;  %v633_v16 = vshll.u32 %v3152_v60, 16 }
  0x2c   : > { %v3168_v14 = vrot.slane %v630_v7, 7  ;;  %v798_v17 = vshrl.u32 %v3162_v44, 16  ;;  %v1122_v21 = vrot.slane %v1121_v62, 4  ;;  %v793_v23 = vshll.u32 %v3155_v2, 16 }
  0x2d   : > { %v3174_v22 = vrot.slane %v790_v12, 7  ;;  %v346_v24 = vmul.f32 %v3035_v0, %v2888_v13  ;;  %v347_v25 = vmul.f32 %v3035_v0, %v2889_v3  ;;  %v801_v29 = vshll.u32 %v3162_v44, 16 }
  0x2e   : > { %v3180_v27 = vor.u32 %v633_v16, %v3168_v14  ;;  %v800_v28 = vrot.slane %v798_v17, 7  ;;  %v1211_v33 = vor.u32 %v1210_v10, %v1209_v6  ;;  %v1124_v37 = vsel %vm3127_vm2, %v1122_v21, %v3112_v19 }
  0x2f   : > { %v3184_v35 = vor.u32 %v793_v23, %v3174_v22  ;;  %v382_v38 = vadd.f32 %v3043_v5, %v346_v24  ;;  %v383_v39 = vadd.f32 %v3043_v5, %v347_v25  ;;  %v445_v42 = vpack.c.bf16 %v413_v11, %v413_v11 }
  0x30   : > { %v3186_v36 = vor.u32 %v801_v29, %v800_v28  ;;  %v2928_v45 = vunpack.c.l.bf16 %v2947_v40  ;;  %v2929_v6 = vunpack.c.h.bf16 %v2947_v40  ;;  %v1128_v11 = vrot.slane %v630_v7, 4 }
  0x31   : > { %1247 = vrot.lane.b32.xlu0 %v1109_v26, %s2979_s8  ;;  %1245 = vrot.lane.b32.xlu1 %v1106_v51, %s2979_s8  ;;  %v1217_v26 = vrot.slane %v1216_v1, 4  ;;  %v415_v46 = vmax.f32 %v383_v39, 0.0  ;;  %v1212_v51 = vrot.slane %v1211_v33, 4  ;;  %v414_v53 = vmax.f32 %v382_v38, 0.0 }
  0x32   : > { %1249 = vrot.lane.b32.xlu2 %v1115_v58, %s2979_s8  ;;  %v366_v54 = vmul.f32 %v3035_v0, %v2928_v45  ;;  %v638_v56 = vshrl.u32 %v445_v42, 16  ;;  %v641_v58 = vshll.u32 %v445_v42, 16  ;;  %v1129_v25 = vrot.slane %v633_v16, 5 }
  0x33   : > { %v3198_v19 = vpack.c.bf16 %v415_v46, %v415_v46  ;;  %v1214_v62 = vsel %vm3127_vm2, %v1212_v51, %v3131_v32  ;;  %v1222_v45 = vrot.slane %v801_v29, 5  ;;  %v1224_v46 = vrot.slane %v798_v17, 4 }
  0x34   : > { %v402_v61 = vadd.f32 %v3043_v5, %v366_v54  ;;  %v1134_v3 = vrot.slane %v638_v56, 4  ;;  %v1132_v13 = vrot.slane %v641_v58, 5  ;;  %v640_v28 = vrot.slane %v638_v56, 7 }
  0x35   : > { %v654_v10 = vshrl.u32 %v3198_v19, 16  ;;  %v367_v51 = vmul.f32 %v3035_v0, %v2929_v6  ;;  %v1130_v54 = vor.u32 %v1129_v25, %v1128_v11  ;;  %vm579_vm12 = vsmask.f32 4368 }
  0x36   : > { %v434_v1 = vmax.f32 %v402_v61, 0.0  ;;  %v1135_v33 = vor.u32 %v1134_v3, %v1132_v13  ;;  %v3225_v39 = vor.u32 %v641_v58, %v640_v28  ;;  %v1219_v61 = vrot.slane %v793_v23, 5  ;;  %vm3426_vm13 = vmor %vm478_vm4, %vm579_vm12 }
  0x37   : > { %v656_v32 = vrot.slane %v654_v10, 7  ;;  %v403_v17 = vadd.f32 %v3043_v5, %v367_v51  ;;  %v1131_v25 = vrot.slane %v1130_v54, 4  ;;  %vm470_vm1 = vcmask 191488  }
  0x38   : > { %v3207_v21 = vpack.c.bf16 %v434_v1, %v434_v1  ;;  %v1136_v58 = vrot.slane %v1135_v33, 4  ;;  %v2938_v1 = vld [vmem:[%s3030_s26 + $0x28] sm:$0xff]   ;;  %vm1568_vm4 = vcmask 195584   ;;  %vm1341_vm7 = vcmask 191616  }
  0x39   : > { %1255 = vrot.lane.b32.xlu0 %v1127_v59, %s2979_s8  ;;  %1295 = vrot.lane.b32.xlu1 %v1217_v26, %s2979_s8  ;;  %v3204_v59 = vpack.c.bf16 %v414_v53, %v414_v53  ;;  %v657_v26 = vshll.u32 %v3198_v19, 16  ;;  %v1218_v53 = vrot.slane %v790_v12, 4  ;;  %v2893_v29 = vunpack.c.h.bf16 %v2938_v1  ;;  %vm3699_vm9 = vmand %vm1341_vm7, %vm1098_vm0 }
  0x3a   : > { %1253 = vrot.lane.b32.xlu2 %v1124_v37, %s2979_s8  ;;  %v806_v7 = vshrl.u32 %v3207_v21, 16  ;;  %v1225_v12 = vor.u32 %v1224_v46, %v1222_v45  ;;  %v1133_v54 = vsel %vm3127_vm2, %v1131_v25, %v1132_v13  ;;  %v1143_v13 = vrot.slane %v654_v10, 4 }
  0x3b   : > { %v646_v24 = vshrl.u32 %v3204_v59, 16  ;;  %v649_v16 = vshll.u32 %v3204_v59, 16  ;;  %v3223_v38 = vor.u32 %v657_v26, %v656_v32  ;;  %v2892_v32 = vunpack.c.l.bf16 %v2938_v1 }
  0x3c   : > { %v3229_v40 = vrot.slane %v806_v7, 7  ;;  %v1220_v28 = vor.u32 %v1219_v61, %v1218_v53  ;;  %v349_v33 = vmul.f32 %v3035_v0, %v2893_v29  ;;  %v1226_v51 = vrot.slane %v1225_v12, 4 }
  0x3d   : > { %v3220_v37 = vrot.slane %v646_v24, 7  ;;  %v348_v23 = vmul.f32 %v3035_v0, %v2892_v32  ;;  %vm2237_vm0 = vcmask 64512  }
  0x3e   : > { %v1221_v53 = vrot.slane %v1220_v28, 4  ;;  %v385_v46 = vadd.f32 %v3043_v5, %v349_v33 }
  0x41   : > { %1293 = vrot.lane.b32.xlu0 %v1214_v62, %s2979_s8  ;;  %983 = vrot.lane.b32.xlu1 %v445_v42, %s2978_s7  ;;  %v3235_v42 = vor.u32 %v649_v16, %v3220_v37  ;;  %v2948_v62 = vld [vmem:[%s3030_s26 + $0x78] sm:$0xff]  }
  0x42   : > { %1023 = vrot.lane.b32.xlu2 %v3162_v44, %s2978_s7  ;;  %v809_v44 = vshll.u32 %v3207_v21, 16  ;;  %v2933_v3 = vunpack.c.h.bf16 %v2948_v62  ;;  %v2932_v6 = vunpack.c.l.bf16 %v2948_v62  ;;  %v435_v62 = vmax.f32 %v403_v17, 0.0 }
  0x43   : > { %v3271_v17 = vrot.slane %v657_v26, 5 }
  0x44   : > { %v3243_v56 = vor.u32 %v809_v44, %v3229_v40  ;;  %v369_v11 = vmul.f32 %v3035_v0, %v2933_v3  ;;  %v368_v61 = vmul.f32 %v3035_v0, %v2932_v6  ;;  %v1223_v3 = vsel %vm3127_vm2, %v1221_v53, %v1222_v45 }
  0x45   : > { %v467_v12 = vpack.c.bf16 %v435_v62, %v435_v62 }
  0x46   : > { %v404_v32 = vadd.f32 %v3043_v5, %v368_v61 }
  0x47   : > { %v817_v25 = vshll.u32 %v467_v12, 16  ;;  %v814_v53 = vshrl.u32 %v467_v12, 16 }
  0x49   : > { %981 = vrot.lane.b32.xlu0 %v3152_v60, %s2978_s7  ;;  %1021 = vrot.lane.b32.xlu1 %v3155_v2, %s2978_s7  ;;  %v405_v60 = vadd.f32 %v3043_v5, %v369_v11  ;;  %v384_v2 = vadd.f32 %v3043_v5, %v348_v23  ;;  %v436_v23 = vmax.f32 %v404_v32, 0.0  ;;  %v3305_v32 = vrot.slane %v817_v25, 5 }
  0x4a   : > { %1259 = vrot.lane.b32.xlu2 %v1136_v58, %s2979_s8  ;;  %v417_v58 = vmax.f32 %v385_v46, 0.0 }
  0x4b   : > { %v416_v1 = vmax.f32 %v384_v2, 0.0  ;;  %v437_v28 = vmax.f32 %v405_v60, 0.0 }
  0x4c   : > { %v3267_v6 = vpack.c.bf16 %v417_v58, %v417_v58  ;;  %v1137_v58 = vrot.slane %v646_v24, 4  ;;  %v1227_v24 = vrot.slane %v806_v7, 4  ;;  %v3332_v7 = vrot.slane %v598_v55, 7 }
  0x4d   : > { %v3265_v29 = vpack.c.bf16 %v416_v1, %v416_v1  ;;  %v3278_v33 = vpack.c.bf16 %v437_v28, %v437_v28  ;;  %v1144_v1 = vor.u32 %v1143_v13, %v3271_v17  ;;  %v816_v13 = vrot.slane %v814_v53, 7 }
  0x4e   : > { %v670_v11 = vshrl.u32 %v3267_v6, 16  ;;  %v673_v60 = vshll.u32 %v3267_v6, 16 }
  0x4f   : > { %v4281_v45 = vshrl.u32 %v3265_v29, 16  ;;  %v4280_v26 = vshll.u32 %v3265_v29, 16  ;;  %v830_v62 = vshrl.u32 %v3278_v33, 16  ;;  %v3323_v52 = vor.u32 %v817_v25, %v816_v13 }
  0x50   : > { %v672_v10 = vrot.slane %v670_v11, 7 }
  0x51   : > { %1299 = vrot.lane.b32.xlu0 %v1226_v51, %s2979_s8  ;;  %1257 = vrot.lane.b32.xlu1 %v1133_v54, %s2979_s8  ;;  %v3282_v61 = vrot.slane %v4281_v45, 7  ;;  %v1233_v51 = vrot.slane %v814_v53, 4  ;;  %v3298_v54 = vpack.c.bf16 %v436_v23, %v436_v23  ;;  %v832_v28 = vrot.slane %v830_v62, 7 }
  0x52   : > { %1297 = vrot.lane.b32.xlu2 %v1223_v3, %s2979_s8  ;;  %v3295_v46 = vor.u32 %v673_v60, %v672_v10  ;;  %v1138_v3 = vrot.slane %v649_v16, 5  ;;  %v833_v23 = vshll.u32 %v3278_v33, 16  ;;  %v1228_v16 = vrot.slane %v809_v44, 5 }
  0x53   : > { %v3291_v2 = vor.u32 %v4280_v26, %v3282_v61  ;;  %v4282_v10 = vshrl.u32 %v3298_v54, 16  ;;  %v825_v43 = vshll.u32 %v3298_v54, 16  ;;  %v1145_v44 = vrot.slane %v1144_v1, 4  ;;  %v2944_v26 = vld [vmem:[%s3030_s26 + $0x58] sm:$0xff]  }
  0x54   : > { %v1139_v18 = vor.u32 %v1138_v3, %v1137_v58  ;;  %v1229_v25 = vor.u32 %v1228_v16, %v1227_v24  ;;  %v3346_v45 = vrot.slane %v614_v15, 7  ;;  %v2916_v55 = vunpack.c.l.bf16 %v2944_v26 }
  0x55   : > { %v3327_v53 = vrot.slane %v4282_v10, 7  ;;  %v2917_v10 = vunpack.c.h.bf16 %v2944_v26  ;;  %v3350_v1 = vrot.slane %v582_v49, 7  ;;  %v3355_v58 = vor.u32 %v601_v63, %v3332_v7  ;;  %v480_v26 = vld [vmem:[#allocation2 + $0x8] sm:$0x1] }
  0x56   : > { %v624_v3 = vrot.slane %v622_v8, 7  ;;  %v1140_v15 = vrot.slane %v1139_v18, 4  ;;  %v1230_v63 = vrot.slane %v1229_v25, 4  ;;  %v481_v8 = vsel %vm3364_vm5, 0, %v480_v26  ;;  %v483_v18 = vld [vmem:[#allocation2 + $0x10] sm:$0x1] }
  0x57   : > { %v361_v24 = vmul.f32 %v3035_v0, %v2917_v10  ;;  %v604_v16 = vrot.slane %v3332_v7, 4  ;;  %482 = vst [vmem:[#allocation2 + $0x8] sm:$0x1] %v481_v8  ;;  %v484_v25 = vsel %vm3364_vm5, 0, %v483_v18  ;;  %v587_v10 = vor.u32 %v585_v50, %v3350_v1 }
  0x58   : > { %485 = vst [vmem:[#allocation2 + $0x10] sm:$0x1] %v484_v25  ;;  %v627_v7 = vor.u32 %v625_v4, %v624_v3  ;;  %v3392_v8 = vrot.slane %v833_v23, 5  ;;  %v3396_v34 = vrot.slane %v830_v62, 4  ;;  %v3418_v3 = vrot.slane %v673_v60, 5 }
  0x59   : > { %987 = vrot.lane.b32.xlu0 %v3198_v19, %s2978_s7  ;;  %1027 = vrot.lane.b32.xlu1 %v467_v12, %s2978_s7  ;;  %v1234_v19 = vor.u32 %v1233_v51, %v3305_v32  ;;  %v3321_v12 = vor.u32 %v833_v23, %v832_v28  ;;  %v3340_v51 = vld [vmem:[%s3030_s26 + $0x30] sm:$0xff]  }
  0x5a   : > { %985 = vrot.lane.b32.xlu2 %v3204_v59, %s2978_s7  ;;  %v3337_v59 = vor.u32 %v825_v43, %v3327_v53  ;;  %v2896_v13 = vunpack.c.l.bf16 %v3340_v51  ;;  %v2897_v4 = vunpack.c.h.bf16 %v3340_v51  ;;  %v534_v23 = vld [vmem:[#allocation2 + $0x14] sm:$0x8]  ;;  %v1152_v51 = vrot.slane %v670_v11, 4 }
  0x5b   : > { %v1235_v28 = vrot.slane %v1234_v19, 4  ;;  %v620_v19 = vrot.slane %v3346_v45, 4  ;;  %v612_v11 = vsel %vm3426_vm13, %v604_v16, %v3076_v48 }
  0x5c   : > { %v350_v30 = vmul.f32 %v3035_v0, %v2896_v13  ;;  %v397_v13 = vadd.f32 %v3043_v5, %v361_v24 }
  0x5e   : > { %v429_v24 = vmax.f32 %v397_v13, 0.0 }
  0x60   : > { %v3412_v62 = vpack.c.bf16 %v429_v24, %v429_v24  ;;  %v537_v24 = vld [vmem:[#allocation2 + $0x1c] sm:$0x8] }
  0x61   : > { %1025 = vrot.lane.b32.xlu0 %v3207_v21, %s2978_s7  ;;  %1263 = vrot.lane.b32.xlu1 %v1145_v44, %s2979_s8  ;;  %v360_v21 = vmul.f32 %v3035_v0, %v2916_v55  ;;  %v386_v44 = vadd.f32 %v3043_v5, %v350_v30  ;;  %v1142_v55 = vsel %vm3127_vm2, %v1140_v15, %v3271_v17 }
  0x62   : > { %1303 = vrot.lane.b32.xlu2 %v1235_v28, %s2979_s8  ;;  %v1232_v30 = vsel %vm3127_vm2, %v1230_v63, %v3305_v32  ;;  %v535_v63 = vsel %vm3408_vm11, 0, %v534_v23 }
  0x63   : > { %v396_v28 = vadd.f32 %v3043_v5, %v360_v21  ;;  %v418_v26 = vmax.f32 %v386_v44, 0.0  ;;  %v872_v44 = vld [vmem:[#allocation2 + $0x8] sm:$0xf]  ;;  %536 = vst [vmem:[#allocation2 + $0x14] sm:$0x8] %v535_v63  ;;  %v4286_v63 = vshll.u32 %v3412_v62, 16 }
  0x64   : > { %880 = vst.msk [vmem:[#allocation2 + $0x14] sm:$0xf] %vm869_vm6, %v612_v11  ;;  %v538_v11 = vsel %vm3408_vm11, 0, %v537_v24 }
  0x65   : > { %v428_v21 = vmax.f32 %v396_v28, 0.0  ;;  %v3403_v50 = vpack.c.bf16 %v418_v26, %v418_v26  ;;  %v873_v28 = vsel %vm3399_vm8, %v587_v10, %v872_v44  ;;  %v351_v26 = vmul.f32 %v3035_v0, %v2897_v4  ;;  %v486_v10 = vld [vmem:[#allocation2 + $0x18] sm:$0x1]  ;;  %539 = vst [vmem:[#allocation2 + $0x1c] sm:$0x8] %v538_v11 }
  0x66   : > { %874 = vst [vmem:[#allocation2 + $0x8] sm:$0xf] %v873_v28  ;;  %v628_v4 = vsel %vm3426_vm13, %v620_v19, %v627_v7  ;;  %v588_v44 = vrot.slane %v3350_v1, 4  ;;  %v1153_v28 = vor.u32 %v1152_v51, %v3418_v3  ;;  %v1243_v19 = vor.u32 %v3396_v34, %v3392_v8 }
  0x67   : > { %v3406_v17 = vpack.c.bf16 %v428_v21, %v428_v21  ;;  %v678_v15 = vshrl.u32 %v3403_v50, 16  ;;  %v681_v60 = vshll.u32 %v3403_v50, 16  ;;  %v4298_v7 = vshrl.u32 %v3298_v54, 16  ;;  %884 = vst.msk [vmem:[#allocation2 + $0x1c] sm:$0xf] %vm869_vm6, %v628_v4 }
  0x68   : > { %v4299_v51 = vshrl.u32 %v3265_v29, 16  ;;  %v4300_v34 = vshll.u32 %v3265_v29, 16  ;;  %v487_v11 = vsel %vm3364_vm5, 0, %v486_v10  ;;  %v531_v4 = vld [vmem:[#allocation2 + $0xc] sm:$0x8] }
  0x69   : > { %1261 = vrot.lane.b32.xlu0 %v1142_v55, %s2979_s8  ;;  %1301 = vrot.lane.b32.xlu1 %v1232_v30, %s2979_s8  ;;  %v4284_v25 = vshrl.u32 %v3406_v17, 16  ;;  %v3441_v13 = vrot.slane %v678_v15, 7  ;;  %v4285_v55 = vshrl.u32 %v3412_v62, 16  ;;  %v4283_v48 = vshll.u32 %v3406_v17, 16  ;;  %488 = vst [vmem:[#allocation2 + $0x18] sm:$0x1] %v487_v11 }
  0x6a   : > { %991 = vrot.lane.b32.xlu2 %v3267_v6, %s2978_s7  ;;  %v877_v6 = vld [vmem:[#allocation2 + $0x10] sm:$0xf]  ;;  %v1146_v24 = vrot.slane %v4299_v51, 4  ;;  %v1244_v11 = vrot.slane %v1243_v19, 4 }
  0x6b   : > { %v3448_v30 = vrot.slane %v4284_v25, 7  ;;  %v878_v16 = vsel %vm3399_vm8, %v3355_v58, %v877_v6  ;;  %v3457_v21 = vor.u32 %v681_v60, %v3441_v13  ;;  %v768_v23 = vrot.slane %v4285_v55, 7 }
  0x6c   : > { %879 = vst [vmem:[#allocation2 + $0x10] sm:$0xf] %v878_v16  ;;  %v1236_v6 = vrot.slane %v4298_v7, 4  ;;  %v3482_v16 = vld [vmem:[%s3030_s26 + $0x38] sm:$0xff]   ;;  %v1147_v25 = vrot.slane %v4300_v34, 5 }
  0x6d   : > { %v3468_v58 = vor.u32 %v4283_v48, %v3448_v30  ;;  %v3479_v1 = vor.u32 %v4286_v63, %v768_v23  ;;  %v1237_v48 = vrot.slane %v825_v43, 5  ;;  %v4301_v23 = vshll.u32 %v3069_v41, 16 }
  0x6e   : > { %v387_v43 = vadd.f32 %v3043_v5, %v351_v26  ;;  %v2900_v51 = vunpack.c.l.bf16 %v3482_v16  ;;  %v1148_v10 = vor.u32 %v1147_v25, %v1146_v24  ;;  %v532_v41 = vsel %vm3408_vm11, 0, %v531_v4 }
  0x6f   : > { %v619_v7 = vor.u32 %v4301_v23, %v3346_v45  ;;  %v596_v45 = vsel %vm3426_vm13, %v588_v44, %v3086_v57  ;;  %v4302_v26 = vshrl.u32 %v3114_v20, 16  ;;  %533 = vst [vmem:[#allocation2 + $0xc] sm:$0x8] %v532_v41  ;;  %v1154_v24 = vrot.slane %v1153_v28, 4 }
  0x70   : > { %v1238_v23 = vor.u32 %v1237_v48, %v1236_v6  ;;  %v1149_v55 = vrot.slane %v1148_v10, 4  ;;  %876 = vst.msk [vmem:[#allocation2 + $0xc] sm:$0xf] %vm869_vm6, %v596_v45  ;;  %v352_v57 = vmul.f32 %v3035_v0, %v2900_v51  ;;  %v419_v44 = vmax.f32 %v387_v43, 0.0  ;;  %v881_v43 = vld [vmem:[#allocation2 + $0x18] sm:$0xf] }
  0x71   : > { %1031 = vrot.lane.b32.xlu0 %v3278_v33, %s2978_s7  ;;  %989 = vrot.lane.b32.xlu1 %v3265_v29, %s2978_s7  ;;  %v516_v33 = vld [vmem:[#allocation2 + $0x68] sm:$0x1]  ;;  %v776_v34 = vrot.slane %v4302_v26, 7  ;;  %v2980_v6 = vmov 0   ;;  %v3542_v26 = vld [vmem:[%s4273_s3] sm:$0xff] }
  0x72   : > { %1029 = vrot.lane.b32.xlu2 %v3298_v54, %s2978_s7  ;;  %v1442_v29 = vld [vmem:[%s4273_s3 + $0x8] sm:$0xf]  ;;  %v517_v54 = vsel %vm3364_vm5, 0, %v516_v33  ;;  %v388_v19 = vadd.f32 %v3043_v5, %v352_v57  ;;  %v1151_v48 = vsel %vm3127_vm2, %v1149_v55, %v3418_v3  ;;  %471 = vst.msk [vmem:[#allocation2] sm:$0xf] %vm470_vm1, %v2980_v6  ;;  %v1239_v10 = vrot.slane %v1238_v23, 4 }
  0x73   : > { %v1795_v25 = vunpack.c.l.b16 %v1442_v29  ;;  %518 = vst [vmem:[#allocation2 + $0x68] sm:$0x1] %v517_v54  ;;  %v780_v41 = vrot.slane %v776_v34, 4  ;;  %v451_v45 = vpack.c.bf16 %v419_v44, %v419_v44  ;;  %v882_v3 = vsel %vm3399_vm8, %v619_v7, %v881_v43  ;;  %v567_v55 = vld [vmem:[#allocation2 + $0x6c] sm:$0x8] }
  0x74   : > { %v970_v4 = vpop.permute.xlu2 %969  ;;  %472 = vst.msk [vmem:[#allocation2 + $0x4] sm:$0xf] %vm470_vm1, %v2980_v6  ;;  %v420_v51 = vmax.f32 %v388_v19, 0.0  ;;  %v568_v29 = vsel %vm3408_vm11, 0, %v567_v55  ;;  %v2730_v7 = vld [vmem:[%s4273_s3 + $0x20] sm:$0xf]  ;;  %v2901_v57 = vunpack.c.h.bf16 %v3482_v16 }
  0x75   : > { %1066 = vst.msk [vmem:[#allocation2 + $0x8] sm:$0xf] %vm1065_vm14, %v970_v4  ;;  %v1797_v63 = vpack.c.b16 %v1795_v25, %v1795_v25  ;;  %v686_v54 = vshrl.u32 %v451_v45, 16  ;;  %v2941_v55 = vld [vmem:[%s3030_s26 + $0x40] sm:$0xff]  }
  0x76   : > { %474 = vst.msk [vmem:[#allocation2 + $0x88] sm:$0xf] %vm470_vm1, %v2980_v6 }
  0x77   : > { %v3524_v28 = vsel %vm1617_vm15, %v1797_v63, 0  ;;  %v4303_v63 = vshll.u32 %v3114_v20, 16  ;;  %883 = vst [vmem:[#allocation2 + $0x18] sm:$0xf] %v882_v3  ;;  %v788_v20 = vsel %vm3426_vm13, %v780_v41, %v3100_v9  ;;  %v1241_v9 = vsel %vm3127_vm2, %v1239_v10, %v3392_v8 }
  0x78   : > { %1856 = vmatpush.bf16.msra.mxu1 %v3524_v28  ;;  %569 = vst [vmem:[#allocation2 + $0x6c] sm:$0x8] %v568_v29  ;;  %v1155_v8 = vrot.slane %v678_v15, 4  ;;  %v1156_v10 = vrot.slane %v681_v60, 5  ;;  %v688_v15 = vrot.slane %v686_v54, 7  ;;  %v2905_v29 = vunpack.c.h.bf16 %v2941_v55 }
  0x79   : > { %1267 = vrot.lane.b32.xlu0 %v1154_v24, %s2979_s8  ;;  %1307 = vrot.lane.b32.xlu1 %v1244_v11, %s2979_s8  ;;  %v779_v33 = vor.u32 %v4303_v63, %v776_v34  ;;  %v3547_v11 = vpack.c.bf16 %v420_v51, %v420_v51  ;;  %v2061_v34 = vunpack.c.l.b16 %v2730_v7  ;;  %v689_v24 = vshll.u32 %v451_v45, 16  ;;  %924 = vst.msk [vmem:[#allocation2 + $0x6c] sm:$0xf] %vm869_vm6, %v788_v20  ;;  %v3594_v7 = vld [vmem:[%s4273_s3 + $0x18] sm:$0xff] }
  0x7a   : > { %1265 = vrot.lane.b32.xlu2 %v1151_v48, %s2979_s8  ;;  %v921_v4 = vld [vmem:[#allocation2 + $0x68] sm:$0xf]  ;;  %475 = vst.msk [vmem:[#allocation2 + $0x8c] sm:$0xf] %vm470_vm1, %v2980_v6  ;;  %v1161_v51 = vrot.slane %v686_v54, 4  ;;  %v353_v63 = vmul.f32 %v3035_v0, %v2901_v57  ;;  %v4304_v20 = vshll.u32 %v3412_v62, 16 }
  0x7b   : > { %v694_v23 = vshrl.u32 %v3547_v11, 16  ;;  %v2063_v44 = vpack.c.b16 %v2061_v34, %v2061_v34  ;;  %v922_v19 = vsel %vm3399_vm8, %v779_v33, %v921_v4  ;;  %v4287_v48 = vshll.u32 %v3547_v11, 16  ;;  %v2819_v43 = vld [vmem:[#allocation2] sm:$0xff] }
  0x7c   : > { %v980_v25 = vpop.permute.xlu2 %979  ;;  %1857 = vmatpush.bf16.msra.mxu1 %v3542_v26  ;;  %923 = vst [vmem:[#allocation2 + $0x68] sm:$0xf] %v922_v19  ;;  %v3575_v6 = vrot.slane %v689_v24, 5  ;;  %v2904_v33 = vunpack.c.l.bf16 %v2941_v55  ;;  %v3601_v34 = vrot.slane %v4304_v20, 5  ;;  %v3603_v54 = vor.u32 %v689_v24, %v688_v15 }
  0x7d   : > { %1071 = vst.msk [vmem:[#allocation2 + $0x1c] sm:$0xf] %vm1065_vm14, %v980_v25  ;;  %v3565_v41 = vrot.slane %v694_v23, 7  ;;  %v3569_v16 = vsel %vm1617_vm15, %v2063_v44, 0  ;;  %v4305_v57 = vshrl.u32 %v3412_v62, 16  ;;  %v355_v19 = vmul.f32 %v3035_v0, %v2905_v29 }
  0x7e   : > { %2122 = vmatpush.bf16.msra.mxu2 %v3569_v16  ;;  %v1162_v60 = vor.u32 %v1161_v51, %v3575_v6  ;;  %v354_v4 = vmul.f32 %v3035_v0, %v2904_v33  ;;  %v4307_v55 = vshll.u32 %v3406_v17, 16  ;;  %v389_v24 = vadd.f32 %v3043_v5, %v353_v63 }
  0x7f   : > { %v3581_v3 = vor.u32 %v4287_v48, %v3565_v41  ;;  %2712 = vmatmul.msk.bf16.vlgmr.msra.gmra.mxu1 %vm1568_vm4, %v2819_v43  ;;  %v1206_v44 = vrot.slane %v4305_v57, 4  ;;  %v4306_v43 = vshrl.u32 %v3406_v17, 16  ;;  %v1157_v48 = vor.u32 %v1156_v10, %v1155_v8 }
  0x80   : > { %v1201_v20 = vrot.slane %v4307_v55, 5  ;;  %v1163_v33 = vrot.slane %v1162_v60, 4  ;;  %v421_v63 = vmax.f32 %v389_v24, 0.0 }
  0x81   : > { %1305 = vrot.lane.b32.xlu0 %v1241_v9, %s2979_s8  ;;  %995 = vrot.lane.b32.xlu1 %v451_v45, %s2978_s7  ;;  %v2559_v45 = vld [vmem:[%s4273_s3 + $0x14] sm:$0xf]  ;;  %v1200_v51 = vrot.slane %v4306_v43, 4  ;;  %v1207_v8 = vor.u32 %v1206_v44, %v3601_v34  ;;  %v1158_v10 = vrot.slane %v1157_v48, 4 }
  0x82   : > { %1015 = vrot.lane.b32.xlu2 %v3412_v62, %s2978_s7  ;;  %v1564_v25 = vunpack.c.l.b16 %v2559_v45  ;;  %2123 = vmatpush.bf16.msra.mxu2 %v3594_v7  ;;  %v390_v62 = vadd.f32 %v3043_v5, %v354_v4  ;;  %v391_v45 = vadd.f32 %v3043_v5, %v355_v19  ;;  %v453_v55 = vpack.c.bf16 %v421_v63, %v421_v63  ;;  %v540_v63 = vld [vmem:[#allocation2 + $0x24] sm:$0x8] }
  0x83   : > { %v1202_v29 = vor.u32 %v1201_v20, %v1200_v51  ;;  %v1208_v19 = vrot.slane %v1207_v8, 4  ;;  %v1160_v51 = vsel %vm3127_vm2, %v1158_v10, %v3575_v6  ;;  %v4308_v6 = vshll.u32 %v3547_v11, 16 }
  0x84   : > { %v1018_v9 = vpop.permute.xlu2 %1017  ;;  %v1566_v15 = vpack.c.b16 %v1564_v25, %v1564_v25  ;;  %v422_v0 = vmax.f32 %v390_v62, 0.0  ;;  %v423_v43 = vmax.f32 %v391_v45, 0.0  ;;  %v2852_v25 = vld [vmem:[%s4273_s3 + $0xc] sm:$0xff]  ;;  %v1164_v45 = vrot.slane %v694_v23, 4 }
  0x85   : > { %1090 = vst.msk [vmem:[#allocation2 + $0x68] sm:$0xf] %vm1065_vm14, %v1018_v9 }
  0x86   : > { %v1619_v57 = vsel %vm1617_vm15, %v1566_v15, 0  ;;  %v3624_v60 = vpack.c.bf16 %v422_v0, %v422_v0  ;;  %v3627_v5 = vpack.c.bf16 %v423_v43, %v423_v43  ;;  %v2942_v0 = vld [vmem:[%s3030_s26 + $0x48] sm:$0xff]   ;;  %v796_v43 = vrot.slane %v3174_v22, 4 }
  0x87   : > { %1627 = vmatpush.bf16.msra.mxu0 %v1619_v57  ;;  %2949 = vmatpush.bf16.msra.mxu3 %v1619_v57  ;;  %v1165_v57 = vrot.slane %v4308_v6, 5  ;;  %v2909_v23 = vunpack.c.h.bf16 %v2942_v0 }
  0x88   : > { %v718_v48 = vshrl.u32 %v3627_v5, 16  ;;  %v710_v44 = vshrl.u32 %v3624_v60, 16  ;;  %v721_v24 = vshll.u32 %v3627_v5, 16  ;;  %v713_v62 = vshll.u32 %v3624_v60, 16 }
  0x89   : > { %993 = vrot.lane.b32.xlu0 %v3403_v50, %s2978_s7  ;;  %1013 = vrot.lane.b32.xlu1 %v3406_v17, %s2978_s7  ;;  %v1203_v50 = vrot.slane %v1202_v29, 4  ;;  %v636_v29 = vrot.slane %v3168_v14, 4 }
  0x8a   : > { %1271 = vrot.lane.b32.xlu2 %v1163_v33, %s2979_s8  ;;  %v720_v20 = vrot.slane %v718_v48, 7  ;;  %v3644_v15 = vrot.slane %v710_v44, 7  ;;  %v705_v33 = vshll.u32 %v453_v55, 16 }
  0x8b   : > { %v976_v4 = vpop.permute.xlu0 %975  ;;  %v974_v9 = vpop.permute.xlu1 %973  ;;  %1628 = vmatpush.bf16.msra.mxu0 %v2852_v25  ;;  %2950 = vmatpush.bf16.msra.mxu3 %v2852_v25  ;;  %v702_v25 = vshrl.u32 %v453_v55, 16 }
  0x8c   : > { %1069 = vst.msk [vmem:[#allocation2 + $0x14] sm:$0xf] %vm1065_vm14, %v976_v4  ;;  %v1250_v17 = vpop.permute.xlu2 %1249  ;;  %v3657_v8 = vor.u32 %v721_v24, %v720_v20  ;;  %v3660_v10 = vor.u32 %v713_v62, %v3644_v15  ;;  %v1166_v4 = vor.u32 %v1165_v57, %v1164_v45  ;;  %v1168_v22 = vrot.slane %v705_v33, 5  ;;  %v489_v20 = vld [vmem:[#allocation2 + $0x20] sm:$0x1] }
  0x8d   : > { %1068 = vst.msk [vmem:[#allocation2 + $0x10] sm:$0xf] %vm1065_vm14, %v974_v9  ;;  %v541_v9 = vsel %vm3408_vm11, 0, %v540_v63  ;;  %v3678_v45 = vld [vmem:[%s4271_s1] ss:$0 sm:$0xff]  ;;  %v704_v57 = vrot.slane %v702_v25, 7 }
  0x8e   : > { %1348 = vst.msk [vmem:[#allocation2 + $0x10] sm:$0xf] %vm1341_vm7, %v1250_v17  ;;  %v357_v6 = vmul.f32 %v3678_v45, %v2909_v23  ;;  %v490_v23 = vsel %vm3364_vm5, 0, %v489_v20 }
  0x8f   : > { %2951 = vmatpush.bf16.msrb.mxu3 %v3524_v28  ;;  %v1205_v28 = vsel %vm3127_vm2, %v1203_v50, %v3601_v34  ;;  %v570_v50 = vld [vmem:[#allocation2 + $0x74] sm:$0x8]  ;;  %542 = vst [vmem:[#allocation2 + $0x24] sm:$0x8] %v541_v9  ;;  %v3694_v63 = vor.u32 %v705_v33, %v704_v57  ;;  %v1174_v9 = vrot.slane %v713_v62, 5  ;;  %v3705_v33 = vrot.slane %v721_v24, 5 }
  0x90   : > { %491 = vst [vmem:[#allocation2 + $0x20] sm:$0x1] %v490_v23 }
  0x91   : > { %1291 = vrot.lane.b32.xlu0 %v1208_v19, %s2979_s8  ;;  %1269 = vrot.lane.b32.xlu1 %v1160_v51, %s2979_s8  ;;  %v644_v19 = vsel %vm3426_vm13, %v636_v29, %v3225_v39  ;;  %v804_v51 = vsel %vm3426_vm13, %v796_v43, %v3186_v36  ;;  %v571_v39 = vsel %vm3408_vm11, 0, %v570_v50  ;;  %v3688_v36 = vld [vmem:[%s4272_s2] ss:$0 sm:$0xff]  ;;  %v1167_v43 = vrot.slane %v1166_v4, 4 }
  0x92   : > { %1289 = vrot.lane.b32.xlu2 %v1205_v28, %s2979_s8  ;;  %v393_v29 = vadd.f32 %v3688_v36, %v357_v6  ;;  %888 = vst.msk [vmem:[#allocation2 + $0x24] sm:$0xf] %vm869_vm6, %v644_v19  ;;  %v1173_v4 = vrot.slane %v710_v44, 4 }
  0x93   : > { %2952 = vmatpush.bf16.msrb.mxu3 %v3542_v26  ;;  %v978_v34 = vpop.permute.xlu1 %977  ;;  %v972_v14 = vpop.permute.xlu0 %971  ;;  %v1170_v26 = vrot.slane %v702_v25, 4  ;;  %572 = vst [vmem:[#allocation2 + $0x74] sm:$0x8] %v571_v39  ;;  %v1349_v20 = vld [vmem:[#allocation2 + $0x14] sm:$0xf]  ;;  %v1169_v6 = vsel %vm3127_vm2, %v1167_v43, %v1168_v22 }
  0x94   : > { %1070 = vst.msk [vmem:[#allocation2 + $0x18] sm:$0xf] %vm1065_vm14, %v978_v34  ;;  %v1254_v17 = vpop.permute.xlu2 %1253  ;;  %v425_v25 = vmax.f32 %v393_v29, 0.0  ;;  %v1175_v39 = vor.u32 %v1174_v9, %v1173_v4 }
  0x95   : > { %1067 = vst.msk [vmem:[#allocation2 + $0xc] sm:$0xf] %vm1065_vm14, %v972_v14  ;;  %v1171_v28 = vor.u32 %v1170_v26, %v1168_v22  ;;  %v2908_v14 = vunpack.c.l.bf16 %v2942_v0  ;;  %v1179_v0 = vrot.slane %v718_v48, 4 }
  0x96   : > { %1352 = vst.msk [vmem:[#allocation2 + $0x18] sm:$0xf] %vm1341_vm7, %v1254_v17  ;;  %v519_v17 = vld [vmem:[#allocation2 + $0x70] sm:$0x1]  ;;  %v3712_v19 = vpack.c.bf16 %v425_v25, %v425_v25  ;;  %v1176_v4 = vrot.slane %v1175_v39, 4 }
  0x97   : > { %v1172_v34 = vrot.slane %v1171_v28, 4  ;;  %928 = vst.msk [vmem:[#allocation2 + $0x74] sm:$0xf] %vm869_vm6, %v804_v51  ;;  %v520_v48 = vsel %vm3364_vm5, 0, %v519_v17  ;;  %v1180_v57 = vor.u32 %v1179_v0, %v3705_v33  ;;  %v652_v17 = vrot.slane %v3220_v37, 4 }
  0x98   : > { %v734_v51 = vshrl.u32 %v3712_v19, 16  ;;  %v737_v23 = vshll.u32 %v3712_v19, 16  ;;  %521 = vst [vmem:[#allocation2 + $0x70] sm:$0x1] %v520_v48  ;;  %v885_v9 = vld [vmem:[#allocation2 + $0x20] sm:$0xf] }
  0x99   : > { %999 = vrot.lane.b32.xlu0 %v453_v55, %s2978_s7  ;;  %997 = vrot.lane.b32.xlu1 %v3547_v11, %s2978_s7  ;;  %v356_v55 = vmul.f32 %v3678_v45, %v2908_v14  ;;  %v1181_v43 = vrot.slane %v1180_v57, 4  ;;  %v886_v37 = vsel %vm3399_vm8, %v3180_v27, %v885_v9  ;;  %v543_v39 = vld [vmem:[#allocation2 + $0x2c] sm:$0x8]  ;;  %v492_v57 = vld [vmem:[#allocation2 + $0x28] sm:$0x1]  ;;  %v812_v9 = vrot.slane %v3229_v40, 4 }
  0x9a   : > { %1275 = vrot.lane.b32.xlu2 %v1172_v34, %s2979_s8  ;;  %v736_v29 = vrot.slane %v734_v51, 7  ;;  %v2943_v34 = vld [vmem:[%s3030_s26 + $0x50] sm:$0xff]   ;;  %887 = vst [vmem:[#allocation2 + $0x20] sm:$0xf] %v886_v37  ;;  %v522_v40 = vld [vmem:[#allocation2 + $0x78] sm:$0x1] }
  0x9b   : > { %v1252_v26 = vpop.permute.xlu1 %1251  ;;  %v1020_v11 = vpop.permute.xlu0 %1019  ;;  %v392_v62 = vadd.f32 %v3688_v36, %v356_v55  ;;  %v2912_v22 = vunpack.c.l.bf16 %v2943_v34  ;;  %v2913_v27 = vunpack.c.h.bf16 %v2943_v34  ;;  %s2818_s26 = sshll.u32 %s4312_s22, 8 }
  0x9c   : > { %v1350_v44 = vsel %vm3699_vm9, %v1252_v26, %v1349_v20  ;;  %1091 = vst.msk [vmem:[#allocation2 + $0x6c] sm:$0xf] %vm1065_vm14, %v1020_v11  ;;  %v1024_v24 = vpop.permute.xlu2 %1023  ;;  %v3729_v25 = vor.u32 %v737_v23, %v736_v29  ;;  %v1345_v26 = vld [vmem:[#allocation2 + $0xc] sm:$0xf]  ;;  %v3741_v11 = vrot.slane %v737_v23, 5  ;;  %v1178_v29 = vsel %vm3127_vm2, %v1176_v4, %v3705_v33  ;;  %s4026_s30 = scalar_lea.vmem %s4274_s4, %s2818_s26 }
  0x9d   : > { %1351 = vst [vmem:[#allocation2 + $0x14] sm:$0xf] %v1350_v44  ;;  %v424_v28 = vmax.f32 %v392_v62, 0.0  ;;  %v1188_v44 = vrot.slane %v734_v51, 4  ;;  %v660_v51 = vsel %vm3426_vm13, %v652_v17, %v3223_v38  ;;  %v544_v17 = vsel %vm3408_vm11, 0, %v543_v39 }
  0x9e   : > { %1093 = vst.msk [vmem:[#allocation2 + $0x74] sm:$0xf] %vm1065_vm14, %v1024_v24  ;;  %v359_v33 = vmul.f32 %v3678_v45, %v2913_v27  ;;  %v493_v4 = vsel %vm3364_vm5, 0, %v492_v57 }
  0x9f   : > { %v3727_v14 = vpack.c.bf16 %v424_v28, %v424_v28  ;;  %v925_v23 = vld [vmem:[#allocation2 + $0x70] sm:$0xf]  ;;  %545 = vst [vmem:[#allocation2 + $0x2c] sm:$0x8] %v544_v17 }
  0xa0   : > { %v926_v38 = vsel %vm3399_vm8, %v3184_v35, %v925_v23  ;;  %892 = vst.msk [vmem:[#allocation2 + $0x2c] sm:$0xf] %vm869_vm6, %v660_v51  ;;  %v820_v51 = vsel %vm3426_vm13, %v812_v9, %v3323_v52 }
  0xa1   : > { %1273 = vrot.lane.b32.xlu0 %v1169_v6, %s2979_s8  ;;  %1003 = vrot.lane.b32.xlu1 %v3627_v5, %s2978_s7  ;;  %v726_v0 = vshrl.u32 %v3727_v14, 16  ;;  %v358_v5 = vmul.f32 %v3678_v45, %v2912_v22  ;;  %v729_v6 = vshll.u32 %v3727_v14, 16  ;;  %927 = vst [vmem:[#allocation2 + $0x70] sm:$0xf] %v926_v38 }
  0xa2   : > { %1001 = vrot.lane.b32.xlu2 %v3624_v60, %s2978_s7  ;;  %494 = vst [vmem:[#allocation2 + $0x28] sm:$0x1] %v493_v4 }
  0xa3   : > { %v1248_v55 = vpop.permute.xlu0 %1247  ;;  %v1246_v20 = vpop.permute.xlu1 %1245  ;;  %v3751_v60 = vrot.slane %v726_v0, 7  ;;  %v394_v28 = vadd.f32 %v3688_v36, %v358_v5  ;;  %v1393_v37 = vld [vmem:[#allocation2 + $0x6c] sm:$0xf] }
  0xa4   : > { %v1346_v24 = vsel %vm3699_vm9, %v1248_v55, %v1345_v26  ;;  %1342 = vst.msk [vmem:[#allocation2 + $0x8] sm:$0xf] %vm1341_vm7, %v1246_v20  ;;  %v2853_v48 = vld [vmem:[#allocation2 + $0x10] sm:$0xff]  ;;  %v3747_v62 = vpop.permute.xlu2 %1259  ;;  %v1353_v55 = vld [vmem:[#allocation2 + $0x1c] sm:$0xf]  ;;  %v1189_v26 = vor.u32 %v1188_v44, %v3741_v11 }
  0xa5   : > { %1347 = vst [vmem:[#allocation2 + $0xc] sm:$0xf] %v1346_v24  ;;  %2799 = vmatmul.msk.bf16.vlgmr.msra.gmra.mxu2 %vm1568_vm4, %v2853_v48  ;;  %v3765_v34 = vor.u32 %v729_v6, %v3751_v60  ;;  %v426_v22 = vmax.f32 %v394_v28, 0.0  ;;  %v573_v20 = vld [vmem:[#allocation2 + $0x7c] sm:$0x8] }
  0xa6   : > { %v574_v24 = vsel %vm3408_vm11, 0, %v573_v20  ;;  %v1190_v57 = vrot.slane %v1189_v26, 4 }
  0xa7   : > { %v458_v35 = vpack.c.bf16 %v426_v22, %v426_v22  ;;  %575 = vst [vmem:[#allocation2 + $0x7c] sm:$0x8] %v574_v24 }
  0xa8   : > { %932 = vst.msk [vmem:[#allocation2 + $0x7c] sm:$0xf] %vm869_vm6, %v820_v51 }
  0xa9   : > { %1279 = vrot.lane.b32.xlu0 %v1181_v43, %s2979_s8  ;;  %1277 = vrot.lane.b32.xlu1 %v1178_v29, %s2979_s8  ;;  %v742_v28 = vshrl.u32 %v458_v35, 16  ;;  %v523_v29 = vsel %vm3364_vm5, 0, %v522_v40  ;;  %v745_v23 = vshll.u32 %v458_v35, 16  ;;  %v889_v17 = vld [vmem:[#allocation2 + $0x28] sm:$0xf] }
  0xaa   : > { %1007 = vrot.lane.b32.xlu2 %v3712_v19, %s2978_s7  ;;  %v395_v19 = vadd.f32 %v3688_v36, %v359_v33  ;;  %524 = vst [vmem:[#allocation2 + $0x78] sm:$0x1] %v523_v29  ;;  %v2821_v29 = vld [vmem:[#allocation2 + $0x10] sm:$0xff] }
  0xab   : > { %v1256_v45 = vpop.permute.xlu0 %1255  ;;  %v1296_v5 = vpop.permute.xlu1 %1295  ;;  %v3799_v36 = vrot.slane %v742_v28, 7  ;;  %v1191_v22 = vrot.slane %v742_v28, 4  ;;  %v1192_v9 = vrot.slane %v745_v23, 5 }
  0xac   : > { %v1354_v43 = vsel %vm3699_vm9, %v1256_v45, %v1353_v55  ;;  %v1394_v44 = vsel %vm3699_vm9, %v1296_v5, %v1393_v37  ;;  %v2836_v48 = vld [vmem:[#allocation2 + $0x8] sm:$0xff]  ;;  %v3788_v39 = vpop.permute.xlu2 %1297  ;;  %v427_v38 = vmax.f32 %v395_v19, 0.0  ;;  %v890_v55 = vsel %vm3399_vm8, %v3235_v42, %v889_v17 }
  0xad   : > { %v2820_v27 = vld [vmem:[#allocation2 + $0x8] sm:$0xff]  ;;  %1355 = vst [vmem:[#allocation2 + $0x1c] sm:$0xf] %v1354_v43  ;;  %2628 = vmatmul.msk.bf16.vlgmr.msra.gmra.mxu0 %vm1568_vm4, %v2836_v48  ;;  %v3805_v52 = vor.u32 %v745_v23, %v3799_v36  ;;  %v1182_v45 = vrot.slane %v726_v0, 4  ;;  %v1183_v37 = vrot.slane %v729_v6, 5  ;;  %v1193_v42 = vor.u32 %v1192_v9, %v1191_v22 }
  0xae   : > { %1395 = vst [vmem:[#allocation2 + $0x6c] sm:$0xf] %v1394_v44  ;;  %2713 = vmatmul.msk.bf16.gmra.mxu1 %vm1568_vm4, %v2820_v27  ;;  %v3811_v20 = vpack.c.bf16 %v427_v38, %v427_v38  ;;  %v668_v44 = vrot.slane %v3282_v61, 4  ;;  %v546_v27 = vld [vmem:[#allocation2 + $0x34] sm:$0x8]  ;;  %v828_v19 = vrot.slane %v3327_v53, 4 }
  0xaf   : > { %891 = vst [vmem:[#allocation2 + $0x28] sm:$0xf] %v890_v55  ;;  %v1184_v43 = vor.u32 %v1183_v37, %v1182_v45  ;;  %v1194_v6 = vrot.slane %v1193_v42, 4  ;;  %v525_v9 = vld [vmem:[#allocation2 + $0x80] sm:$0x1] }
  0xb0   : > { %v753_v5 = vshll.u32 %v3811_v20, 16  ;;  %v676_v53 = vsel %vm3426_vm13, %v668_v44, %v3295_v46  ;;  %v576_v46 = vld [vmem:[#allocation2 + $0x84] sm:$0x8]  ;;  %v526_v45 = vsel %vm3364_vm5, 0, %v525_v9 }
  0xb1   : > { %1005 = vrot.lane.b32.xlu0 %v3727_v14, %s2978_s7  ;;  %1283 = vrot.lane.b32.xlu1 %v1190_v57, %s2979_s8  ;;  %v929_v24 = vld [vmem:[#allocation2 + $0x78] sm:$0xf]  ;;  %v1185_v14 = vrot.slane %v1184_v43, 4  ;;  %v577_v22 = vsel %vm3408_vm11, 0, %v576_v46  ;;  %527 = vst [vmem:[#allocation2 + $0x80] sm:$0x1] %v526_v45 }
  0xb2   : > { %v930_v0 = vsel %vm3399_vm8, %v3243_v56, %v929_v24  ;;  %v1195_v48 = vrot.slane %v753_v5, 5  ;;  %578 = vst [vmem:[#allocation2 + $0x84] sm:$0x8] %v577_v22  ;;  %v498_v46 = vld [vmem:[#allocation2 + $0x38] sm:$0x1] }
  0xb3   : > { %v1294_v33 = vpop.permute.xlu0 %1293  ;;  %v984_v4 = vpop.permute.xlu1 %983  ;;  %931 = vst [vmem:[#allocation2 + $0x78] sm:$0xf] %v930_v0  ;;  %v1187_v56 = vsel %vm3127_vm2, %v1185_v14, %v3741_v11  ;;  %v547_v11 = vsel %vm3408_vm11, 0, %v546_v27  ;;  %v513_v22 = vld [vmem:[#allocation2 + $0x60] sm:$0x1] }
  0xb4   : > { %1392 = vst.msk [vmem:[#allocation2 + $0x68] sm:$0xf] %vm1341_vm7, %v1294_v33  ;;  %v2854_v26 = vld [vmem:[#allocation2 + $0x18] sm:$0xff]  ;;  %v986_v40 = vpop.permute.xlu2 %985  ;;  %1281 = vrot.lane.b32.xlu2 %v1187_v56, %s2979_s8  ;;  %v1196_v17 = vsel %vm3127_vm2, %v1194_v6, %v1195_v48 }
  0xb5   : > { %1073 = vst.msk [vmem:[#allocation2 + $0x24] sm:$0xf] %vm1065_vm14, %v984_v4  ;;  %2800 = vmatmul.msk.bf16.gmra.mxu2 %vm1568_vm4, %v2854_v26  ;;  %v1397_v4 = vld [vmem:[#allocation2 + $0x74] sm:$0xf]  ;;  %v496_v26 = vsel %vm3364_vm5, 0, %v495_v31  ;;  %v2838_v14 = vld [vmem:[#allocation2 + $0x18] sm:$0xff] }
  0xb6   : > { %1074 = vst.msk [vmem:[#allocation2 + $0x28] sm:$0xf] %vm1065_vm14, %v986_v40  ;;  %v549_v56 = vld [vmem:[#allocation2 + $0x3c] sm:$0x8] }
  0xb7   : > { %548 = vst [vmem:[#allocation2 + $0x34] sm:$0x8] %v547_v11 }
  0xb8   : > { %896 = vst.msk [vmem:[#allocation2 + $0x34] sm:$0xf] %vm869_vm6, %v676_v53  ;;  %v564_v53 = vld [vmem:[#allocation2 + $0x64] sm:$0x8] }
  0xb9   : > { %1011 = vrot.lane.b32.xlu0 %v3811_v20, %s2978_s7  ;;  %1009 = vrot.lane.b32.xlu1 %v458_v35, %s2978_s7  ;;  %v2837_v35 = vld [vmem:[#allocation2 + $0x10] sm:$0xff]  ;;  %497 = vst [vmem:[#allocation2 + $0x30] sm:$0x1] %v496_v26 }
  0xbb   : > { %v982_v51 = vpop.permute.xlu0 %981  ;;  %v1022_v61 = vpop.permute.xlu1 %1021  ;;  %v2848_v57 = vld [vmem:[#allocation2 + $0x68] sm:$0xff] }
  0xbc   : > { %1072 = vst.msk [vmem:[#allocation2 + $0x20] sm:$0xf] %vm1065_vm14, %v982_v51  ;;  %v1357_v28 = vld [vmem:[#allocation2 + $0x24] sm:$0xf]  ;;  %v3835_v23 = vpop.permute.xlu2 %1303  ;;  %2640 = vmatmul.msk.bf16.vlgmr.msra.gmra.mxu3 %vm1568_vm4, %v2848_v57  ;;  %v684_v51 = vrot.slane %v3441_v13, 4 }
  0xbd   : > { %1092 = vst.msk [vmem:[#allocation2 + $0x70] sm:$0xf] %vm1065_vm14, %v1022_v61  ;;  %v1358_v38 = vsel %vm3699_vm9, %v3747_v62, %v1357_v28  ;;  %2629 = vmatmul.msk.bf16.gmra.mxu0 %vm1568_vm4, %v2837_v35  ;;  %v836_v62 = vsel %vm3426_vm13, %v828_v19, %v3321_v12  ;;  %2953 = vmatpush.bf16.msra.mxu3 %v3569_v16  ;;  %v933_v19 = vld [vmem:[#allocation2 + $0x80] sm:$0xf]  ;;  %v764_v61 = vrot.slane %v3448_v30, 4 }
  0xbe   : > { %1359 = vst [vmem:[#allocation2 + $0x24] sm:$0xf] %v1358_v38  ;;  %2714 = vmatmul.msk.bf16.gmra.mxu1 %vm1568_vm4, %v2821_v29  ;;  %v934_v57 = vsel %vm3399_vm8, %v3337_v59, %v933_v19  ;;  %v550_v38 = vsel %vm3408_vm11, 0, %v549_v56  ;;  %v692_v59 = vsel %vm3426_vm13, %v684_v51, %v3603_v54  ;;  %v499_v54 = vsel %vm3364_vm5, 0, %v498_v46 }
  0xbf   : > { %1396 = vst.msk [vmem:[#allocation2 + $0x70] sm:$0xf] %vm1341_vm7, %v3788_v39  ;;  %v750_v39 = vshrl.u32 %v3811_v20, 16  ;;  %v772_v11 = vsel %vm3426_vm13, %v764_v61, %v3479_v1  ;;  %v716_v19 = vrot.slane %v3644_v15, 4 }
  0xc0   : > { %936 = vst.msk [vmem:[#allocation2 + $0x84] sm:$0xf] %vm869_vm6, %v836_v62  ;;  %v893_v20 = vld [vmem:[#allocation2 + $0x30] sm:$0xf]  ;;  %v565_v62 = vsel %vm3408_vm11, 0, %v564_v53 }
  0xc1   : > { %1285 = vrot.lane.b32.xlu0 %v1196_v17, %s2979_s8  ;;  %2954 = vmatpush.bf16.msra.mxu3 %v3594_v7  ;;  %v1197_v40 = vrot.slane %v750_v39, 4  ;;  %v752_v37 = vrot.slane %v750_v39, 7  ;;  %935 = vst [vmem:[#allocation2 + $0x80] sm:$0xf] %v934_v57  ;;  %v514_v39 = vsel %vm3364_vm5, 0, %v513_v22  ;;  %v724_v53 = vsel %vm3426_vm13, %v716_v19, %v3657_v8 }
  0xc2   : > { %551 = vst [vmem:[#allocation2 + $0x3c] sm:$0x8] %v550_v38 }
  0xc3   : > { %v1300_v33 = vpop.permute.xlu0 %1299  ;;  %v1258_v55 = vpop.permute.xlu1 %1257  ;;  %v1198_v42 = vor.u32 %v1197_v40, %v1195_v48  ;;  %v3875_v7 = vor.u32 %v753_v5, %v752_v37  ;;  %v2822_v48 = vld [vmem:[#allocation2 + $0x18] sm:$0xff]  ;;  %v894_v5 = vsel %vm3399_vm8, %v3291_v2, %v893_v20  ;;  %900 = vst.msk [vmem:[#allocation2 + $0x3c] sm:$0xf] %vm869_vm6, %v692_v59  ;;  %v552_v37 = vld [vmem:[#allocation2 + $0x44] sm:$0x8] }
  0xc4   : > { %v1398_v12 = vsel %vm3699_vm9, %v1300_v33, %v1397_v4  ;;  %1356 = vst.msk [vmem:[#allocation2 + $0x20] sm:$0xf] %vm1341_vm7, %v1258_v55  ;;  %v992_v16 = vpop.permute.xlu2 %991  ;;  %v700_v4 = vrot.slane %v3565_v41, 4 }
  0xc5   : > { %1399 = vst [vmem:[#allocation2 + $0x74] sm:$0xf] %v1398_v12  ;;  %v1199_v24 = vrot.slane %v1198_v42, 4 }
  0xc6   : > { %1077 = vst.msk [vmem:[#allocation2 + $0x34] sm:$0xf] %vm1065_vm14, %v992_v16  ;;  %v708_v41 = vsel %vm3426_vm13, %v700_v4, %v3694_v63 }
  0xc7   : > { %1287 = vrot.lane.b32.xlu2 %v1199_v24, %s2979_s8  ;;  %895 = vst [vmem:[#allocation2 + $0x30] sm:$0xf] %v894_v5  ;;  %v553_v24 = vsel %vm3408_vm11, 0, %v552_v37 }
  0xc8   : > { %566 = vst [vmem:[#allocation2 + $0x64] sm:$0x8] %v565_v62 }
  0xc9   : > { %920 = vst.msk [vmem:[#allocation2 + $0x64] sm:$0xf] %vm869_vm6, %v772_v11 }
  0xca   : > { %500 = vst [vmem:[#allocation2 + $0x38] sm:$0x1] %v499_v54 }
  0xcb   : > { %v988_v43 = vpop.permute.xlu0 %987  ;;  %v1028_v44 = vpop.permute.xlu1 %1027  ;;  %v2855_v0 = vld [vmem:[#allocation2 + $0x20] sm:$0xff]  ;;  %515 = vst [vmem:[#allocation2 + $0x60] sm:$0x1] %v514_v39  ;;  %v732_v39 = vrot.slane %v3751_v60, 4 }
  0xcc   : > { %1075 = vst.msk [vmem:[#allocation2 + $0x2c] sm:$0xf] %vm1065_vm14, %v988_v43  ;;  %v2849_v6 = vld [vmem:[#allocation2 + $0x70] sm:$0xff]  ;;  %v1030_v27 = vpop.permute.xlu2 %1029  ;;  %2801 = vmatmul.msk.bf16.gmra.mxu2 %vm1568_vm4, %v2855_v0  ;;  %v2823_v33 = vld [vmem:[#allocation2 + $0x20] sm:$0xff] }
  0xcd   : > { %1095 = vst.msk [vmem:[#allocation2 + $0x7c] sm:$0xf] %vm1065_vm14, %v1028_v44  ;;  %2630 = vmatmul.msk.bf16.gmra.mxu0 %vm1568_vm4, %v2838_v14  ;;  %2641 = vmatmul.msk.bf16.gmra.mxu3 %vm1568_vm4, %v2849_v6  ;;  %v501_v44 = vld [vmem:[#allocation2 + $0x40] sm:$0x1]  ;;  %v1365_v14 = vld [vmem:[#allocation2 + $0x34] sm:$0xf]  ;;  %v740_v4 = vsel %vm3426_vm13, %v732_v39, %v3729_v25 }
  0xce   : > { %2715 = vmatmul.msk.bf16.gmra.mxu1 %vm1568_vm4, %v2822_v48  ;;  %1096 = vst.msk [vmem:[#allocation2 + $0x80] sm:$0xf] %vm1065_vm14, %v1030_v27  ;;  %v502_v63 = vsel %vm3364_vm5, 0, %v501_v44 }
  0xcf   : > { %554 = vst [vmem:[#allocation2 + $0x44] sm:$0x8] %v553_v24 }
  0xd0   : > { %904 = vst.msk [vmem:[#allocation2 + $0x44] sm:$0xf] %vm869_vm6, %v708_v41 }
  0xd1   : > { %v897_v55 = vld [vmem:[#allocation2 + $0x38] sm:$0xf]  ;;  %503 = vst [vmem:[#allocation2 + $0x40] sm:$0x1] %v502_v63 }
  0xd2   : > { %v898_v45 = vsel %vm3399_vm8, %v3457_v21, %v897_v55  ;;  %v917_v42 = vld [vmem:[#allocation2 + $0x60] sm:$0xf] }
  0xd3   : > { %v1026_v28 = vpop.permute.xlu0 %1025  ;;  %v1361_v35 = vld [vmem:[#allocation2 + $0x2c] sm:$0xf]  ;;  %v1264_v29 = vpop.permute.xlu1 %1263  ;;  %899 = vst [vmem:[#allocation2 + $0x38] sm:$0xf] %v898_v45  ;;  %v918_v21 = vsel %vm3399_vm8, %v3468_v58, %v917_v42 }
  0xd4   : > { %1094 = vst.msk [vmem:[#allocation2 + $0x78] sm:$0xf] %vm1065_vm14, %v1026_v28  ;;  %v1362_v2 = vsel %vm3699_vm9, %v1264_v29, %v1361_v35  ;;  %v1401_v13 = vld [vmem:[#allocation2 + $0x7c] sm:$0xf]  ;;  %v1266_v30 = vpop.permute.xlu2 %1265  ;;  %v555_v29 = vld [vmem:[#allocation2 + $0x4c] sm:$0x8] }
  0xd5   : > { %1363 = vst [vmem:[#allocation2 + $0x2c] sm:$0xf] %v1362_v2  ;;  %v1402_v17 = vsel %vm3699_vm9, %v3835_v23, %v1401_v13  ;;  %v2839_v23 = vld [vmem:[#allocation2 + $0x20] sm:$0xff]  ;;  %v556_v15 = vsel %vm3408_vm11, 0, %v555_v29 }
  0xd6   : > { %1403 = vst [vmem:[#allocation2 + $0x7c] sm:$0xf] %v1402_v17 }
  0xd7   : > { %919 = vst [vmem:[#allocation2 + $0x60] sm:$0xf] %v918_v21 }
  0xd8   : > { %v901_v61 = vld [vmem:[#allocation2 + $0x40] sm:$0xf]  ;;  %557 = vst [vmem:[#allocation2 + $0x4c] sm:$0x8] %v556_v15 }
  0xd9   : > { %v902_v28 = vsel %vm3399_vm8, %v3581_v3, %v901_v61  ;;  %908 = vst.msk [vmem:[#allocation2 + $0x4c] sm:$0xf] %vm869_vm6, %v724_v53  ;;  %v504_v3 = vld [vmem:[#allocation2 + $0x48] sm:$0x1] }
  0xda   : > { %903 = vst [vmem:[#allocation2 + $0x40] sm:$0xf] %v902_v28  ;;  %v505_v13 = vsel %vm3364_vm5, 0, %v504_v3 }
  0xdb   : > { %v1262_v1 = vpop.permute.xlu0 %1261  ;;  %v1302_v31 = vpop.permute.xlu1 %1301  ;;  %506 = vst [vmem:[#allocation2 + $0x48] sm:$0x1] %v505_v13 }
  0xdc   : > { %1360 = vst.msk [vmem:[#allocation2 + $0x28] sm:$0xf] %vm1341_vm7, %v1262_v1  ;;  %v1016_v9 = vpop.permute.xlu2 %1015 }
  0xdd   : > { %1400 = vst.msk [vmem:[#allocation2 + $0x78] sm:$0xf] %vm1341_vm7, %v1302_v31  ;;  %2631 = vmatmul.msk.bf16.gmra.mxu0 %vm1568_vm4, %v2839_v23 }
  0xde   : > { %1089 = vst.msk [vmem:[#allocation2 + $0x64] sm:$0xf] %vm1065_vm14, %v1016_v9  ;;  %2716 = vmatmul.msk.bf16.gmra.mxu1 %vm1568_vm4, %v2823_v33  ;;  %v558_v33 = vld [vmem:[#allocation2 + $0x54] sm:$0x8] }
  0xdf   : > { %v559_v55 = vsel %vm3408_vm11, 0, %v558_v33 }
  0xe0   : > { %560 = vst [vmem:[#allocation2 + $0x54] sm:$0x8] %v559_v55 }
  0xe1   : > { %912 = vst.msk [vmem:[#allocation2 + $0x54] sm:$0xf] %vm869_vm6, %v740_v4 }
  0xe2   : > { %v905_v62 = vld [vmem:[#allocation2 + $0x48] sm:$0xf] }
  0xe3   : > { %v1032_v12 = vpop.permute.xlu0 %1031  ;;  %v990_v16 = vpop.permute.xlu1 %989  ;;  %v2856_v26 = vld [vmem:[#allocation2 + $0x28] sm:$0xff]  ;;  %v906_v23 = vsel %vm3399_vm8, %v3660_v10, %v905_v62  ;;  %v507_v10 = vld [vmem:[#allocation2 + $0x50] sm:$0x1] }
  0xe4   : > { %1097 = vst.msk [vmem:[#allocation2 + $0x84] sm:$0xf] %vm1065_vm14, %v1032_v12  ;;  %v2850_v40 = vld [vmem:[#allocation2 + $0x78] sm:$0xff]  ;;  %2802 = vmatmul.msk.bf16.gmra.mxu2 %vm1568_vm4, %v2856_v26  ;;  %v1272_v43 = vpop.permute.xlu2 %1271  ;;  %v2840_v20 = vld [vmem:[#allocation2 + $0x28] sm:$0xff]  ;;  %v508_v25 = vsel %vm3364_vm5, 0, %v507_v10 }
  0xe5   : > { %1076 = vst.msk [vmem:[#allocation2 + $0x30] sm:$0xf] %vm1065_vm14, %v990_v16  ;;  %2642 = vmatmul.msk.bf16.gmra.mxu3 %vm1568_vm4, %v2850_v40  ;;  %v2824_v5 = vld [vmem:[#allocation2 + $0x28] sm:$0xff]  ;;  %v1389_v1 = vld [vmem:[#allocation2 + $0x64] sm:$0xf] }
  0xe6   : > { %1364 = vst.msk [vmem:[#allocation2 + $0x30] sm:$0xf] %vm1341_vm7, %v1266_v30 }
  0xe7   : > { %907 = vst [vmem:[#allocation2 + $0x48] sm:$0xf] %v906_v23 }
  0xe8   : > { %509 = vst [vmem:[#allocation2 + $0x50] sm:$0x1] %v508_v25 }
  0xeb   : > { %v1268_v0 = vpop.permute.xlu0 %1267  ;;  %v1405_v6 = vld [vmem:[#allocation2 + $0x84] sm:$0xf]  ;;  %v1308_v27 = vpop.permute.xlu1 %1307 }
  0xec   : > { %v1366_v48 = vsel %vm3699_vm9, %v1268_v0, %v1365_v14  ;;  %v1406_v58 = vsel %vm3699_vm9, %v1308_v27, %v1405_v6  ;;  %v1290_v51 = vpop.permute.xlu2 %1289  ;;  %v561_v14 = vld [vmem:[#allocation2 + $0x5c] sm:$0x8]  ;;  %v510_v6 = vld [vmem:[#allocation2 + $0x58] sm:$0x1] }
  0xed   : > { %1367 = vst [vmem:[#allocation2 + $0x34] sm:$0xf] %v1366_v48  ;;  %2632 = vmatmul.msk.bf16.gmra.mxu0 %vm1568_vm4, %v2840_v20  ;;  %v562_v27 = vsel %vm3408_vm11, 0, %v561_v14  ;;  %v2832_v48 = vld [vmem:[#allocation2 + $0x68] sm:$0xff] }
  0xee   : > { %1407 = vst [vmem:[#allocation2 + $0x84] sm:$0xf] %v1406_v58  ;;  %2717 = vmatmul.msk.bf16.gmra.mxu1 %vm1568_vm4, %v2824_v5  ;;  %v511_v5 = vsel %vm3364_vm5, 0, %v510_v6 }
  0xef   : > { %v909_v63 = vld [vmem:[#allocation2 + $0x50] sm:$0xf]  ;;  %563 = vst [vmem:[#allocation2 + $0x5c] sm:$0x8] %v562_v27 }
  0xf0   : > { %v910_v0 = vsel %vm3399_vm8, %v3765_v34, %v909_v63  ;;  %512 = vst [vmem:[#allocation2 + $0x58] sm:$0x1] %v511_v5 }
  0xf1   : > { %911 = vst [vmem:[#allocation2 + $0x50] sm:$0xf] %v910_v0 }
  0xf3   : > { %v1306_v57 = vpop.permute.xlu0 %1305  ;;  %v996_v56 = vpop.permute.xlu1 %995 }
  0xf4   : > { %1404 = vst.msk [vmem:[#allocation2 + $0x80] sm:$0xf] %vm1341_vm7, %v1306_v57  ;;  %v2857_v35 = vld [vmem:[#allocation2 + $0x30] sm:$0xff]  ;;  %v1276_v2 = vpop.permute.xlu2 %1275 }
  0xf5   : > { %1079 = vst.msk [vmem:[#allocation2 + $0x3c] sm:$0xf] %vm1065_vm14, %v996_v56  ;;  %2803 = vmatmul.msk.bf16.gmra.mxu2 %vm1568_vm4, %v2857_v35  ;;  %v2841_v11 = vld [vmem:[#allocation2 + $0x30] sm:$0xff] }
  0xf6   : > { %v2825_v46 = vld [vmem:[#allocation2 + $0x30] sm:$0xff] }
  0xf7   : > { %v913_v35 = vld [vmem:[#allocation2 + $0x58] sm:$0xf] }
  0xf8   : > { %v914_v29 = vsel %vm3399_vm8, %v3805_v52, %v913_v35 }
  0xf9   : > { %915 = vst [vmem:[#allocation2 + $0x58] sm:$0xf] %v914_v29 }
  0xfb   : > { %v994_v30 = vpop.permute.xlu0 %993  ;;  %v1014_v38 = vpop.permute.xlu1 %1013  ;;  %v2851_v59 = vld [vmem:[#allocation2 + $0x80] sm:$0xff] }
  0xfc   : > { %1078 = vst.msk [vmem:[#allocation2 + $0x38] sm:$0xf] %vm1065_vm14, %v994_v30  ;;  %v1369_v8 = vld [vmem:[#allocation2 + $0x3c] sm:$0xf]  ;;  %2643 = vmatmul.msk.bf16.gmra.mxu3 %vm1568_vm4, %v2851_v59  ;;  %v1002_v54 = vpop.permute.xlu2 %1001  ;;  %v1859_v44 = vpop.f32.mrf.mxu1  ;;  %v2833_v59 = vld [vmem:[#allocation2 + $0x70] sm:$0xff] }
  0xfd   : > { %1088 = vst.msk [vmem:[#allocation2 + $0x60] sm:$0xf] %vm1065_vm14, %v1014_v38  ;;  %v1370_v17 = vsel %vm3699_vm9, %v1272_v43, %v1369_v8  ;;  %2633 = vmatmul.msk.bf16.gmra.mxu0 %vm1568_vm4, %v2841_v11  ;;  %v748_v43 = vrot.slane %v3799_v36, 4 }
  0xfe   : > { %1371 = vst [vmem:[#allocation2 + $0x3c] sm:$0xf] %v1370_v17  ;;  %2718 = vmatmul.msk.bf16.gmra.mxu1 %vm1568_vm4, %v2825_v46 }
  0xff   : > { %1388 = vst.msk [vmem:[#allocation2 + $0x60] sm:$0xf] %vm1341_vm7, %v1290_v51  ;;  %v756_v36 = vsel %vm3426_vm13, %v748_v43, %v3875_v7 }
 0x100   : > { %1082 = vst.msk [vmem:[#allocation2 + $0x48] sm:$0xf] %vm1065_vm14, %v1002_v54 }
 0x101   : > { %916 = vst.msk [vmem:[#allocation2 + $0x5c] sm:$0xf] %vm869_vm6, %v756_v36 }
 0x103   : > { %v1292_v22 = vpop.permute.xlu0 %1291  ;;  %v1270_v31 = vpop.permute.xlu1 %1269 }
 0x104   : > { %v1390_v9 = vsel %vm3699_vm9, %v1292_v22, %v1389_v1  ;;  %1368 = vst.msk [vmem:[#allocation2 + $0x38] sm:$0xf] %vm1341_vm7, %v1270_v31  ;;  %v1008_v37 = vpop.permute.xlu2 %1007  ;;  %v1861_v49 = vpop.f32.mrf.mxu1 }
 0x105   : > { %1391 = vst [vmem:[#allocation2 + $0x64] sm:$0xf] %v1390_v9 }
 0x106   : > { %1085 = vst.msk [vmem:[#allocation2 + $0x54] sm:$0xf] %vm1065_vm14, %v1008_v37 }
 0x10b   : > { %v1000_v12 = vpop.permute.xlu0 %999  ;;  %v2858_v16 = vld [vmem:[#allocation2 + $0x38] sm:$0xff]  ;;  %v998_v45 = vpop.permute.xlu1 %997 }
 0x10c   : > { %v2842_v26 = vld [vmem:[#allocation2 + $0x38] sm:$0xff]  ;;  %1081 = vst.msk [vmem:[#allocation2 + $0x44] sm:$0xf] %vm1065_vm14, %v1000_v12  ;;  %v2831_v60 = vld [vmem:[#allocation2 + $0x60] sm:$0xff]  ;;  %2804 = vmatmul.msk.bf16.gmra.mxu2 %vm1568_vm4, %v2858_v16 }
 0x10d   : > { %v2826_v40 = vld [vmem:[#allocation2 + $0x38] sm:$0xff]  ;;  %1080 = vst.msk [vmem:[#allocation2 + $0x40] sm:$0xf] %vm1065_vm14, %v998_v45  ;;  %2634 = vmatmul.msk.bf16.gmra.mxu0 %vm1568_vm4, %v2842_v26  ;;  %2724 = vmatmul.msk.bf16.vlgmr.msrb.gmra.mxu3 %vm1568_vm4, %v2831_v60  ;;  %v1381_v18 = vld [vmem:[#allocation2 + $0x54] sm:$0xf] }
 0x10e   : > { %2719 = vmatmul.msk.bf16.gmra.mxu1 %vm1568_vm4, %v2826_v40  ;;  %v1282_v7 = vpop.permute.xlu2 %1281 }
 0x113   : > { %v1373_v41 = vld [vmem:[#allocation2 + $0x44] sm:$0xf]  ;;  %v1274_v42 = vpop.permute.xlu0 %1273  ;;  %v1004_v24 = vpop.permute.xlu1 %1003 }
 0x114   : > { %v1374_v21 = vsel %vm3699_vm9, %v1276_v2, %v1373_v41  ;;  %1372 = vst.msk [vmem:[#allocation2 + $0x40] sm:$0xf] %vm1341_vm7, %v1274_v42  ;;  %v2834_v41 = vld [vmem:[#allocation2 + $0x78] sm:$0xff] }
 0x115   : > { %1375 = vst [vmem:[#allocation2 + $0x44] sm:$0xf] %v1374_v21 }
 0x116   : > { %1083 = vst.msk [vmem:[#allocation2 + $0x4c] sm:$0xf] %vm1065_vm14, %v1004_v24 }
 0x11b   : > { %v1280_v58 = vpop.permute.xlu0 %1279  ;;  %v1278_v20 = vpop.permute.xlu1 %1277 }
 0x11c   : > { %v2843_v19 = vld [vmem:[#allocation2 + $0x40] sm:$0xff]  ;;  %1376 = vst.msk [vmem:[#allocation2 + $0x48] sm:$0xf] %vm1341_vm7, %v1278_v20 }
 0x11d   : > { %v2827_v51 = vld [vmem:[#allocation2 + $0x40] sm:$0xff]  ;;  %v1377_v61 = vld [vmem:[#allocation2 + $0x4c] sm:$0xf]  ;;  %2635 = vmatmul.msk.bf16.gmra.mxu0 %vm1568_vm4, %v2843_v19  ;;  %2725 = vmatmul.msk.bf16.gmra.mxu3 %vm1568_vm4, %v2832_v48 }
 0x11e   : > { %v2859_v34 = vld [vmem:[#allocation2 + $0x40] sm:$0xff]  ;;  %v1378_v32 = vsel %vm3699_vm9, %v1280_v58, %v1377_v61  ;;  %2720 = vmatmul.msk.bf16.gmra.mxu1 %vm1568_vm4, %v2827_v51 }
 0x11f   : > { %2805 = vmatmul.msk.bf16.gmra.mxu2 %vm1568_vm4, %v2859_v34  ;;  %1379 = vst [vmem:[#allocation2 + $0x4c] sm:$0xf] %v1378_v32 }
 0x121   : > { %v1288_v17 = vpop.permute.xlu2 %1287 }
 0x123   : > { %v1006_v57 = vpop.permute.xlu0 %1005  ;;  %v1284_v56 = vpop.permute.xlu1 %1283 }
 0x124   : > { %1084 = vst.msk [vmem:[#allocation2 + $0x50] sm:$0xf] %vm1065_vm14, %v1006_v57  ;;  %v1382_v28 = vsel %vm3699_vm9, %v1284_v56, %v1381_v18  ;;  %v2865_v18 = vld [vmem:[#allocation2 + $0x70] sm:$0xff] }
 0x125   : > { %1383 = vst [vmem:[#allocation2 + $0x54] sm:$0xf] %v1382_v28 }
 0x126   : > { %1380 = vst.msk [vmem:[#allocation2 + $0x50] sm:$0xf] %vm1341_vm7, %v1282_v7  ;;  %v2844_v15 = vld [vmem:[#allocation2 + $0x48] sm:$0xff] }
 0x127   : > { %v2828_v13 = vld [vmem:[#allocation2 + $0x48] sm:$0xff] }
 0x128   : > { %v2125_v53 = vpop.f32.mrf.mxu2  ;;  %v2860_v30 = vld [vmem:[#allocation2 + $0x48] sm:$0xff] }
 0x12a   : > { %v1630_v3 = vpop.f32.mrf.mxu0 }
 0x12b   : > { %v1864_v2 = vpop.f32.mrf.mxu1  ;;  %v1860_v38 = vadd.f32 %v1859_v44, %v1630_v3  ;;  %v1012_v8 = vpop.permute.xlu0 %1011 }
 0x12c   : > { %v1010_v11 = vpop.permute.xlu1 %1009  ;;  %1087 = vst.msk [vmem:[#allocation2 + $0x5c] sm:$0xf] %vm1065_vm14, %v1012_v8 }
 0x12d   : > { %v2205_v47 = vadd.f32 %v2125_v53, %v1860_v38  ;;  %2636 = vmatmul.msk.bf16.gmra.mxu0 %vm1568_vm4, %v2844_v15  ;;  %2726 = vmatmul.msk.bf16.gmra.mxu3 %vm1568_vm4, %v2833_v59  ;;  %1086 = vst.msk [vmem:[#allocation2 + $0x58] sm:$0xf] %vm1065_vm14, %v1010_v11  ;;  %v2845_v16 = vld [vmem:[#allocation2 + $0x50] sm:$0xff] }
 0x12e   : > { %2721 = vmatmul.msk.bf16.gmra.mxu1 %vm1568_vm4, %v2828_v13  ;;  %v2829_v60 = vld [vmem:[#allocation2 + $0x50] sm:$0xff] }
 0x12f   : > { %2806 = vmatmul.msk.bf16.gmra.mxu2 %vm1568_vm4, %v2860_v30  ;;  %2238 = vst.msk [vmem:[%s4026_s30] sm:$0xff] %vm2237_vm0, %v2205_v47  ;;  %v2341_v23 = vmul.f32 %v2205_v47, %v2205_v47  ;;  %v2270_v39 = vsel %vm2237_vm0, %v2205_v47, 0.0  ;;  %v2861_v37 = vld [vmem:[#allocation2 + $0x50] sm:$0xff] }
 0x130   : > { %v2127_v52 = vpop.f32.mrf.mxu2 }
 0x131   : > { %v2373_v10 = vsel %vm2237_vm0, %v2341_v23, 0.0 }
 0x132   : > { %v1632_v46 = vpop.f32.mrf.mxu0 }
 0x133   : > { %v1866_v62 = vpop.f32.mrf.mxu1  ;;  %v1862_v54 = vadd.f32 %v1861_v49, %v1632_v46  ;;  %v1385_v22 = vld [vmem:[#allocation2 + $0x5c] sm:$0xf]  ;;  %v1286_v1 = vpop.permute.xlu0 %1285 }
 0x134   : > { %v1386_v31 = vsel %vm3699_vm9, %v1288_v17, %v1385_v22  ;;  %1384 = vst.msk [vmem:[#allocation2 + $0x58] sm:$0xf] %vm1341_vm7, %v1286_v1  ;;  %v2863_v1 = vld [vmem:[#allocation2 + $0x60] sm:$0xff] }
 0x135   : > { %v2206_v9 = vadd.f32 %v2127_v52, %v1862_v54  ;;  %1387 = vst [vmem:[#allocation2 + $0x5c] sm:$0xf] %v1386_v31  ;;  %v2866_v54 = vld [vmem:[#allocation2 + $0x78] sm:$0xff] }
 0x137   : > { %2239 = vst.msk [vmem:[%s4026_s30 + $0x8] sm:$0xff] %vm2237_vm0, %v2206_v9  ;;  %v2271_v33 = vsel %vm2237_vm0, %v2206_v9, 0.0  ;;  %v2342_v4 = vmul.f32 %v2206_v9, %v2206_v9 }
 0x138   : > { %v2272_v55 = vadd.f32 %v2271_v33, %v2270_v39  ;;  %v2130_v50 = vpop.f32.mrf.mxu2 }
 0x139   : > { %v2374_v12 = vsel %vm2237_vm0, %v2342_v4, 0.0 }
 0x13a   : > { %v2375_v26 = vadd.f32 %v2374_v12, %v2373_v10  ;;  %v1635_v40 = vpop.f32.mrf.mxu0 }
 0x13b   : > { %v1869_v45 = vpop.f32.mrf.mxu1  ;;  %v1865_v25 = vadd.f32 %v1864_v2, %v1635_v40  ;;  %v2867_v40 = vld [vmem:[#allocation2 + $0x80] sm:$0xff] }
 0x13c   : > { %v2846_v51 = vld [vmem:[#allocation2 + $0x58] sm:$0xff] }
 0x13d   : > { %v2207_v42 = vadd.f32 %v2130_v50, %v1865_v25  ;;  %2637 = vmatmul.msk.bf16.gmra.mxu0 %vm1568_vm4, %v2845_v16  ;;  %2727 = vmatmul.msk.bf16.gmra.mxu3 %vm1568_vm4, %v2834_v41  ;;  %v2830_v61 = vld [vmem:[#allocation2 + $0x58] sm:$0xff] }
 0x13e   : > { %2722 = vmatmul.msk.bf16.gmra.mxu1 %vm1568_vm4, %v2829_v60  ;;  %v2862_v32 = vld [vmem:[#allocation2 + $0x58] sm:$0xff]  ;;  %v2864_v60 = vld [vmem:[#allocation2 + $0x68] sm:$0xff] }
 0x13f   : > { %2807 = vmatmul.msk.bf16.gmra.mxu2 %vm1568_vm4, %v2861_v37  ;;  %2240 = vst.msk [vmem:[%s4026_s30 + $0x10] sm:$0xff] %vm2237_vm0, %v2207_v42  ;;  %v2273_v24 = vsel %vm2237_vm0, %v2207_v42, 0.0  ;;  %v2343_v21 = vmul.f32 %v2207_v42, %v2207_v42  ;;  %v4053_v58 = vpop.f32.mrf.mxu3 }
 0x140   : > { %v2274_v43 = vadd.f32 %v2273_v24, %v2272_v55  ;;  %v2132_v27 = vpop.f32.mrf.mxu2 }
 0x141   : > { %v2376_v44 = vsel %vm2237_vm0, %v2343_v21, 0.0 }
 0x142   : > { %v2377_v63 = vadd.f32 %v2376_v44, %v2375_v26  ;;  %v1637_v0 = vpop.f32.mrf.mxu0 }
 0x143   : > { %v1867_v14 = vadd.f32 %v1866_v62, %v1637_v0  ;;  %v1871_v6 = vpop.f32.mrf.mxu1  ;;  %v2847_v62 = vld [vmem:[#allocation2 + $0x60] sm:$0xff] }
 0x145   : > { %v2208_v48 = vadd.f32 %v2132_v27, %v1867_v14 }
 0x147   : > { %2241 = vst.msk [vmem:[%s4026_s30 + $0x18] sm:$0xff] %vm2237_vm0, %v2208_v48  ;;  %v2275_v20 = vsel %vm2237_vm0, %v2208_v48, 0.0  ;;  %v2344_v36 = vmul.f32 %v2208_v48, %v2208_v48  ;;  %v4063_v35 = vpop.f32.mrf.mxu3 }
 0x148   : > { %v2276_v5 = vadd.f32 %v2275_v20, %v2274_v43 }
 0x149   : > { %v2378_v19 = vsel %vm2237_vm0, %v2344_v36, 0.0 }
 0x14a   : > { %v1640_v34 = vpop.f32.mrf.mxu0  ;;  %v2379_v49 = vadd.f32 %v2378_v19, %v2377_v63 }
 0x14b   : > { %v1874_v7 = vpop.f32.mrf.mxu1  ;;  %v1870_v57 = vadd.f32 %v1869_v45, %v1640_v34 }
 0x14d   : > { %2638 = vmatmul.msk.bf16.gmra.mxu0 %vm1568_vm4, %v2846_v51  ;;  %2811 = vmatmul.msk.bf16.vlgmr.msra.gmra.mxu3 %vm1568_vm4, %v2865_v18 }
 0x14e   : > { %2723 = vmatmul.msk.bf16.gmra.mxu1 %vm1568_vm4, %v2830_v61 }
 0x14f   : > { %2808 = vmatmul.msk.bf16.gmra.mxu2 %vm1568_vm4, %v2862_v32  ;;  %v2135_v56 = vpop.f32.mrf.mxu2 }
 0x150   : > { %v2209_v28 = vadd.f32 %v2135_v56, %v1870_v57  ;;  %v4072_v17 = vpop.f32.mrf.mxu3 }
 0x152   : > { %2242 = vst.msk [vmem:[%s4026_s30 + $0x20] sm:$0xff] %vm2237_vm0, %v2209_v28  ;;  %v2277_v29 = vsel %vm2237_vm0, %v2209_v28, 0.0  ;;  %v2345_v53 = vmul.f32 %v2209_v28, %v2209_v28  ;;  %v1642_v15 = vpop.f32.mrf.mxu0 }
 0x153   : > { %v2278_v3 = vadd.f32 %v2277_v29, %v2276_v5  ;;  %v1872_v30 = vadd.f32 %v1871_v6, %v1642_v15  ;;  %v1876_v38 = vpop.f32.mrf.mxu1  ;;  %v2868_v5 = vld [vmem:[#allocation2 + $0x88] sm:$0xff] }
 0x154   : > { %v2380_v2 = vsel %vm2237_vm0, %v2345_v53, 0.0 }
 0x155   : > { %v2381_v13 = vadd.f32 %v2380_v2, %v2379_v49 }
 0x157   : > { %v2137_v59 = vpop.f32.mrf.mxu2 }
 0x158   : > { %v2210_v8 = vadd.f32 %v2137_v59, %v1872_v30  ;;  %v4078_v39 = vpop.f32.mrf.mxu3 }
 0x15a   : > { %2243 = vst.msk [vmem:[%s4026_s30 + $0x28] sm:$0xff] %vm2237_vm0, %v2210_v8  ;;  %v2279_v11 = vsel %vm2237_vm0, %v2210_v8, 0.0  ;;  %v2346_v47 = vmul.f32 %v2210_v8, %v2210_v8  ;;  %v1645_v52 = vpop.f32.mrf.mxu0 }
 0x15b   : > { %v2280_v46 = vadd.f32 %v2279_v11, %v2278_v3  ;;  %v1879_v23 = vpop.f32.mrf.mxu1  ;;  %v1875_v33 = vadd.f32 %v1874_v7, %v1645_v52 }
 0x15c   : > { %v2382_v22 = vsel %vm2237_vm0, %v2346_v47, 0.0 }
 0x15d   : > { %v2383_v31 = vadd.f32 %v2382_v22, %v2381_v13  ;;  %2639 = vmatmul.msk.bf16.gmra.mxu0 %vm1568_vm4, %v2847_v62  ;;  %2812 = vmatmul.msk.bf16.gmra.mxu3 %vm1568_vm4, %v2866_v54 }
 0x15f   : > { %2809 = vmatmul.msk.bf16.gmra.mxu2 %vm1568_vm4, %v2863_v1 }
 0x162   : > { %v1647_v9 = vpop.f32.mrf.mxu0 }
 0x163   : > { %v1881_v16 = vpop.f32.mrf.mxu1  ;;  %v1877_v41 = vadd.f32 %v1876_v38, %v1647_v9 }
 0x167   : > { %v2140_v4 = vpop.f32.mrf.mxu2 }
 0x168   : > { %v2211_v55 = vadd.f32 %v2140_v4, %v1875_v33  ;;  %v4084_v37 = vpop.f32.mrf.mxu3 }
 0x16a   : > { %2244 = vst.msk [vmem:[%s4026_s30 + $0x30] sm:$0xff] %vm2237_vm0, %v2211_v55  ;;  %v2281_v10 = vsel %vm2237_vm0, %v2211_v55, 0.0  ;;  %v2347_v12 = vmul.f32 %v2211_v55, %v2211_v55  ;;  %v1650_v50 = vpop.f32.mrf.mxu0 }
 0x16b   : > { %v2282_v26 = vadd.f32 %v2281_v10, %v2280_v46  ;;  %v1884_v14 = vpop.f32.mrf.mxu1  ;;  %v1880_v27 = vadd.f32 %v1879_v23, %v1650_v50 }
 0x16c   : > { %v2384_v45 = vsel %vm2237_vm0, %v2347_v12, 0.0 }
 0x16d   : > { %v2385_v25 = vadd.f32 %v2384_v45, %v2383_v31  ;;  %2813 = vmatmul.msk.bf16.gmra.mxu3 %vm1568_vm4, %v2867_v40 }
 0x16f   : > { %2810 = vmatmul.msk.bf16.gmra.mxu2 %vm1568_vm4, %v2864_v60  ;;  %v2142_v42 = vpop.f32.mrf.mxu2 }
 0x170   : > { %v2212_v24 = vadd.f32 %v2142_v42, %v1877_v41  ;;  %v4092_v48 = vpop.f32.mrf.mxu3 }
 0x172   : > { %2245 = vst.msk [vmem:[%s4026_s30 + $0x38] sm:$0xff] %vm2237_vm0, %v2212_v24  ;;  %v2283_v21 = vsel %vm2237_vm0, %v2212_v24, 0.0  ;;  %v2348_v43 = vmul.f32 %v2212_v24, %v2212_v24  ;;  %v1652_v44 = vpop.f32.mrf.mxu0 }
 0x173   : > { %v2284_v63 = vadd.f32 %v2283_v21, %v2282_v26  ;;  %v1882_v18 = vadd.f32 %v1881_v16, %v1652_v44  ;;  %v1886_v7 = vpop.f32.mrf.mxu1 }
 0x174   : > { %v2386_v0 = vsel %vm2237_vm0, %v2348_v43, 0.0 }
 0x175   : > { %v2387_v6 = vadd.f32 %v2386_v0, %v2385_v25 }
 0x178   : > { %v2145_v20 = vpop.f32.mrf.mxu2 }
 0x179   : > { %v2213_v36 = vadd.f32 %v2145_v20, %v1880_v27 }
 0x17a   : > { %v1655_v19 = vpop.f32.mrf.mxu0 }
 0x17b   : > { %2246 = vst.msk [vmem:[%s4026_s30 + $0x40] sm:$0xff] %vm2237_vm0, %v2213_v36  ;;  %v2285_v51 = vsel %vm2237_vm0, %v2213_v36, 0.0  ;;  %v2349_v34 = vmul.f32 %v2213_v36, %v2213_v36  ;;  %v1889_v38 = vpop.f32.mrf.mxu1  ;;  %v1885_v8 = vadd.f32 %v1884_v14, %v1655_v19 }
 0x17c   : > { %v2286_v61 = vadd.f32 %v2285_v51, %v2284_v63 }
 0x17d   : > { %v2388_v32 = vsel %vm2237_vm0, %v2349_v34, 0.0  ;;  %2814 = vmatmul.msk.bf16.gmra.mxu3 %vm1568_vm4, %v2868_v5 }
 0x17e   : > { %v2389_v49 = vadd.f32 %v2388_v32, %v2387_v6 }
 0x17f   : > { %v4099_v57 = vpop.f32.mrf.mxu3 }
 0x180   : > { %v2147_v56 = vpop.f32.mrf.mxu2 }
 0x181   : > { %v2214_v28 = vadd.f32 %v2147_v56, %v1882_v18 }
 0x182   : > { %v1657_v29 = vpop.f32.mrf.mxu0 }
 0x183   : > { %2247 = vst.msk [vmem:[%s4026_s30 + $0x48] sm:$0xff] %vm2237_vm0, %v2214_v28  ;;  %v2287_v53 = vsel %vm2237_vm0, %v2214_v28, 0.0  ;;  %v2350_v15 = vmul.f32 %v2214_v28, %v2214_v28  ;;  %v1891_v22 = vpop.f32.mrf.mxu1  ;;  %v1887_v9 = vadd.f32 %v1886_v7, %v1657_v29 }
 0x184   : > { %v2288_v3 = vadd.f32 %v2287_v53, %v2286_v61 }
 0x185   : > { %v2390_v2 = vsel %vm2237_vm0, %v2350_v15, 0.0 }
 0x186   : > { %v2391_v13 = vadd.f32 %v2390_v2, %v2389_v49 }
 0x187   : > { %v4105_v30 = vpop.f32.mrf.mxu3 }
 0x18a   : > { %v1660_v59 = vpop.f32.mrf.mxu0 }
 0x18b   : > { %v1894_v40 = vpop.f32.mrf.mxu1  ;;  %v1890_v60 = vadd.f32 %v1889_v38, %v1660_v59 }
 0x18f   : > { %v2150_v11 = vpop.f32.mrf.mxu2 }
 0x190   : > { %v2215_v47 = vadd.f32 %v2150_v11, %v1885_v8  ;;  %v4107_v52 = vpop.f32.mrf.mxu3 }
 0x192   : > { %2248 = vst.msk [vmem:[%s4026_s30 + $0x50] sm:$0xff] %vm2237_vm0, %v2215_v47  ;;  %v2289_v46 = vsel %vm2237_vm0, %v2215_v47, 0.0  ;;  %v2351_v62 = vmul.f32 %v2215_v47, %v2215_v47  ;;  %v1662_v54 = vpop.f32.mrf.mxu0 }
 0x193   : > { %v2290_v1 = vadd.f32 %v2289_v46, %v2288_v3  ;;  %v1896_v0 = vpop.f32.mrf.mxu1  ;;  %v1892_v6 = vadd.f32 %v1891_v22, %v1662_v54 }
 0x194   : > { %v2392_v31 = vsel %vm2237_vm0, %v2351_v62, 0.0  ;;  %v1920_v62 = vadd.f32 %v4107_v52, %v4053_v58 }
 0x195   : > { %v2393_v23 = vadd.f32 %v2392_v31, %v2391_v13 }
 0x197   : > { %v2152_v33 = vpop.f32.mrf.mxu2 }
 0x198   : > { %v2216_v4 = vadd.f32 %v2152_v33, %v1887_v9  ;;  %v1921_v55 = vpop.f32.mrf.mxu3 }
 0x199   : > { %v1922_v33 = vadd.f32 %v1921_v55, %v4063_v35 }
 0x19a   : > { %2249 = vst.msk [vmem:[%s4026_s30 + $0x58] sm:$0xff] %vm2237_vm0, %v2216_v4  ;;  %v2291_v10 = vsel %vm2237_vm0, %v2216_v4, 0.0  ;;  %v2352_v12 = vmul.f32 %v2216_v4, %v2216_v4  ;;  %v1665_v16 = vpop.f32.mrf.mxu0 }
 0x19b   : > { %v2292_v50 = vadd.f32 %v2291_v10, %v2290_v1  ;;  %v1895_v19 = vadd.f32 %v1894_v40, %v1665_v16  ;;  %v1899_v34 = vpop.f32.mrf.mxu1 }
 0x19c   : > { %v2394_v26 = vsel %vm2237_vm0, %v2352_v12, 0.0 }
 0x19d   : > { %v2395_v45 = vadd.f32 %v2394_v26, %v2393_v23 }
 0x1a0   : > { %v1924_v25 = vpop.f32.mrf.mxu3 }
 0x1a1   : > { %v1925_v26 = vadd.f32 %v1924_v25, %v4072_v17 }
 0x1a2   : > { %v2155_v41 = vpop.f32.mrf.mxu2  ;;  %v1667_v44 = vpop.f32.mrf.mxu0 }
 0x1a3   : > { %v2217_v42 = vadd.f32 %v2155_v41, %v1890_v60  ;;  %v1897_v49 = vadd.f32 %v1896_v0, %v1667_v44  ;;  %v1901_v29 = vpop.f32.mrf.mxu1 }
 0x1a5   : > { %2250 = vst.msk [vmem:[%s4026_s30 + $0x60] sm:$0xff] %vm2237_vm0, %v2217_v42  ;;  %v2293_v24 = vsel %vm2237_vm0, %v2217_v42, 0.0  ;;  %v2353_v21 = vmul.f32 %v2217_v42, %v2217_v42 }
 0x1a6   : > { %v4120_v43 = vadd.f32 %v2293_v24, %v2292_v50 }
 0x1a7   : > { %v2396_v63 = vsel %vm2237_vm0, %v2353_v21, 0.0 }
 0x1a8   : > { %v4123_v14 = vadd.f32 %v2396_v63, %v2395_v45  ;;  %v4125_v27 = vpop.f32.mrf.mxu3 }
 0x1a9   : > { %v1927_v17 = vadd.f32 %v4125_v27, %v4078_v39 }
 0x1aa   : > { %v2157_v20 = vpop.f32.mrf.mxu2  ;;  %v1670_v5 = vpop.f32.mrf.mxu0 }
 0x1ab   : > { %v2218_v36 = vadd.f32 %v2157_v20, %v1892_v6  ;;  %v1900_v53 = vadd.f32 %v1899_v34, %v1670_v5  ;;  %v1904_v38 = vpop.f32.mrf.mxu1 }
 0x1ad   : > { %2251 = vst.msk [vmem:[%s4026_s30 + $0x68] sm:$0xff] %vm2237_vm0, %v2218_v36  ;;  %v2354_v24 = vmul.f32 %v2218_v36, %v2218_v36  ;;  %v2295_v21 = vsel %vm2237_vm0, %v2218_v36, 0.0 }
 0x1ae   : > { %v2296_v5 = vadd.f32 %v2295_v21, %v4120_v43 }
 0x1af   : > { %v2398_v25 = vsel %vm2237_vm0, %v2354_v24, 0.0 }
 0x1b0   : > { %v4129_v51 = vpop.f32.mrf.mxu3  ;;  %v2399_v27 = vadd.f32 %v2398_v25, %v4123_v14 }
 0x1b2   : > { %v2160_v61 = vpop.f32.mrf.mxu2  ;;  %v1672_v7 = vpop.f32.mrf.mxu0 }
 0x1b3   : > { %v2219_v32 = vadd.f32 %v2160_v61, %v1895_v19  ;;  %v1902_v59 = vadd.f32 %v1901_v29, %v1672_v7  ;;  %v1906_v54 = vpop.f32.mrf.mxu1 }
 0x1b5   : > { %2252 = vst.msk [vmem:[%s4026_s30 + $0x70] sm:$0xff] %vm2237_vm0, %v2219_v32  ;;  %v2355_v44 = vmul.f32 %v2219_v32, %v2219_v32  ;;  %v2297_v63 = vsel %vm2237_vm0, %v2219_v32, 0.0 }
 0x1b6   : > { %v2298_v7 = vadd.f32 %v2297_v63, %v2296_v5 }
 0x1b7   : > { %v2400_v36 = vsel %vm2237_vm0, %v2355_v44, 0.0 }
 0x1b8   : > { %v4133_v18 = vpop.f32.mrf.mxu3 }
 0x1b9   : > { %v1932_v21 = vadd.f32 %v4133_v18, %v4092_v48 }
 0x1ba   : > { %v2162_v56 = vpop.f32.mrf.mxu2  ;;  %v1675_v13 = vpop.f32.mrf.mxu0 }
 0x1bb   : > { %v2220_v28 = vadd.f32 %v2162_v56, %v1897_v49  ;;  %v1905_v22 = vadd.f32 %v1904_v38, %v1675_v13  ;;  %v1909_v52 = vpop.f32.mrf.mxu1 }
 0x1bd   : > { %2253 = vst.msk [vmem:[%s4026_s30 + $0x78] sm:$0xff] %vm2237_vm0, %v2220_v28  ;;  %v2356_v0 = vmul.f32 %v2220_v28, %v2220_v28  ;;  %v2299_v61 = vsel %vm2237_vm0, %v2220_v28, 0.0 }
 0x1bf   : > { %v2402_v32 = vsel %vm2237_vm0, %v2356_v0, 0.0 }
 0x1c0   : > { %v4137_v15 = vpop.f32.mrf.mxu3 }
 0x1c2   : > { %v2165_v3 = vpop.f32.mrf.mxu2  ;;  %v1677_v46 = vpop.f32.mrf.mxu0 }
 0x1c3   : > { %v2221_v2 = vadd.f32 %v2165_v3, %v1900_v53  ;;  %v1907_v10 = vadd.f32 %v1906_v54, %v1677_v46  ;;  %v1911_v42 = vpop.f32.mrf.mxu1  ;;  %v2401_v53 = vadd.f32 %v2400_v36, %v2399_v27  ;;  %v2300_v3 = vadd.f32 %v2299_v61, %v2298_v7 }
 0x1c5   : > { %2254 = vst.msk [vmem:[%s4026_s30 + $0x80] sm:$0xff] %vm2237_vm0, %v2221_v2  ;;  %v2357_v49 = vmul.f32 %v2221_v2, %v2221_v2  ;;  %v2301_v43 = vsel %vm2237_vm0, %v2221_v2, 0.0 }
 0x1c6   : > { %v2302_v46 = vadd.f32 %v2301_v43, %v2300_v3  ;;  %v1935_v3 = vadd.f32 %v4137_v15, %v4099_v57 }
 0x1c7   : > { %v2404_v28 = vsel %vm2237_vm0, %v2357_v49, 0.0 }
 0x1c8   : > { %v4141_v8 = vpop.f32.mrf.mxu3 }
 0x1ca   : > { %v2167_v11 = vpop.f32.mrf.mxu2  ;;  %v1680_v4 = vpop.f32.mrf.mxu0 }
 0x1cb   : > { %v2222_v47 = vadd.f32 %v2167_v11, %v1902_v59  ;;  %v1910_v40 = vadd.f32 %v1909_v52, %v1680_v4  ;;  %v1914_v13 = vpop.f32.mrf.mxu1  ;;  %v1930_v59 = vadd.f32 %v4129_v51, %v4084_v37  ;;  %v2403_v11 = vadd.f32 %v2402_v32, %v2401_v53 }
 0x1cd   : > { %2255 = vst.msk [vmem:[%s4026_s30 + $0x88] sm:$0xff] %vm2237_vm0, %v2222_v47  ;;  %v2358_v29 = vmul.f32 %v2222_v47, %v2222_v47  ;;  %v2303_v38 = vsel %vm2237_vm0, %v2222_v47, 0.0 }
 0x1d0   : > { %v2185_v1 = vpop.f32.mrf.mxu3 }
 0x1d1   : > { %v4147_v23 = vadd.f32 %v2185_v1, %v1920_v62  ;;  %v2406_v62 = vsel %vm2237_vm0, %v2358_v29, 0.0 }
 0x1d2   : > { %v2170_v31 = vpop.f32.mrf.mxu2  ;;  %v1682_v35 = vpop.f32.mrf.mxu0 }
 0x1d3   : > { %v2223_v9 = vadd.f32 %v2170_v31, %v1905_v22  ;;  %2262 = vst.msk [vmem:[%s4026_s30 + $0xc0] sm:$0xff] %vm2237_vm0, %v4147_v23  ;;  %v1912_v6 = vadd.f32 %v1911_v42, %v1682_v35  ;;  %v2405_v31 = vadd.f32 %v2404_v28, %v2403_v11  ;;  %v1916_v44 = vpop.f32.mrf.mxu1  ;;  %v2365_v18 = vmul.f32 %v4147_v23, %v4147_v23 }
 0x1d4   : > { %v2317_v43 = vsel %vm2237_vm0, %v4147_v23, 0.0 }
 0x1d5   : > { %2256 = vst.msk [vmem:[%s4026_s30 + $0x90] sm:$0xff] %vm2237_vm0, %v2223_v9  ;;  %v2359_v14 = vmul.f32 %v2223_v9, %v2223_v9  ;;  %v2305_v2 = vsel %vm2237_vm0, %v2223_v9, 0.0  ;;  %v2407_v52 = vadd.f32 %v2406_v62, %v2405_v31 }
 0x1d7   : > { %v2408_v47 = vsel %vm2237_vm0, %v2359_v14, 0.0 }
 0x1d8   : > { %v2187_v58 = vpop.f32.mrf.mxu3 }
 0x1d9   : > { %v4155_v50 = vadd.f32 %v2187_v58, %v1922_v33  ;;  %v2304_v33 = vadd.f32 %v2303_v38, %v2302_v46  ;;  %v2420_v38 = vsel %vm2237_vm0, %v2365_v18, 0.0 }
 0x1da   : > { %v2172_v12 = vpop.f32.mrf.mxu2  ;;  %v1685_v56 = vpop.f32.mrf.mxu0 }
 0x1db   : > { %v2224_v16 = vadd.f32 %v2172_v12, %v1907_v10  ;;  %2263 = vst.msk [vmem:[%s4026_s30 + $0xc8] sm:$0xff] %vm2237_vm0, %v4155_v50  ;;  %v1915_v22 = vadd.f32 %v1914_v13, %v1685_v56  ;;  %v2306_v12 = vadd.f32 %v2305_v2, %v2304_v33  ;;  %v2366_v29 = vmul.f32 %v4155_v50, %v4155_v50 }
 0x1dc   : > { %v2319_v14 = vsel %vm2237_vm0, %v4155_v50, 0.0 }
 0x1dd   : > { %2257 = vst.msk [vmem:[%s4026_s30 + $0x98] sm:$0xff] %vm2237_vm0, %v2224_v16  ;;  %v2360_v54 = vmul.f32 %v2224_v16, %v2224_v16  ;;  %v2307_v37 = vsel %vm2237_vm0, %v2224_v16, 0.0  ;;  %v2422_v2 = vsel %vm2237_vm0, %v2366_v29, 0.0 }
 0x1de   : > { %v2308_v35 = vadd.f32 %v2307_v37, %v2306_v12 }
 0x1df   : > { %v2410_v9 = vsel %vm2237_vm0, %v2360_v54, 0.0 }
 0x1e0   : > { %v2190_v45 = vpop.f32.mrf.mxu3 }
 0x1e1   : > { %v4163_v60 = vadd.f32 %v2190_v45, %v1925_v26  ;;  %v2409_v45 = vadd.f32 %v2408_v47, %v2407_v52 }
 0x1e2   : > { %v2175_v55 = vpop.f32.mrf.mxu2 }
 0x1e3   : > { %v2225_v41 = vadd.f32 %v2175_v55, %v1910_v40  ;;  %2264 = vst.msk [vmem:[%s4026_s30 + $0xd0] sm:$0xff] %vm2237_vm0, %v4163_v60  ;;  %v1687_v55 = vpop.f32.mrf.mxu0  ;;  %v2321_v54 = vsel %vm2237_vm0, %v4163_v60, 0.0 }
 0x1e5   : > { %2258 = vst.msk [vmem:[%s4026_s30 + $0xa0] sm:$0xff] %vm2237_vm0, %v2225_v41  ;;  %v2361_v51 = vmul.f32 %v2225_v41, %v2225_v41  ;;  %v2309_v26 = vsel %vm2237_vm0, %v2225_v41, 0.0  ;;  %v1917_v41 = vadd.f32 %v1916_v44, %v1687_v55 }
 0x1e6   : > { %v2310_v25 = vadd.f32 %v2309_v26, %v2308_v35 }
 0x1e7   : > { %v2412_v42 = vsel %vm2237_vm0, %v2361_v51, 0.0  ;;  %v1937_v51 = vadd.f32 %v4141_v8, %v4105_v30 }
 0x1e8   : > { %v2192_v20 = vpop.f32.mrf.mxu3 }
 0x1e9   : > { %v4176_v34 = vadd.f32 %v2192_v20, %v1927_v17  ;;  %v2411_v17 = vadd.f32 %v2410_v9, %v2409_v45 }
 0x1ea   : > { %v2177_v19 = vpop.f32.mrf.mxu2 }
 0x1eb   : > { %v2226_v39 = vadd.f32 %v2177_v19, %v1912_v6  ;;  %2265 = vst.msk [vmem:[%s4026_s30 + $0xd8] sm:$0xff] %vm2237_vm0, %v4176_v34  ;;  %v2413_v20 = vadd.f32 %v2412_v42, %v2411_v17  ;;  %v2368_v57 = vmul.f32 %v4176_v34, %v4176_v34 }
 0x1ed   : > { %2259 = vst.msk [vmem:[%s4026_s30 + $0xa8] sm:$0xff] %vm2237_vm0, %v2226_v39  ;;  %v2362_v40 = vmul.f32 %v2226_v39, %v2226_v39  ;;  %v2311_v16 = vsel %vm2237_vm0, %v2226_v39, 0.0  ;;  %v2426_v47 = vsel %vm2237_vm0, %v2368_v57, 0.0 }
 0x1ee   : > { %v2312_v5 = vadd.f32 %v2311_v16, %v2310_v25 }
 0x1ef   : > { %v2414_v63 = vsel %vm2237_vm0, %v2362_v40, 0.0 }
 0x1f0   : > { %v2195_v1 = vpop.f32.mrf.mxu3  ;;  %v2415_v39 = vadd.f32 %v2414_v63, %v2413_v20 }
 0x1f1   : > { %v4194_v10 = vadd.f32 %v2195_v1, %v1930_v59  ;;  %v2367_v59 = vmul.f32 %v4163_v60, %v4163_v60  ;;  %v2323_v1 = vsel %vm2237_vm0, %v4176_v34, 0.0 }
 0x1f2   : > { %v2180_v4 = vpop.f32.mrf.mxu2 }
 0x1f3   : > { %v2227_v58 = vadd.f32 %v2180_v4, %v1915_v22  ;;  %2266 = vst.msk [vmem:[%s4026_s30 + $0xe0] sm:$0xff] %vm2237_vm0, %v4194_v10  ;;  %v2424_v50 = vsel %vm2237_vm0, %v2367_v59, 0.0  ;;  %v2369_v31 = vmul.f32 %v4194_v10, %v4194_v10  ;;  %v2325_v60 = vsel %vm2237_vm0, %v4194_v10, 0.0 }
 0x1f5   : > { %2260 = vst.msk [vmem:[%s4026_s30 + $0xb0] sm:$0xff] %vm2237_vm0, %v2227_v58  ;;  %v2363_v24 = vmul.f32 %v2227_v58, %v2227_v58  ;;  %v2313_v0 = vsel %vm2237_vm0, %v2227_v58, 0.0  ;;  %v2428_v12 = vsel %vm2237_vm0, %v2369_v31, 0.0 }
 0x1f6   : > { %v2314_v48 = vadd.f32 %v2313_v0, %v2312_v5 }
 0x1f7   : > { %v2416_v61 = vsel %vm2237_vm0, %v2363_v24, 0.0 }
 0x1f8   : > { %v2197_v6 = vpop.f32.mrf.mxu3  ;;  %v2417_v56 = vadd.f32 %v2416_v61, %v2415_v39 }
 0x1f9   : > { %v2234_v36 = vadd.f32 %v2197_v6, %v1932_v21 }
 0x1fa   : > { %v2182_v19 = vpop.f32.mrf.mxu2 }
 0x1fb   : > { %v2228_v49 = vadd.f32 %v2182_v19, %v1917_v41  ;;  %2267 = vst.msk [vmem:[%s4026_s30 + $0xe8] sm:$0xff] %vm2237_vm0, %v2234_v36  ;;  %v2370_v37 = vmul.f32 %v2234_v36, %v2234_v36  ;;  %v2327_v34 = vsel %vm2237_vm0, %v2234_v36, 0.0 }
 0x1fd   : > { %2261 = vst.msk [vmem:[%s4026_s30 + $0xb8] sm:$0xff] %vm2237_vm0, %v2228_v49  ;;  %v2315_v27 = vsel %vm2237_vm0, %v2228_v49, 0.0  ;;  %v2364_v7 = vmul.f32 %v2228_v49, %v2228_v49  ;;  %v2430_v55 = vsel %vm2237_vm0, %v2370_v37, 0.0 }
 0x1fe   : > { %v2316_v32 = vadd.f32 %v2315_v27, %v2314_v48 }
 0x1ff   : > { %v2418_v53 = vsel %vm2237_vm0, %v2364_v7, 0.0 }
 0x200   : > { %v2318_v13 = vadd.f32 %v2317_v43, %v2316_v32  ;;  %v2419_v28 = vadd.f32 %v2418_v53, %v2417_v56  ;;  %v2200_v23 = vpop.f32.mrf.mxu3 }
 0x201   : > { %v2235_v62 = vadd.f32 %v2200_v23, %v1935_v3 }
 0x202   : > { %v2320_v11 = vadd.f32 %v2319_v14, %v2318_v13  ;;  %v2421_v46 = vadd.f32 %v2420_v38, %v2419_v28 }
 0x203   : > { %2268 = vst.msk [vmem:[%s4026_s30 + $0xf0] sm:$0xff] %vm2237_vm0, %v2235_v62  ;;  %v2371_v9 = vmul.f32 %v2235_v62, %v2235_v62  ;;  %v2329_v10 = vsel %vm2237_vm0, %v2235_v62, 0.0 }
 0x204   : > { %v2423_v15 = vadd.f32 %v2422_v2, %v2421_v46  ;;  %v2322_v22 = vadd.f32 %v2321_v54, %v2320_v11 }
 0x205   : > { %v2432_v24 = vsel %vm2237_vm0, %v2371_v9, 0.0 }
 0x206   : > { %v2324_v33 = vadd.f32 %v2323_v1, %v2322_v22  ;;  %v2425_v4 = vadd.f32 %v2424_v50, %v2423_v15 }
 0x208   : > { %v2326_v58 = vadd.f32 %v2325_v60, %v2324_v33  ;;  %v2427_v52 = vadd.f32 %v2426_v47, %v2425_v4  ;;  %v2202_v26 = vpop.f32.mrf.mxu3 }
 0x209   : > { %v2236_v35 = vadd.f32 %v2202_v26, %v1937_v51 }
 0x20a   : > { %v2328_v40 = vadd.f32 %v2327_v34, %v2326_v58  ;;  %v2429_v45 = vadd.f32 %v2428_v12, %v2427_v52 }
 0x20b   : > { %2269 = vst.msk [vmem:[%s4026_s30 + $0xf8] sm:$0xff] %vm2237_vm0, %v2236_v35  ;;  %v2331_v30 = vsel %vm2237_vm0, %v2236_v35, 0.0  ;;  %v2372_v8 = vmul.f32 %v2236_v35, %v2236_v35 }
 0x20c   : > { %v2431_v42 = vadd.f32 %v2430_v55, %v2429_v45  ;;  %v2330_v16 = vadd.f32 %v2329_v10, %v2328_v40 }
 0x20d   : > { %v2434_v17 = vsel %vm2237_vm0, %v2372_v8, 0.0 }
 0x20e   : > { %v2433_v21 = vadd.f32 %v2432_v24, %v2431_v42  ;;  %v2332_v44 = vadd.f32 %v2331_v30, %v2330_v16 }
 0x210   : > { %v2333_v25 = vrot.slane %v2332_v44, 4  ;;  %v2435_v41 = vadd.f32 %v2434_v17, %v2433_v21 }
 0x212   : > { %v2334_v63 = vadd.f32 %v2333_v25, %v2332_v44  ;;  %v2436_v0 = vrot.slane %v2435_v41, 4 }
 0x214   : > { %v2335_v6 = vrot.slane %v2334_v63, 2  ;;  %v2437_v20 = vadd.f32 %v2436_v0, %v2435_v41 }
 0x216   : > { %v2336_v5 = vadd.f32 %v2335_v6, %v2334_v63  ;;  %v2438_v19 = vrot.slane %v2437_v20, 2 }
 0x218   : > { %v2337_v36 = vrot.slane %v2336_v5, 1  ;;  %v2439_v61 = vadd.f32 %v2438_v19, %v2437_v20 }
 0x21a   : > { %v2338_v49 = vadd.f32 %v2337_v36, %v2336_v5  ;;  %v2440_v39 = vrot.slane %v2439_v61, 1 }
 0x21c   : > { %2340 = vst.msk [vmem:[%s265_s9] sm:$0x1] %vm477_vm3, %v2338_v49  ;;  %v2441_v48 = vadd.f32 %v2440_v39, %v2439_v61 }
 0x21e   : > { %2442 = vst.msk [vmem:[%s268_s12] sm:$0x1] %vm477_vm3, %v2441_v48 }
 0x21f PF: > { %s17_s21 = sadd.s32 1, %s2976_s21  }
 0x220   : > { %p14_p4 = scmp.ge.s32.totalorder %s17_s21, 4  }
 0x222   :  { %16 = sbr.rel (!%p14_p4) target bundleno = 1 (0x1), region = 95 }

// kernel: basic_block_forward.3
= control target key start
LH: loop header
LB: loop body
LE: loop exit
PB: predicated region body
PF: predicated region fallthrough
CT: control target
= control target key end

     0   :  { %s2765_s15 = smov 0   ;;  %s3941_s0 = inlined_call_operand.vmem [shape: f32[2,16,16,8], index: 0, kind: input, shape index: {}]   ;;  %s3942_s1 = inlined_call_operand.vmem [shape: bf16[3,24,8], index: 1, kind: input, shape index: {}]   ;;  %s3943_s2 = inlined_call_operand.vmem [shape: bf16[2,16,16,8], index: 2, kind: output, shape index: {0}]   ;;  %s3944_s3 = inlined_call_operand.vmem [shape: f32[2,1,8], index: 3, kind: output, shape index: {1}]   ;;  %s3945_s4 = inlined_call_operand.vmem [shape: f32[2,1,8], index: 4, kind: output, shape index: {2}]  }
   0x1 LB: > { %s2390_s16 = sadd.s32 4294967295, %s2735_s15   ;;  %p2394_p0 = scmp.ge.s32.totalorder %s2735_s15, 1  ;;  %s2735_s15 = sphi %s2765_s15, %s15_s15  }
   0x2   : > { %p167_p1 = scmp.lt.s32.totalorder %s2735_s15, 3 }
   0x4   : > { %p168_p2 = pnand %p2394_p0, %p167_p1 }
   0x5   : > { %p199_p3 = scmp.lt.s32.totalorder (!%p168_p2), %s2390_s16, 1  ;;  %s2737_s21 = smov (!%p168_p2), 8  }
   0x6   : > { %171 = sbr.rel (%p168_p2) target bundleno = 535 (0x217), region = 28  ;;  %s2738_s22 = smov (!%p168_p2), 16  }
   0xb   : > { %s3965_s16 = smov (!%p199_p3, %s2390_s16), 1  ;;  %vm908_vm0 = vsmask.f32 3328  ;;  %vm909_vm1 = vsmask.f32 7440  ;;  %vm287_vm3 = vcmask 57344  }
   0xc   : > { %s2659_s17 = sshll.u32 %s3965_s16, 8  ;;  %vm2815_vm2 = vmor %vm908_vm0, %vm909_vm1  ;;  %vm288_vm4 = vsmask.f32 256  ;;  %vm679_vm6 = vcmask 60416   ;;  %vm680_vm7 = vsmask.f32 7938 }
   0xd   : > { %s2779_s20 = scalar_lea.vmem %s3941_s0, %s2659_s17  ;;  %vm3016_vm5 = vmand %vm287_vm3, %vm288_vm4  ;;  %vm338_vm9 = vcmask 191619   ;;  %vm339_vm10 = vsmask.f32 7950  ;;  %vm389_vm12 = vsmask.f32 4368  ;;  %vm1427_vm14 = vcmask 1043456   ;;  %s211_s17 = scalar_lea.vmem %s3944_s3, %s3965_s16 }
   0xe   : > { %v219_v0 = vld [vmem:[%s2779_s20 + $0x18] sm:$0xff]  ;;  %v218_v1 = vld [vmem:[%s2779_s20 + $0x10] sm:$0xff]  ;;  %v217_v2 = vld [vmem:[%s2779_s20 + $0x8] sm:$0xff]  ;;  %vm280_vm15 = vcmask 191488   ;;  %vm875_vm1 = vcmask 126016   ;;  %s2660_s9 = sshll.u32 %s3965_s16, 7 }
   0xf   : > { %v251_v3 = vpack.c.bf16 %v219_v0, %v219_v0  ;;  %v250_v4 = vpack.c.bf16 %v218_v1, %v218_v1  ;;  %v249_v5 = vpack.c.bf16 %v217_v2, %v217_v2  ;;  %v216_v6 = vld [vmem:[%s2779_s20] sm:$0xff]  ;;  %v241_v20 = vld [vmem:[%s2779_s20 + $0xc8] sm:$0xff]  ;;  %v222_v44 = vld [vmem:[%s2779_s20 + $0x30] sm:$0xff]  ;;  %s3643_s12 = scalar_lea.vmem %s3943_s2, %s2660_s9 }
  0x10   : > { %v248_v7 = vpack.c.bf16 %v216_v6, %v216_v6  ;;  %v221_v24 = vld [vmem:[%s2779_s20 + $0x28] sm:$0xff]  ;;  %v2801_v32 = vpack.c.bf16 %v241_v20, %v241_v20  ;;  %v240_v42 = vld [vmem:[%s2779_s20 + $0xc0] sm:$0xff]  ;;  %v2826_v53 = vpack.c.bf16 %v222_v44, %v222_v44  ;;  %v242_v54 = vld [vmem:[%s2779_s20 + $0xd0] sm:$0xff] }
  0x11   : > { %785 = vrot.lane.b32.xlu0 %v251_v3, %s2737_s21  ;;  %783 = vrot.lane.b32.xlu1 %v250_v4, %s2737_s21  ;;  %v408_v8 = vshrl.u32 %v250_v4, 16  ;;  %v411_v9 = vshll.u32 %v250_v4, 16  ;;  %v416_v10 = vshrl.u32 %v251_v3, 16  ;;  %v419_v11 = vshll.u32 %v251_v3, 16  ;;  %v220_v48 = vld [vmem:[%s2779_s20 + $0x20] sm:$0xff]  ;;  %v243_v62 = vld [vmem:[%s2779_s20 + $0xd8] sm:$0xff]  ;;  %vm3045_vm8 = vmand %vm679_vm6, %vm680_vm7 }
  0x12   : > { %v400_v12 = vshrl.u32 %v249_v5, 16  ;;  %v403_v13 = vshll.u32 %v249_v5, 16  ;;  %v392_v14 = vshrl.u32 %v248_v7, 16  ;;  %v395_v15 = vshll.u32 %v248_v7, 16  ;;  %779 = vrot.lane.b32.xlu2 %v248_v7, %s2737_s21  ;;  %vm3057_vm11 = vmand %vm338_vm9, %vm339_vm10 }
  0x13   : > { %v2788_v16 = vrot.slane %v408_v8, 7  ;;  %v418_v17 = vrot.slane %v416_v10, 7  ;;  %v924_v18 = vrot.slane %v419_v11, 5  ;;  %v926_v19 = vrot.slane %v416_v10, 4  ;;  %vm3078_vm13 = vmor %vm288_vm4, %vm389_vm12 }
  0x14   : > { %v915_v21 = vrot.slane %v403_v13, 5  ;;  %v402_v22 = vrot.slane %v400_v12, 7  ;;  %v911_v23 = vrot.slane %v392_v14, 4  ;;  %v917_v28 = vrot.slane %v400_v12, 4 }
  0x15   : > { %v2793_v25 = vor.u32 %v411_v9, %v2788_v16  ;;  %v2795_v26 = vor.u32 %v419_v11, %v418_v17  ;;  %v927_v27 = vor.u32 %v926_v19, %v924_v18  ;;  %v912_v30 = vrot.slane %v395_v15, 5 }
  0x16   : > { %v2797_v29 = vor.u32 %v403_v13, %v402_v22  ;;  %v2799_v31 = vrot.slane %v392_v14, 7  ;;  %v2803_v34 = vpack.c.bf16 %v221_v24, %v221_v24  ;;  %v918_v37 = vor.u32 %v917_v28, %v915_v21 }
  0x17   : > { %v928_v33 = vrot.slane %v927_v27, 4  ;;  %v913_v35 = vor.u32 %v912_v30, %v911_v23  ;;  %v592_v39 = vshrl.u32 %v2801_v32, 16  ;;  %v920_v40 = vrot.slane %v408_v8, 4 }
  0x18   : > { %v2806_v36 = vor.u32 %v395_v15, %v2799_v31  ;;  %v921_v41 = vrot.slane %v411_v9, 5  ;;  %v595_v46 = vshll.u32 %v2801_v32, 16  ;;  %v919_v47 = vrot.slane %v918_v37, 4 }
  0x19   : > { %1061 = vrot.lane.b32.xlu1 %v928_v33, %s2738_s22  ;;  %781 = vrot.lane.b32.xlu0 %v249_v5, %s2737_s21  ;;  %v914_v38 = vrot.slane %v913_v35, 4  ;;  %v594_v45 = vrot.slane %v592_v39, 7  ;;  %v272_v50 = vpack.c.bf16 %v240_v42, %v240_v42  ;;  %v435_v55 = vshll.u32 %v2803_v34, 16  ;;  %v225_v42 = vld [vmem:[%s2779_s20 + $0x48] sm:$0xff] }
  0x1a   : > { %789 = vrot.lane.b32.xlu2 %v2803_v34, %s2737_s21  ;;  %v922_v49 = vor.u32 %v921_v41, %v920_v40  ;;  %v2830_v58 = vpack.c.bf16 %v220_v48, %v220_v48  ;;  %v432_v59 = vshrl.u32 %v2803_v34, 16  ;;  %v440_v60 = vshrl.u32 %v2826_v53, 16  ;;  %v223_v40 = vld [vmem:[%s2779_s20 + $0x38] sm:$0xff]  ;;  %v1252_v34 = vld [vmem:[%s3942_s1 + $0x8] sm:$0xf] }
  0x1b   : > { %v916_v51 = vsel %vm2815_vm2, %v914_v38, %v915_v21  ;;  %v2824_v52 = vor.u32 %v595_v46, %v594_v45  ;;  %v584_v57 = vshrl.u32 %v272_v50, 16  ;;  %v2834_v61 = vpack.c.bf16 %v242_v54, %v242_v54  ;;  %v244_v45 = vld [vmem:[%s2779_s20 + $0xe0] sm:$0xff] }
  0x1c   : > { %v923_v56 = vrot.slane %v922_v49, 4  ;;  %v587_v1 = vshll.u32 %v272_v50, 16  ;;  %v424_v2 = vshrl.u32 %v2830_v58, 16  ;;  %v2847_v3 = vrot.slane %v440_v60, 7  ;;  %v224_v54 = vld [vmem:[%s2779_s20 + $0x40] sm:$0xff] }
  0x1d   : > { %v2841_v0 = vrot.slane %v584_v57, 7  ;;  %v443_v4 = vshll.u32 %v2826_v53, 16  ;;  %v600_v5 = vshrl.u32 %v2834_v61, 16  ;;  %v3948_v6 = vshll.u32 %v2830_v58, 16 }
  0x1e   : > { %v925_v63 = vsel %vm2815_vm2, %v923_v56, %v924_v18  ;;  %v933_v7 = vrot.slane %v435_v55, 5  ;;  %v2857_v9 = vpack.c.bf16 %v243_v62, %v243_v62  ;;  %v935_v10 = vrot.slane %v432_v59, 4 }
  0x1f   : > { %v2855_v8 = vor.u32 %v587_v1, %v2841_v0  ;;  %v2862_v11 = vor.u32 %v443_v4, %v2847_v3  ;;  %v2866_v12 = vrot.slane %v600_v5, 7  ;;  %v603_v13 = vshll.u32 %v2834_v61, 16 }
  0x20   : > { %v1023_v14 = vrot.slane %v595_v46, 5  ;;  %v1025_v15 = vrot.slane %v592_v39, 4  ;;  %v608_v17 = vshrl.u32 %v2857_v9, 16  ;;  %v929_v19 = vrot.slane %v424_v2, 4 }
  0x21   : > { %1057 = vrot.lane.b32.xlu0 %v919_v47, %s2738_s22  ;;  %1055 = vrot.lane.b32.xlu1 %v916_v51, %s2738_s22  ;;  %v2871_v18 = vor.u32 %v603_v13, %v2866_v12  ;;  %v611_v21 = vshll.u32 %v2857_v9, 16  ;;  %v936_v22 = vor.u32 %v935_v10, %v933_v7  ;;  %v930_v23 = vrot.slane %v3948_v6, 5 }
  0x22   : > { %1059 = vrot.lane.b32.xlu2 %v925_v63, %s2738_s22  ;;  %v610_v20 = vrot.slane %v608_v17, 7  ;;  %v1026_v24 = vor.u32 %v1025_v15, %v1023_v14  ;;  %v1019_v27 = vrot.slane %v584_v57, 4  ;;  %v1020_v28 = vrot.slane %v587_v1, 5 }
  0x23   : > { %v931_v33 = vor.u32 %v930_v23, %v929_v19  ;;  %v937_v37 = vrot.slane %v936_v22, 4  ;;  %v255_v41 = vpack.c.bf16 %v223_v40, %v223_v40  ;;  %v2893_v46 = vpack.c.bf16 %v244_v45, %v244_v45  ;;  %v227_v45 = vld [vmem:[%s2779_s20 + $0x58] sm:$0xff] }
  0x24   : > { %v2882_v30 = vor.u32 %v611_v21, %v610_v20  ;;  %v1027_v38 = vrot.slane %v1026_v24, 4  ;;  %v1021_v39 = vor.u32 %v1020_v28, %v1019_v27  ;;  %v2895_v48 = vpack.c.bf16 %v225_v42, %v225_v42 }
  0x25   : > { %v932_v35 = vrot.slane %v931_v33, 4  ;;  %v448_v47 = vshrl.u32 %v255_v41, 16  ;;  %v451_v49 = vshll.u32 %v255_v41, 16  ;;  %v619_v57 = vshll.u32 %v2893_v46, 16 }
  0x26   : > { %v1022_v44 = vrot.slane %v1021_v39, 4  ;;  %v2906_v63 = vpack.c.bf16 %v224_v54, %v224_v54  ;;  %v464_v1 = vshrl.u32 %v2895_v48, 16  ;;  %v938_v15 = vrot.slane %v440_v60, 4 }
  0x27   : > { %v944_v62 = vrot.slane %v448_v47, 4  ;;  %v467_v20 = vshll.u32 %v2895_v48, 16  ;;  %v450_v22 = vrot.slane %v448_v47, 7  ;;  %v939_v23 = vrot.slane %v443_v4, 5 }
  0x28   : > { %v1024_v51 = vsel %vm2815_vm2, %v1022_v44, %v1023_v14  ;;  %v456_v14 = vshrl.u32 %v2906_v63, 16  ;;  %v466_v19 = vrot.slane %v464_v1, 7  ;;  %v459_v28 = vshll.u32 %v2906_v63, 16 }
  0x29   : > { %829 = vrot.lane.b32.xlu0 %v2801_v32, %s2737_s21  ;;  %787 = vrot.lane.b32.xlu1 %v2830_v58, %s2737_s21  ;;  %v934_v32 = vsel %vm2815_vm2, %v932_v35, %v933_v7  ;;  %v942_v7 = vrot.slane %v451_v49, 5  ;;  %v2927_v35 = vor.u32 %v451_v49, %v450_v22  ;;  %v1028_v60 = vrot.slane %v600_v5, 4  ;;  %v247_v49 = vld [vmem:[%s2779_s20 + $0xf8] sm:$0xff] }
  0x2a   : > { %827 = vrot.lane.b32.xlu2 %v272_v50, %s2737_s21  ;;  %v616_v50 = vshrl.u32 %v2893_v46, 16  ;;  %v2922_v27 = vrot.slane %v456_v14, 7  ;;  %v2925_v33 = vor.u32 %v467_v20, %v466_v19  ;;  %v1032_v4 = vrot.slane %v611_v21, 5  ;;  %v245_v21 = vld [vmem:[%s2779_s20 + $0xe8] sm:$0xff] }
  0x2b   : > { %v945_v24 = vor.u32 %v944_v62, %v942_v7  ;;  %v940_v39 = vor.u32 %v939_v23, %v938_v15  ;;  %v953_v15 = vrot.slane %v464_v1, 4  ;;  %v2958_v19 = vpack.c.bf16 %v247_v49, %v247_v49 }
  0x2c   : > { %v2903_v56 = vrot.slane %v616_v50, 7  ;;  %vm1378_vm4 = vcmask 195584   ;;  %vm1151_vm7 = vcmask 191616  }
  0x2d   : > { %v946_v40 = vrot.slane %v945_v24, 4  ;;  %v941_v5 = vrot.slane %v940_v39, 4  ;;  %vm3299_vm9 = vmand %vm1151_vm7, %vm908_vm0  ;;  %vm2111_vm0 = vcmask 64512  }
  0x2e   : > { %v2912_v10 = vor.u32 %v619_v57, %v2903_v56 }
  0x31   : > { %1065 = vrot.lane.b32.xlu0 %v937_v37, %s2738_s22  ;;  %1105 = vrot.lane.b32.xlu1 %v1027_v38, %s2738_s22  ;;  %v2932_v37 = vor.u32 %v459_v28, %v2922_v27  ;;  %v1029_v38 = vrot.slane %v603_v13, 5  ;;  %v943_v13 = vsel %vm2815_vm2, %v941_v5, %v942_v7  ;;  %v2955_v7 = vrot.slane %v467_v20, 5 }
  0x32   : > { %1063 = vrot.lane.b32.xlu2 %v934_v32, %s2738_s22  ;;  %v947_v5 = vrot.slane %v456_v14, 4 }
  0x33   : > { %v1030_v32 = vor.u32 %v1029_v38, %v1028_v60  ;;  %v246_v38 = vld [vmem:[%s2779_s20 + $0xf0] sm:$0xff] }
  0x35   : > { %v1031_v42 = vrot.slane %v1030_v32, 4  ;;  %v954_v32 = vor.u32 %v953_v15, %v2955_v7 }
  0x37   : > { %v1033_v47 = vsel %vm2815_vm2, %v1031_v42, %v1032_v4  ;;  %v1037_v42 = vrot.slane %v616_v50, 4 }
  0x39   : > { %1103 = vrot.lane.b32.xlu0 %v1024_v51, %s2738_s22  ;;  %793 = vrot.lane.b32.xlu1 %v255_v41, %s2737_s21  ;;  %v2949_v51 = vpack.c.bf16 %v227_v45, %v227_v45  ;;  %v643_v45 = vshll.u32 %v2958_v19, 16 }
  0x3a   : > { %833 = vrot.lane.b32.xlu2 %v2857_v9, %s2737_s21  ;;  %v1034_v9 = vrot.slane %v608_v17, 4  ;;  %v226_v17 = vld [vmem:[%s2779_s20 + $0x50] sm:$0xff] }
  0x3b   : > { %v480_v62 = vshrl.u32 %v2949_v51, 16 }
  0x3c   : > { %v1035_v41 = vor.u32 %v1034_v9, %v1032_v4  ;;  %v483_v4 = vshll.u32 %v2949_v51, 16 }
  0x3d   : > { %v482_v60 = vrot.slane %v480_v62, 7 }
  0x3e   : > { %v1036_v44 = vrot.slane %v1035_v41, 4  ;;  %v640_v41 = vshrl.u32 %v2958_v19, 16 }
  0x3f   : > { %v2975_v20 = vor.u32 %v483_v4, %v482_v60 }
  0x41   : > { %791 = vrot.lane.b32.xlu0 %v2826_v53, %s2737_s21  ;;  %831 = vrot.lane.b32.xlu1 %v2834_v61, %s2737_s21  ;;  %v2947_v53 = vpack.c.bf16 %v226_v17, %v226_v17  ;;  %v277_v61 = vpack.c.bf16 %v245_v21, %v245_v21  ;;  %v642_v17 = vrot.slane %v640_v41, 7 }
  0x42   : > { %1069 = vrot.lane.b32.xlu2 %v946_v40, %s2738_s22  ;;  %v2978_v40 = vpack.c.bf16 %v246_v38, %v246_v38  ;;  %v290_v38 = vld [vmem:[#allocation2 + $0x8] sm:$0x1] }
  0x43   : > { %v472_v54 = vshrl.u32 %v2947_v53, 16  ;;  %v624_v22 = vshrl.u32 %v277_v61, 16  ;;  %v475_v24 = vshll.u32 %v2947_v53, 16  ;;  %v627_v9 = vshll.u32 %v277_v61, 16 }
  0x44   : > { %v632_v21 = vshrl.u32 %v2978_v40, 16 }
  0x45   : > { %v2962_v23 = vrot.slane %v472_v54, 7  ;;  %v1043_v39 = vrot.slane %v624_v22, 4  ;;  %v626_v14 = vrot.slane %v624_v22, 7 }
  0x46   : > { %v2997_v49 = vrot.slane %v632_v21, 7 }
  0x47   : > { %v2971_v1 = vor.u32 %v475_v24, %v2962_v23 }
  0x49   : > { %1109 = vrot.lane.b32.xlu0 %v1036_v44, %s2738_s22  ;;  %1067 = vrot.lane.b32.xlu1 %v943_v13, %s2738_s22  ;;  %v1041_v44 = vrot.slane %v627_v9, 5  ;;  %v1038_v13 = vrot.slane %v619_v57, 5  ;;  %v3002_v57 = vor.u32 %v643_v45, %v642_v17 }
  0x4a   : > { %1107 = vrot.lane.b32.xlu2 %v1033_v47, %s2738_s22  ;;  %v948_v47 = vrot.slane %v459_v28, 5 }
  0x4b   : > { %v1044_v50 = vor.u32 %v1043_v39, %v1041_v44  ;;  %v1039_v22 = vor.u32 %v1038_v13, %v1037_v42 }
  0x4c   : > { %v949_v15 = vor.u32 %v948_v47, %v947_v5  ;;  %v228_v5 = vld [vmem:[%s2779_s20 + $0x60] sm:$0xff]  ;;  %v434_v47 = vrot.slane %v432_v59, 7 }
  0x4d   : > { %v1045_v60 = vrot.slane %v1044_v50, 4  ;;  %v1040_v17 = vrot.slane %v1039_v22, 4  ;;  %v3024_v42 = vpack.c.bf16 %v228_v5, %v228_v5 }
  0x4e   : > { %v950_v39 = vrot.slane %v949_v15, 4 }
  0x4f   : > { %v3946_v50 = vshrl.u32 %v3024_v42, 16  ;;  %v1042_v22 = vsel %vm2815_vm2, %v1040_v17, %v1041_v44  ;;  %v344_v17 = vld [vmem:[#allocation2 + $0x14] sm:$0x8] }
  0x50   : > { %v952_v15 = vsel %vm2815_vm2, %v950_v39, %v2955_v7  ;;  %v398_v7 = vrot.slane %v2799_v31, 4  ;;  %v230_v31 = vld [vmem:[%s2779_s20 + $0x70] sm:$0xff] }
  0x51   : > { %797 = vrot.lane.b32.xlu0 %v2895_v48, %s2737_s21  ;;  %837 = vrot.lane.b32.xlu1 %v277_v61, %s2737_s21  ;;  %v635_v48 = vshll.u32 %v2978_v40, 16  ;;  %v3004_v61 = vor.u32 %v627_v9, %v626_v14  ;;  %v3030_v14 = vrot.slane %v424_v2, 7  ;;  %v3947_v2 = vshll.u32 %v3024_v42, 16 }
  0x52   : > { %795 = vrot.lane.b32.xlu2 %v2906_v63, %s2737_s21  ;;  %v955_v63 = vrot.slane %v954_v32, 4  ;;  %v291_v32 = vsel %vm3016_vm5, 0, %v290_v38  ;;  %v239_v38 = vld [vmem:[%s2779_s20 + $0xb8] sm:$0xff]  ;;  %v3051_v59 = vrot.slane %v3946_v50, 7 }
  0x53   : > { %v3009_v28 = vor.u32 %v635_v48, %v2997_v49  ;;  %292 = vst [vmem:[#allocation2 + $0x8] sm:$0x1] %v291_v32  ;;  %v430_v44 = vrot.slane %v3030_v14, 4  ;;  %v3061_v5 = vpack.c.bf16 %v239_v38, %v239_v38 }
  0x59   : > { %835 = vrot.lane.b32.xlu0 %v2893_v46, %s2737_s21  ;;  %1073 = vrot.lane.b32.xlu1 %v955_v63, %s2738_s22  ;;  %v293_v46 = vld [vmem:[#allocation2 + $0x10] sm:$0x1]  ;;  %v414_v63 = vrot.slane %v2788_v16, 4 }
  0x5a   : > { %1113 = vrot.lane.b32.xlu2 %v1045_v60, %s2738_s22  ;;  %v294_v13 = vsel %vm3016_vm5, 0, %v293_v46  ;;  %v238_v60 = vld [vmem:[%s2779_s20 + $0xb0] sm:$0xff]  ;;  %v437_v46 = vor.u32 %v435_v55, %v434_v47  ;;  %v962_v55 = vrot.slane %v480_v62, 4  ;;  %v345_v47 = vsel %vm3057_vm11, 0, %v344_v17 }
  0x5b   : > { %295 = vst [vmem:[#allocation2 + $0x10] sm:$0x1] %v294_v13  ;;  %v3053_v16 = vpack.c.bf16 %v238_v60, %v238_v60  ;;  %v3069_v13 = vrot.slane %v483_v4, 5  ;;  %v3074_v60 = vor.u32 %v3947_v2, %v3051_v59  ;;  %v682_v4 = vld [vmem:[#allocation2 + $0x8] sm:$0xf]  ;;  %v3104_v17 = vrot.slane %v643_v45, 5 }
  0x5c   : > { %v683_v2 = vsel %vm3045_vm8, %v2806_v36, %v682_v4  ;;  %346 = vst [vmem:[#allocation2 + $0x14] sm:$0x8] %v345_v47  ;;  %v576_v36 = vshrl.u32 %v3061_v5, 16  ;;  %v347_v45 = vld [vmem:[#allocation2 + $0x1c] sm:$0x8] }
  0x5d   : > { %v568_v50 = vshrl.u32 %v3053_v16, 16  ;;  %v571_v62 = vshll.u32 %v3053_v16, 16  ;;  %684 = vst [vmem:[#allocation2 + $0x8] sm:$0xf] %v683_v2  ;;  %v438_v2 = vsel %vm3078_vm13, %v430_v44, %v437_v46  ;;  %v956_v44 = vrot.slane %v472_v54, 4 }
  0x5e   : > { %v963_v46 = vor.u32 %v962_v55, %v3069_v13  ;;  %v3153_v55 = vld [vmem:[%s3942_s1] sm:$0xff] }
  0x5f   : > { %v3099_v6 = vrot.slane %v568_v50, 7 }
  0x61   : > { %1071 = vrot.lane.b32.xlu0 %v952_v15, %s2738_s22  ;;  %1111 = vrot.lane.b32.xlu1 %v1042_v22, %s2738_s22  ;;  %v422_v15 = vsel %vm3078_vm13, %v414_v63, %v2795_v26  ;;  %v1605_v22 = vunpack.c.l.b16 %v1252_v34  ;;  %v1052_v34 = vrot.slane %v640_v41, 4  ;;  %v3115_v4 = vor.u32 %v571_v62, %v3099_v6 }
  0x62   : > { %801 = vrot.lane.b32.xlu2 %v2949_v51, %s2737_s21  ;;  %v687_v51 = vld [vmem:[#allocation2 + $0x10] sm:$0xf]  ;;  %690 = vst.msk [vmem:[#allocation2 + $0x14] sm:$0xf] %vm679_vm6, %v422_v15  ;;  %v578_v41 = vrot.slane %v576_v36, 7  ;;  %v1046_v15 = vrot.slane %v632_v21, 4 }
  0x63   : > { %v688_v26 = vsel %vm3045_vm8, %v2793_v25, %v687_v51  ;;  %v1607_v63 = vpack.c.b16 %v1605_v22, %v1605_v22  ;;  %v348_v25 = vsel %vm3057_vm11, 0, %v347_v45  ;;  %v579_v22 = vshll.u32 %v3061_v5, 16 }
  0x64   : > { %689 = vst [vmem:[#allocation2 + $0x10] sm:$0xf] %v688_v26  ;;  %v1047_v51 = vrot.slane %v635_v48, 5  ;;  %v957_v21 = vrot.slane %v475_v24, 5  ;;  %v1053_v54 = vor.u32 %v1052_v34, %v3104_v17  ;;  %v2572_v24 = vld [vmem:[%s3942_s1 + $0x20] sm:$0xf] }
  0x65   : > { %v3123_v47 = vsel %vm1427_vm14, %v1607_v63, 0  ;;  %349 = vst [vmem:[#allocation2 + $0x1c] sm:$0x8] %v348_v25  ;;  %v3139_v26 = vor.u32 %v579_v22, %v578_v41  ;;  %v341_v63 = vld [vmem:[#allocation2 + $0xc] sm:$0x8]  ;;  %v1871_v34 = vunpack.c.l.b16 %v2572_v24  ;;  %v2739_v25 = vmov 0  }
  0x66   : > { %1666 = vmatpush.bf16.msra.mxu1 %v3123_v47  ;;  %694 = vst.msk [vmem:[#allocation2 + $0x1c] sm:$0xf] %vm679_vm6, %v438_v2  ;;  %v342_v48 = vsel %vm3057_vm11, 0, %v341_v63  ;;  %v964_v41 = vrot.slane %v963_v46, 4  ;;  %v229_v63 = vld [vmem:[%s2779_s20 + $0x68] sm:$0xff] }
  0x67   : > { %343 = vst [vmem:[#allocation2 + $0xc] sm:$0x8] %v342_v48  ;;  %v261_v46 = vpack.c.bf16 %v229_v63, %v229_v63 }
  0x68   : > { %281 = vst.msk [vmem:[#allocation2] sm:$0xf] %vm280_vm15, %v2739_v25 }
  0x69   : > { %841 = vrot.lane.b32.xlu0 %v2958_v19, %s2737_s21  ;;  %799 = vrot.lane.b32.xlu1 %v2947_v53, %s2737_s21  ;;  %v958_v53 = vor.u32 %v957_v21, %v956_v44  ;;  %v406_v19 = vsel %vm3078_vm13, %v398_v7, %v2797_v29  ;;  %v1054_v44 = vrot.slane %v1053_v54, 4  ;;  %v1048_v21 = vor.u32 %v1047_v51, %v1046_v15  ;;  %v3188_v54 = vld [vmem:[%s3942_s1 + $0x18] sm:$0xff] }
  0x6a   : > { %839 = vrot.lane.b32.xlu2 %v2978_v40, %s2737_s21  ;;  %686 = vst.msk [vmem:[#allocation2 + $0xc] sm:$0xf] %vm679_vm6, %v406_v19  ;;  %1667 = vmatpush.bf16.msra.mxu1 %v3153_v55  ;;  %v1873_v40 = vpack.c.b16 %v1871_v34, %v1871_v34  ;;  %v3181_v15 = vpack.c.bf16 %v230_v31, %v230_v31  ;;  %v496_v24 = vshrl.u32 %v261_v46, 16  ;;  %v326_v19 = vld [vmem:[#allocation2 + $0x68] sm:$0x1] }
  0x6b   : > { %v959_v2 = vrot.slane %v958_v53, 4  ;;  %282 = vst.msk [vmem:[#allocation2 + $0x4] sm:$0xf] %vm280_vm15, %v2739_v25  ;;  %v1049_v51 = vrot.slane %v1048_v21, 4  ;;  %v296_v53 = vld [vmem:[#allocation2 + $0x18] sm:$0x1] }
  0x6c   : > { %v780_v45 = vpop.permute.xlu2 %779  ;;  %v3172_v29 = vsel %vm1427_vm14, %v1873_v40, 0  ;;  %284 = vst.msk [vmem:[#allocation2 + $0x88] sm:$0xf] %vm280_vm15, %v2739_v25  ;;  %v297_v34 = vsel %vm3016_vm5, 0, %v296_v53 }
  0x6d   : > { %876 = vst.msk [vmem:[#allocation2 + $0x8] sm:$0xf] %vm875_vm1, %v780_v45  ;;  %v961_v7 = vsel %vm2815_vm2, %v959_v2, %v3069_v13  ;;  %1932 = vmatpush.bf16.msra.mxu2 %v3172_v29  ;;  %v2401_v13 = vld [vmem:[%s3942_s1 + $0x14] sm:$0xf]  ;;  %v327_v45 = vsel %vm3016_vm5, 0, %v326_v19  ;;  %v1051_v21 = vsel %vm2815_vm2, %v1049_v51, %v3104_v17  ;;  %v3960_v51 = vshrl.u32 %v3024_v42, 16 }
  0x6e   : > { %285 = vst.msk [vmem:[#allocation2 + $0x8c] sm:$0xf] %vm280_vm15, %v2739_v25  ;;  %v1374_v48 = vunpack.c.l.b16 %v2401_v13  ;;  %v499_v25 = vshll.u32 %v261_v46, 16  ;;  %v507_v13 = vshll.u32 %v3181_v15, 16 }
  0x6f   : > { %298 = vst [vmem:[#allocation2 + $0x18] sm:$0x1] %v297_v34  ;;  %v965_v53 = vrot.slane %v3960_v51, 4 }
  0x70   : > { %v1376_v40 = vpack.c.b16 %v1374_v48, %v1374_v48  ;;  %v971_v48 = vrot.slane %v496_v24, 4  ;;  %328 = vst [vmem:[#allocation2 + $0x68] sm:$0x1] %v327_v45  ;;  %v3217_v19 = vrot.slane %v499_v25, 5  ;;  %v3961_v45 = vshll.u32 %v3024_v42, 16 }
  0x71   : > { %1077 = vrot.lane.b32.xlu0 %v964_v41, %s2738_s22  ;;  %1117 = vrot.lane.b32.xlu1 %v1054_v44, %s2738_s22  ;;  %v504_v41 = vshrl.u32 %v3181_v15, 16  ;;  %v590_v44 = vrot.slane %v2841_v0, 4  ;;  %v3959_v0 = vshll.u32 %v2830_v58, 16 }
  0x72   : > { %1075 = vrot.lane.b32.xlu2 %v961_v7, %s2738_s22  ;;  %1933 = vmatpush.bf16.msra.mxu2 %v3188_v54  ;;  %v2661_v63 = vld [vmem:[#allocation2] sm:$0xff]  ;;  %v1429_v31 = vsel %vm1427_vm14, %v1376_v40, 0  ;;  %v966_v58 = vrot.slane %v3961_v45, 5 }
  0x73   : > { %v3208_v7 = vrot.slane %v504_v41, 7  ;;  %2554 = vmatmul.msk.bf16.vlgmr.msra.gmra.mxu1 %vm1378_vm4, %v2661_v63  ;;  %1437 = vmatpush.bf16.msra.mxu0 %v1429_v31  ;;  %v429_v17 = vor.u32 %v3959_v0, %v3030_v14  ;;  %v498_v14 = vrot.slane %v496_v24, 7  ;;  %v598_v63 = vsel %vm3078_vm13, %v590_v44, %v2824_v52  ;;  %v2694_v0 = vld [vmem:[%s3942_s1 + $0xc] sm:$0xff] }
  0x74   : > { %v790_v2 = vpop.permute.xlu2 %789  ;;  %2712 = vmatpush.bf16.msra.mxu3 %v1429_v31  ;;  %v1010_v52 = vrot.slane %v568_v50, 4  ;;  %v1011_v44 = vrot.slane %v571_v62, 5 }
  0x75   : > { %881 = vst.msk [vmem:[#allocation2 + $0x1c] sm:$0xf] %vm875_vm1, %v790_v2  ;;  %v3222_v34 = vor.u32 %v507_v13, %v3208_v7  ;;  %v377_v2 = vld [vmem:[#allocation2 + $0x6c] sm:$0x8] }
  0x76   : > { %v378_v40 = vsel %vm3057_vm11, 0, %v377_v2  ;;  %v691_v24 = vld [vmem:[#allocation2 + $0x18] sm:$0xf]  ;;  %v967_v2 = vor.u32 %v966_v58, %v965_v53 }
  0x77   : > { %379 = vst [vmem:[#allocation2 + $0x6c] sm:$0x8] %v378_v40  ;;  %1438 = vmatpush.bf16.msra.mxu0 %v2694_v0  ;;  %v692_v51 = vsel %vm3045_vm8, %v429_v17, %v691_v24  ;;  %v731_v45 = vld [vmem:[#allocation2 + $0x68] sm:$0xf]  ;;  %v1012_v17 = vor.u32 %v1011_v44, %v1010_v52  ;;  %v232_v40 = vld [vmem:[%s2779_s20 + $0x80] sm:$0xff] }
  0x78   : > { %734 = vst.msk [vmem:[#allocation2 + $0x6c] sm:$0xf] %vm679_vm6, %v598_v63  ;;  %2713 = vmatpush.bf16.msra.mxu3 %v2694_v0  ;;  %v732_v62 = vsel %vm3045_vm8, %v2855_v8, %v731_v45 }
  0x79   : > { %1115 = vrot.lane.b32.xlu0 %v1051_v21, %s2738_s22  ;;  %805 = vrot.lane.b32.xlu1 %v261_v46, %s2737_s21  ;;  %v972_v46 = vor.u32 %v971_v48, %v3217_v19  ;;  %v3239_v21 = vor.u32 %v499_v25, %v498_v14  ;;  %v1014_v25 = vrot.slane %v579_v22, 5  ;;  %v1016_v48 = vrot.slane %v576_v36, 4  ;;  %693 = vst [vmem:[#allocation2 + $0x18] sm:$0xf] %v692_v51  ;;  %v233_v14 = vld [vmem:[%s2779_s20 + $0x88] sm:$0xff] }
  0x7a   : > { %825 = vrot.lane.b32.xlu2 %v3061_v5, %s2737_s21  ;;  %733 = vst [vmem:[#allocation2 + $0x68] sm:$0xf] %v732_v62  ;;  %v3258_v63 = vpack.c.bf16 %v233_v14, %v233_v14  ;;  %v3260_v22 = vpack.c.bf16 %v232_v40, %v232_v40  ;;  %v968_v36 = vrot.slane %v967_v2, 4  ;;  %v1013_v58 = vrot.slane %v1012_v17, 4  ;;  %v350_v17 = vld [vmem:[#allocation2 + $0x24] sm:$0x8] }
  0x7b   : > { %v973_v50 = vrot.slane %v972_v46, 4  ;;  %v1017_v5 = vor.u32 %v1016_v48, %v1014_v25  ;;  %v380_v40 = vld [vmem:[#allocation2 + $0x74] sm:$0x8] }
  0x7c   : > { %v1060_v31 = vpop.permute.xlu2 %1059  ;;  %2714 = vmatpush.bf16.msrb.mxu3 %v3123_v47  ;;  %v231_v47 = vld [vmem:[%s2779_s20 + $0x78] sm:$0xff]  ;;  %v528_v46 = vshrl.u32 %v3258_v63, 16  ;;  %v970_v24 = vsel %vm2815_vm2, %v968_v36, %v3217_v19  ;;  %v531_v44 = vshll.u32 %v3258_v63, 16  ;;  %v523_v48 = vshll.u32 %v3260_v22, 16 }
  0x7d   : > { %v263_v52 = vpack.c.bf16 %v231_v47, %v231_v47  ;;  %v1015_v45 = vsel %vm2815_vm2, %v1013_v58, %v1014_v25  ;;  %v446_v19 = vrot.slane %v2847_v3, 4  ;;  %v974_v3 = vrot.slane %v504_v41, 4  ;;  %v299_v25 = vld [vmem:[#allocation2 + $0x20] sm:$0x1] }
  0x7e   : > { %v300_v36 = vsel %vm3016_vm5, 0, %v299_v25 }
  0x7f   : > { %v515_v2 = vshll.u32 %v263_v52, 16  ;;  %301 = vst [vmem:[#allocation2 + $0x20] sm:$0x1] %v300_v36 }
  0x80   : > { %2715 = vmatpush.bf16.msrb.mxu3 %v3153_v55  ;;  %v530_v55 = vrot.slane %v528_v46, 7 }
  0x81   : > { %803 = vrot.lane.b32.xlu0 %v3024_v42, %s2737_s21  ;;  %823 = vrot.lane.b32.xlu1 %v3053_v16, %s2737_s21  ;;  %v520_v42 = vshrl.u32 %v3260_v22, 16  ;;  %v1018_v16 = vrot.slane %v1017_v5, 4  ;;  %v512_v5 = vshrl.u32 %v263_v52, 16  ;;  %v978_v58 = vrot.slane %v515_v2, 5 }
  0x82   : > { %1081 = vrot.lane.b32.xlu2 %v973_v50, %s2738_s22  ;;  %v606_v50 = vrot.slane %v2866_v12, 4  ;;  %v975_v12 = vrot.slane %v507_v13, 5 }
  0x83   : > { %v786_v8 = vpop.permute.xlu0 %785  ;;  %v784_v53 = vpop.permute.xlu1 %783  ;;  %v3280_v51 = vrot.slane %v520_v42, 7 }
  0x84   : > { %879 = vst.msk [vmem:[#allocation2 + $0x14] sm:$0xf] %vm875_vm1, %v786_v8  ;;  %v828_v0 = vpop.permute.xlu2 %827  ;;  %v976_v25 = vor.u32 %v975_v12, %v974_v3  ;;  %v983_v3 = vrot.slane %v520_v42, 4  ;;  %v984_v12 = vrot.slane %v523_v48, 5 }
  0x85   : > { %878 = vst.msk [vmem:[#allocation2 + $0x10] sm:$0xf] %vm875_vm1, %v784_v53  ;;  %v3293_v62 = vor.u32 %v523_v48, %v3280_v51 }
  0x86   : > { %1158 = vst.msk [vmem:[#allocation2 + $0x10] sm:$0xf] %vm1151_vm7, %v1060_v31  ;;  %v3290_v31 = vor.u32 %v531_v44, %v530_v55  ;;  %v980_v55 = vrot.slane %v512_v5, 4 }
  0x87   : > { %900 = vst.msk [vmem:[#allocation2 + $0x68] sm:$0xf] %vm875_vm1, %v828_v0  ;;  %v351_v0 = vsel %vm3057_vm11, 0, %v350_v17  ;;  %v381_v17 = vsel %vm3057_vm11, 0, %v380_v40  ;;  %v695_v40 = vld [vmem:[#allocation2 + $0x20] sm:$0xf] }
  0x88   : > { %352 = vst [vmem:[#allocation2 + $0x24] sm:$0x8] %v351_v0  ;;  %v981_v36 = vor.u32 %v980_v55, %v978_v58  ;;  %v696_v42 = vsel %vm3045_vm8, %v2862_v11, %v695_v40 }
  0x89   : > { %1101 = vrot.lane.b32.xlu0 %v1018_v16, %s2738_s22  ;;  %1079 = vrot.lane.b32.xlu1 %v970_v24, %s2738_s22  ;;  %v454_v16 = vsel %vm3078_vm13, %v446_v19, %v2927_v35  ;;  %v614_v24 = vsel %vm3078_vm13, %v606_v50, %v2882_v30  ;;  %v235_v35 = vld [vmem:[%s2779_s20 + $0x98] sm:$0xff]  ;;  %382 = vst [vmem:[#allocation2 + $0x74] sm:$0x8] %v381_v17  ;;  %v977_v30 = vrot.slane %v976_v25, 4  ;;  %v234_v25 = vld [vmem:[%s2779_s20 + $0x90] sm:$0xff] }
  0x8a   : > { %1099 = vrot.lane.b32.xlu2 %v1015_v45, %s2738_s22  ;;  %v329_v45 = vld [vmem:[#allocation2 + $0x70] sm:$0x1]  ;;  %698 = vst.msk [vmem:[#allocation2 + $0x24] sm:$0xf] %vm679_vm6, %v454_v16  ;;  %v982_v19 = vrot.slane %v981_v36, 4  ;;  %v3355_v36 = vpack.c.bf16 %v234_v25, %v234_v25 }
  0x8b   : > { %v1062_v47 = vpop.permute.xlu1 %1061  ;;  %v1159_v8 = vld [vmem:[#allocation2 + $0x14] sm:$0xf]  ;;  %v782_v53 = vpop.permute.xlu0 %781  ;;  %738 = vst.msk [vmem:[#allocation2 + $0x74] sm:$0xf] %vm679_vm6, %v614_v24  ;;  %v989_v24 = vrot.slane %v528_v46, 4  ;;  %v979_v55 = vsel %vm2815_vm2, %v977_v30, %v978_v58 }
  0x8c   : > { %v1160_v41 = vsel %vm3299_vm9, %v1062_v47, %v1159_v8  ;;  %877 = vst.msk [vmem:[#allocation2 + $0xc] sm:$0xf] %vm875_vm1, %v782_v53  ;;  %v3315_v13 = vpop.permute.xlu2 %1063  ;;  %v514_v47 = vrot.slane %v512_v5, 7  ;;  %v330_v8 = vsel %vm3016_vm5, 0, %v329_v45  ;;  %v3329_v53 = vpack.c.bf16 %v235_v35, %v235_v35  ;;  %v302_v30 = vld [vmem:[#allocation2 + $0x28] sm:$0x1] }
  0x8d   : > { %1161 = vst [vmem:[#allocation2 + $0x14] sm:$0xf] %v1160_v41  ;;  %v985_v45 = vor.u32 %v984_v12, %v983_v3  ;;  %v536_v58 = vshrl.u32 %v3355_v36, 16  ;;  %v539_v40 = vshll.u32 %v3355_v36, 16 }
  0x8e   : > { %v3335_v50 = vor.u32 %v515_v2, %v514_v47  ;;  %331 = vst [vmem:[#allocation2 + $0x70] sm:$0x1] %v330_v8  ;;  %v544_v48 = vshrl.u32 %v3329_v53, 16  ;;  %v987_v2 = vrot.slane %v531_v44, 5  ;;  %v547_v11 = vshll.u32 %v3329_v53, 16 }
  0x8f   : > { %697 = vst [vmem:[#allocation2 + $0x20] sm:$0xf] %v696_v42  ;;  %v462_v8 = vrot.slane %v2922_v27, 4  ;;  %v986_v35 = vrot.slane %v985_v45, 4  ;;  %v353_v42 = vld [vmem:[#allocation2 + $0x2c] sm:$0x8] }
  0x90   : > { %v546_v17 = vrot.slane %v544_v48, 7  ;;  %v990_v46 = vor.u32 %v989_v24, %v987_v2  ;;  %v622_v45 = vrot.slane %v2903_v56, 4 }
  0x91   : > { %809 = vrot.lane.b32.xlu0 %v263_v52, %s2737_s21  ;;  %807 = vrot.lane.b32.xlu1 %v3181_v15, %s2737_s21  ;;  %v470_v24 = vsel %vm3078_vm13, %v462_v8, %v2925_v33  ;;  %v383_v33 = vld [vmem:[#allocation2 + $0x7c] sm:$0x8] }
  0x92   : > { %1085 = vrot.lane.b32.xlu2 %v982_v19, %s2738_s22  ;;  %v3357_v47 = vor.u32 %v547_v11, %v546_v17  ;;  %v1163_v17 = vld [vmem:[#allocation2 + $0x1c] sm:$0xf]  ;;  %v384_v8 = vsel %vm3057_vm11, 0, %v383_v33 }
  0x93   : > { %v1058_v5 = vpop.permute.xlu0 %1057  ;;  %v1155_v0 = vld [vmem:[#allocation2 + $0xc] sm:$0xf]  ;;  %v1056_v41 = vpop.permute.xlu1 %1055  ;;  %385 = vst [vmem:[#allocation2 + $0x7c] sm:$0x8] %v384_v8  ;;  %v638_v8 = vrot.slane %v2997_v49, 4 }
  0x94   : > { %v1156_v52 = vsel %vm3299_vm9, %v1058_v5, %v1155_v0  ;;  %1152 = vst.msk [vmem:[#allocation2 + $0x8] sm:$0xf] %vm1151_vm7, %v1056_v41  ;;  %v2695_v15 = vld [vmem:[#allocation2 + $0x10] sm:$0xff]  ;;  %v834_v16 = vpop.permute.xlu2 %833 }
  0x95   : > { %1157 = vst [vmem:[#allocation2 + $0xc] sm:$0xf] %v1156_v52  ;;  %2641 = vmatmul.msk.bf16.vlgmr.msra.gmra.mxu2 %vm1378_vm4, %v2695_v15  ;;  %v735_v44 = vld [vmem:[#allocation2 + $0x70] sm:$0xf]  ;;  %v3385_v52 = vrot.slane %v547_v11, 5  ;;  %v998_v15 = vrot.slane %v544_v48, 4 }
  0x96   : > { %903 = vst.msk [vmem:[#allocation2 + $0x74] sm:$0xf] %vm875_vm1, %v834_v16  ;;  %v736_v19 = vsel %vm3045_vm8, %v2871_v18, %v735_v44  ;;  %v303_v18 = vsel %vm3016_vm5, 0, %v302_v30  ;;  %v988_v16 = vsel %vm2815_vm2, %v986_v35, %v987_v2  ;;  %v236_v48 = vld [vmem:[%s2779_s20 + $0xa0] sm:$0xff]  ;;  %v332_v2 = vld [vmem:[#allocation2 + $0x78] sm:$0x1] }
  0x97   : > { %737 = vst [vmem:[#allocation2 + $0x70] sm:$0xf] %v736_v19  ;;  %v268_v25 = vpack.c.bf16 %v236_v48, %v236_v48  ;;  %v333_v11 = vsel %vm3016_vm5, 0, %v332_v2 }
  0x98   : > { %304 = vst [vmem:[#allocation2 + $0x28] sm:$0x1] %v303_v18 }
  0x99   : > { %1083 = vrot.lane.b32.xlu0 %v979_v55, %s2738_s22  ;;  %813 = vrot.lane.b32.xlu1 %v3258_v63, %s2737_s21  ;;  %v3371_v63 = vrot.slane %v536_v58, 7  ;;  %v354_v55 = vsel %vm3057_vm11, 0, %v353_v42  ;;  %334 = vst [vmem:[#allocation2 + $0x78] sm:$0x1] %v333_v11  ;;  %v555_v18 = vshll.u32 %v268_v25, 16  ;;  %v992_v11 = vrot.slane %v536_v58, 4 }
  0x9a   : > { %811 = vrot.lane.b32.xlu2 %v3260_v22, %s2737_s21  ;;  %v991_v22 = vrot.slane %v990_v46, 4  ;;  %355 = vst [vmem:[#allocation2 + $0x2c] sm:$0x8] %v354_v55  ;;  %v478_v58 = vrot.slane %v2962_v23, 4 }
  0x9b   : > { %v830_v3 = vpop.permute.xlu0 %829  ;;  %v788_v12 = vpop.permute.xlu1 %787  ;;  %v3383_v41 = vor.u32 %v539_v40, %v3371_v63  ;;  %702 = vst.msk [vmem:[#allocation2 + $0x2c] sm:$0xf] %vm679_vm6, %v470_v24  ;;  %v1002_v42 = vrot.slane %v555_v18, 5 }
  0x9c   : > { %901 = vst.msk [vmem:[#allocation2 + $0x6c] sm:$0xf] %vm875_vm1, %v830_v3  ;;  %v2678_v27 = vld [vmem:[#allocation2 + $0x8] sm:$0xff]  ;;  %v3375_v0 = vpop.permute.xlu2 %1069  ;;  %v552_v3 = vshrl.u32 %v268_v25, 16 }
  0x9d   : > { %v2662_v5 = vld [vmem:[#allocation2 + $0x8] sm:$0xff]  ;;  %880 = vst.msk [vmem:[#allocation2 + $0x18] sm:$0xf] %vm875_vm1, %v788_v12  ;;  %2470 = vmatmul.msk.bf16.vlgmr.msra.gmra.mxu0 %vm1378_vm4, %v2678_v27 }
  0x9e   : > { %2555 = vmatmul.msk.bf16.gmra.mxu1 %vm1378_vm4, %v2662_v5  ;;  %1162 = vst.msk [vmem:[#allocation2 + $0x18] sm:$0xf] %vm1151_vm7, %v3315_v13  ;;  %v999_v13 = vor.u32 %v998_v15, %v3385_v52  ;;  %v3419_v5 = vrot.slane %v552_v3, 7 }
  0x9f   : > { %v699_v27 = vld [vmem:[#allocation2 + $0x28] sm:$0xf] }
  0xa0   : > { %v1000_v12 = vrot.slane %v999_v13, 4  ;;  %v3426_v15 = vor.u32 %v555_v18, %v3419_v5  ;;  %v739_v24 = vld [vmem:[#allocation2 + $0x78] sm:$0xf]  ;;  %v2663_v13 = vld [vmem:[#allocation2 + $0x10] sm:$0xff] }
  0xa1   : > { %1089 = vrot.lane.b32.xlu0 %v991_v22, %s2738_s22  ;;  %1087 = vrot.lane.b32.xlu1 %v988_v16, %s2738_s22  ;;  %v700_v22 = vsel %vm3045_vm8, %v2932_v37, %v699_v27  ;;  %v1001_v16 = vrot.slane %v552_v3, 4  ;;  %v740_v33 = vsel %vm3045_vm8, %v2912_v10, %v739_v24 }
  0xa2   : > { %817 = vrot.lane.b32.xlu2 %v3329_v53, %s2737_s21  ;;  %v630_v53 = vsel %vm3078_vm13, %v622_v45, %v3004_v61  ;;  %701 = vst [vmem:[#allocation2 + $0x28] sm:$0xf] %v700_v22  ;;  %v237_v61 = vld [vmem:[%s2779_s20 + $0xa8] sm:$0xff]  ;;  %v2679_v45 = vld [vmem:[#allocation2 + $0x10] sm:$0xff]  ;;  %v386_v22 = vld [vmem:[#allocation2 + $0x84] sm:$0x8]  ;;  %s214_s20 = scalar_lea.vmem %s3945_s4, %s3965_s16 }
  0xa3   : > { %v1066_v56 = vpop.permute.xlu0 %1065  ;;  %v1203_v46 = vld [vmem:[#allocation2 + $0x6c] sm:$0xf]  ;;  %v1106_v44 = vpop.permute.xlu1 %1105  ;;  %742 = vst.msk [vmem:[#allocation2 + $0x7c] sm:$0xf] %vm679_vm6, %v630_v53  ;;  %v3433_v2 = vpack.c.bf16 %v237_v61, %v237_v61  ;;  %v646_v61 = vsel %vm3078_vm13, %v638_v8, %v3002_v57  ;;  %v335_v57 = vld [vmem:[#allocation2 + $0x80] sm:$0x1] }
  0xa4   : > { %v1164_v35 = vsel %vm3299_vm9, %v1066_v56, %v1163_v17  ;;  %v1204_v19 = vsel %vm3299_vm9, %v1106_v44, %v1203_v46  ;;  %v3414_v30 = vpop.permute.xlu2 %1107  ;;  %v993_v56 = vrot.slane %v539_v40, 5  ;;  %v1003_v44 = vor.u32 %v1002_v42, %v1001_v16  ;;  %741 = vst [vmem:[#allocation2 + $0x78] sm:$0xf] %v740_v33  ;;  %v305_v16 = vld [vmem:[#allocation2 + $0x30] sm:$0x1] }
  0xa5   : > { %1165 = vst [vmem:[#allocation2 + $0x1c] sm:$0xf] %v1164_v35  ;;  %v563_v46 = vshll.u32 %v3433_v2, 16  ;;  %v560_v42 = vshrl.u32 %v3433_v2, 16 }
  0xa6   : > { %1205 = vst [vmem:[#allocation2 + $0x6c] sm:$0xf] %v1204_v19  ;;  %v994_v10 = vor.u32 %v993_v56, %v992_v11  ;;  %v1004_v40 = vrot.slane %v1003_v44, 4  ;;  %v356_v19 = vld [vmem:[#allocation2 + $0x34] sm:$0x8] }
  0xa7   : > { %v1005_v35 = vrot.slane %v563_v46, 5 }
  0xa9   : > { %815 = vrot.lane.b32.xlu0 %v3355_v36, %s2737_s21  ;;  %1093 = vrot.lane.b32.xlu1 %v1000_v12, %s2738_s22  ;;  %v995_v36 = vrot.slane %v994_v10, 4 }
  0xab   : > { %v1104_v55 = vpop.permute.xlu0 %1103  ;;  %v794_v48 = vpop.permute.xlu1 %793  ;;  %v997_v27 = vsel %vm2815_vm2, %v995_v36, %v3385_v52  ;;  %v357_v52 = vsel %vm3057_vm11, 0, %v356_v19  ;;  %v574_v19 = vrot.slane %v3099_v6, 4 }
  0xac   : > { %1202 = vst.msk [vmem:[#allocation2 + $0x68] sm:$0xf] %vm1151_vm7, %v1104_v55  ;;  %v2696_v37 = vld [vmem:[#allocation2 + $0x18] sm:$0xff]  ;;  %v796_v17 = vpop.permute.xlu2 %795  ;;  %1091 = vrot.lane.b32.xlu2 %v997_v27, %s2738_s22 }
  0xad   : > { %883 = vst.msk [vmem:[#allocation2 + $0x24] sm:$0xf] %vm875_vm1, %v794_v48  ;;  %2471 = vmatmul.msk.bf16.gmra.mxu0 %vm1378_vm4, %v2679_v45  ;;  %2642 = vmatmul.msk.bf16.gmra.mxu2 %vm1378_vm4, %v2696_v37  ;;  %v2680_v55 = vld [vmem:[#allocation2 + $0x18] sm:$0xff]  ;;  %v1007_v37 = vrot.slane %v560_v42, 4 }
  0xae   : > { %2556 = vmatmul.msk.bf16.gmra.mxu1 %vm1378_vm4, %v2663_v13  ;;  %884 = vst.msk [vmem:[#allocation2 + $0x28] sm:$0xf] %vm875_vm1, %v796_v17  ;;  %v2664_v48 = vld [vmem:[#allocation2 + $0x18] sm:$0xff]  ;;  %v306_v13 = vsel %vm3016_vm5, 0, %v305_v16  ;;  %v562_v17 = vrot.slane %v560_v42, 7 }
  0xaf   : > { %358 = vst [vmem:[#allocation2 + $0x34] sm:$0x8] %v357_v52 }
  0xb0   : > { %307 = vst [vmem:[#allocation2 + $0x30] sm:$0x1] %v306_v13  ;;  %v3495_v11 = vor.u32 %v563_v46, %v562_v17 }
  0xb1   : > { %821 = vrot.lane.b32.xlu0 %v3433_v2, %s2737_s21  ;;  %819 = vrot.lane.b32.xlu1 %v268_v25, %s2737_s21  ;;  %v486_v25 = vsel %vm3078_vm13, %v478_v58, %v2975_v20  ;;  %v1006_v20 = vsel %vm2815_vm2, %v1004_v40, %v1005_v35  ;;  %v1008_v2 = vor.u32 %v1007_v37, %v1005_v35  ;;  %v494_v35 = vrot.slane %v3051_v59, 4 }
  0xb2   : > { %706 = vst.msk [vmem:[#allocation2 + $0x34] sm:$0xf] %vm679_vm6, %v486_v25 }
  0xb3   : > { %v792_v53 = vpop.permute.xlu0 %791  ;;  %v832_v3 = vpop.permute.xlu1 %831  ;;  %v2690_v12 = vld [vmem:[#allocation2 + $0x68] sm:$0xff]  ;;  %v1009_v33 = vrot.slane %v1008_v2, 4  ;;  %v362_v2 = vld [vmem:[#allocation2 + $0x44] sm:$0x8] }
  0xb4   : > { %882 = vst.msk [vmem:[#allocation2 + $0x20] sm:$0xf] %vm875_vm1, %v792_v53  ;;  %v1167_v23 = vld [vmem:[#allocation2 + $0x24] sm:$0xf]  ;;  %v3457_v49 = vpop.permute.xlu2 %1113  ;;  %2482 = vmatmul.msk.bf16.vlgmr.msra.gmra.mxu3 %vm1378_vm4, %v2690_v12 }
  0xb5   : > { %902 = vst.msk [vmem:[#allocation2 + $0x70] sm:$0xf] %vm875_vm1, %v832_v3  ;;  %v1168_v18 = vsel %vm3299_vm9, %v3375_v0, %v1167_v23  ;;  %2716 = vmatpush.bf16.msra.mxu3 %v3172_v29  ;;  %v387_v0 = vsel %vm3057_vm11, 0, %v386_v22  ;;  %v1207_v29 = vld [vmem:[#allocation2 + $0x74] sm:$0xf]  ;;  %1097 = vrot.lane.b32.xlu2 %v1009_v33, %s2738_s22  ;;  %v502_v22 = vsel %vm3078_vm13, %v494_v35, %v3239_v21  ;;  %v363_v33 = vsel %vm3057_vm11, 0, %v362_v2 }
  0xb6   : > { %1169 = vst [vmem:[#allocation2 + $0x24] sm:$0xf] %v1168_v18  ;;  %v359_v3 = vld [vmem:[#allocation2 + $0x3c] sm:$0x8]  ;;  %v374_v18 = vld [vmem:[#allocation2 + $0x64] sm:$0x8] }
  0xb7   : > { %1206 = vst.msk [vmem:[#allocation2 + $0x70] sm:$0xf] %vm1151_vm7, %v3414_v30  ;;  %v703_v36 = vld [vmem:[#allocation2 + $0x30] sm:$0xf]  ;;  %v375_v16 = vsel %vm3057_vm11, 0, %v374_v18 }
  0xb8   : > { %388 = vst [vmem:[#allocation2 + $0x84] sm:$0x8] %v387_v0  ;;  %v704_v46 = vsel %vm3045_vm8, %v2971_v1, %v703_v36  ;;  %v308_v0 = vld [vmem:[#allocation2 + $0x38] sm:$0x1]  ;;  %v323_v21 = vld [vmem:[#allocation2 + $0x60] sm:$0x1] }
  0xb9   : > { %1095 = vrot.lane.b32.xlu0 %v1006_v20, %s2738_s22  ;;  %2717 = vmatpush.bf16.msra.mxu3 %v3188_v54  ;;  %746 = vst.msk [vmem:[#allocation2 + $0x84] sm:$0xf] %vm679_vm6, %v646_v61  ;;  %v336_v54 = vsel %vm3016_vm5, 0, %v335_v57  ;;  %v582_v61 = vsel %vm3078_vm13, %v574_v19, %v3139_v26  ;;  %v309_v26 = vsel %vm3016_vm5, 0, %v308_v0  ;;  %v365_v18 = vld [vmem:[#allocation2 + $0x4c] sm:$0x8] }
  0xba   : > { %337 = vst [vmem:[#allocation2 + $0x80] sm:$0x1] %v336_v54 }
  0xbb   : > { %v1110_v43 = vpop.permute.xlu0 %1109  ;;  %v1068_v24 = vpop.permute.xlu1 %1067  ;;  %705 = vst [vmem:[#allocation2 + $0x30] sm:$0xf] %v704_v46 }
  0xbc   : > { %v1208_v30 = vsel %vm3299_vm9, %v1110_v43, %v1207_v29  ;;  %1166 = vst.msk [vmem:[#allocation2 + $0x20] sm:$0xf] %vm1151_vm7, %v1068_v24  ;;  %v802_v45 = vpop.permute.xlu2 %801  ;;  %v324_v43 = vsel %vm3016_vm5, 0, %v323_v21  ;;  %v510_v29 = vrot.slane %v3208_v7, 4 }
  0xbd   : > { %1209 = vst [vmem:[#allocation2 + $0x74] sm:$0xf] %v1208_v30  ;;  %2472 = vmatmul.msk.bf16.gmra.mxu0 %vm1378_vm4, %v2680_v55 }
  0xbe   : > { %2557 = vmatmul.msk.bf16.gmra.mxu1 %vm1378_vm4, %v2664_v48  ;;  %887 = vst.msk [vmem:[#allocation2 + $0x34] sm:$0xf] %vm875_vm1, %v802_v45  ;;  %v518_v7 = vsel %vm3078_vm13, %v510_v29, %v3335_v50  ;;  %v311_v50 = vld [vmem:[#allocation2 + $0x40] sm:$0x1] }
  0xbf   : > { %376 = vst [vmem:[#allocation2 + $0x64] sm:$0x8] %v375_v16 }
  0xc0   : > { %730 = vst.msk [vmem:[#allocation2 + $0x64] sm:$0xf] %vm679_vm6, %v582_v61 }
  0xc1   : > { %v743_v40 = vld [vmem:[#allocation2 + $0x80] sm:$0xf]  ;;  %310 = vst [vmem:[#allocation2 + $0x38] sm:$0x1] %v309_v26 }
  0xc2   : > { %v744_v53 = vsel %vm3045_vm8, %v3009_v28, %v743_v40  ;;  %v360_v28 = vsel %vm3057_vm11, 0, %v359_v3  ;;  %325 = vst [vmem:[#allocation2 + $0x60] sm:$0x1] %v324_v43  ;;  %v526_v40 = vrot.slane %v3280_v51, 4  ;;  %v368_v43 = vld [vmem:[#allocation2 + $0x54] sm:$0x8] }
  0xc3   : > { %v798_v56 = vpop.permute.xlu0 %797  ;;  %v838_v44 = vpop.permute.xlu1 %837  ;;  %v2697_v10 = vld [vmem:[#allocation2 + $0x20] sm:$0xff]  ;;  %745 = vst [vmem:[#allocation2 + $0x80] sm:$0xf] %v744_v53  ;;  %v369_v29 = vsel %vm3057_vm11, 0, %v368_v43 }
  0xc4   : > { %885 = vst.msk [vmem:[#allocation2 + $0x2c] sm:$0xf] %vm875_vm1, %v798_v56  ;;  %v2691_v58 = vld [vmem:[#allocation2 + $0x70] sm:$0xff]  ;;  %v840_v8 = vpop.permute.xlu2 %839  ;;  %2643 = vmatmul.msk.bf16.gmra.mxu2 %vm1378_vm4, %v2697_v10  ;;  %v2681_v25 = vld [vmem:[#allocation2 + $0x20] sm:$0xff]  ;;  %v534_v51 = vsel %vm3078_vm13, %v526_v40, %v3290_v31 }
  0xc5   : > { %905 = vst.msk [vmem:[#allocation2 + $0x7c] sm:$0xf] %vm875_vm1, %v838_v44  ;;  %2483 = vmatmul.msk.bf16.gmra.mxu3 %vm1378_vm4, %v2691_v58  ;;  %v2665_v59 = vld [vmem:[#allocation2 + $0x20] sm:$0xff]  ;;  %v312_v44 = vsel %vm3016_vm5, 0, %v311_v50  ;;  %v1175_v58 = vld [vmem:[#allocation2 + $0x34] sm:$0xf] }
  0xc6   : > { %906 = vst.msk [vmem:[#allocation2 + $0x80] sm:$0xf] %vm875_vm1, %v840_v8 }
  0xc7   : > { %361 = vst [vmem:[#allocation2 + $0x3c] sm:$0x8] %v360_v28 }
  0xc8   : > { %710 = vst.msk [vmem:[#allocation2 + $0x3c] sm:$0xf] %vm679_vm6, %v502_v22  ;;  %v707_v24 = vld [vmem:[#allocation2 + $0x38] sm:$0xf] }
  0xc9   : > { %v708_v54 = vsel %vm3045_vm8, %v3074_v60, %v707_v24  ;;  %v727_v17 = vld [vmem:[#allocation2 + $0x60] sm:$0xf]  ;;  %364 = vst [vmem:[#allocation2 + $0x44] sm:$0x8] %v363_v33 }
  0xca   : > { %709 = vst [vmem:[#allocation2 + $0x38] sm:$0xf] %v708_v54  ;;  %v728_v60 = vsel %vm3045_vm8, %v3115_v4, %v727_v17 }
  0xcb   : > { %v836_v12 = vpop.permute.xlu0 %835  ;;  %v1171_v27 = vld [vmem:[#allocation2 + $0x2c] sm:$0xf]  ;;  %v1074_v23 = vpop.permute.xlu1 %1073  ;;  %729 = vst [vmem:[#allocation2 + $0x60] sm:$0xf] %v728_v60  ;;  %v558_v60 = vrot.slane %v3419_v5, 4 }
  0xcc   : > { %904 = vst.msk [vmem:[#allocation2 + $0x78] sm:$0xf] %vm875_vm1, %v836_v12  ;;  %v1172_v1 = vsel %vm3299_vm9, %v1074_v23, %v1171_v27  ;;  %v1211_v6 = vld [vmem:[#allocation2 + $0x7c] sm:$0xf]  ;;  %v1076_v52 = vpop.permute.xlu2 %1075 }
  0xcd   : > { %1173 = vst [vmem:[#allocation2 + $0x2c] sm:$0xf] %v1172_v1  ;;  %v1212_v20 = vsel %vm3299_vm9, %v3457_v49, %v1211_v6  ;;  %2473 = vmatmul.msk.bf16.gmra.mxu0 %vm1378_vm4, %v2681_v25  ;;  %v314_v1 = vld [vmem:[#allocation2 + $0x48] sm:$0x1] }
  0xce   : > { %1213 = vst [vmem:[#allocation2 + $0x7c] sm:$0xf] %v1212_v20  ;;  %2558 = vmatmul.msk.bf16.gmra.mxu1 %vm1378_vm4, %v2665_v59  ;;  %v315_v59 = vsel %vm3016_vm5, 0, %v314_v1 }
  0xcf   : > { %714 = vst.msk [vmem:[#allocation2 + $0x44] sm:$0xf] %vm679_vm6, %v518_v7 }
  0xd0   : > { %313 = vst [vmem:[#allocation2 + $0x40] sm:$0x1] %v312_v44  ;;  %v371_v44 = vld [vmem:[#allocation2 + $0x5c] sm:$0x8] }
  0xd1   : > { %316 = vst [vmem:[#allocation2 + $0x48] sm:$0x1] %v315_v59 }
  0xd2   : > { %370 = vst [vmem:[#allocation2 + $0x54] sm:$0x8] %v369_v29 }
  0xd3   : > { %v1072_v49 = vpop.permute.xlu0 %1071  ;;  %v1112_v57 = vpop.permute.xlu1 %1111 }
  0xd4   : > { %1170 = vst.msk [vmem:[#allocation2 + $0x28] sm:$0xf] %vm1151_vm7, %v1072_v49  ;;  %v826_v42 = vpop.permute.xlu2 %825 }
  0xd5   : > { %1210 = vst.msk [vmem:[#allocation2 + $0x78] sm:$0xf] %vm1151_vm7, %v1112_v57 }
  0xd6   : > { %899 = vst.msk [vmem:[#allocation2 + $0x64] sm:$0xf] %vm875_vm1, %v826_v42  ;;  %v542_v42 = vrot.slane %v3371_v63, 4 }
  0xd7   : > { %v711_v19 = vld [vmem:[#allocation2 + $0x40] sm:$0xf] }
  0xd8   : > { %v712_v12 = vsel %vm3045_vm8, %v3222_v34, %v711_v19  ;;  %v366_v34 = vsel %vm3057_vm11, 0, %v365_v18  ;;  %v715_v20 = vld [vmem:[#allocation2 + $0x48] sm:$0xf]  ;;  %v550_v24 = vsel %vm3078_vm13, %v542_v42, %v3357_v47 }
  0xd9   : > { %713 = vst [vmem:[#allocation2 + $0x40] sm:$0xf] %v712_v12  ;;  %v716_v49 = vsel %vm3045_vm8, %v3293_v62, %v715_v20  ;;  %v317_v62 = vld [vmem:[#allocation2 + $0x50] sm:$0x1]  ;;  %v2674_v19 = vld [vmem:[#allocation2 + $0x68] sm:$0xff] }
  0xda   : > { %367 = vst [vmem:[#allocation2 + $0x4c] sm:$0x8] %v366_v34  ;;  %v318_v47 = vsel %vm3016_vm5, 0, %v317_v62  ;;  %v2675_v20 = vld [vmem:[#allocation2 + $0x70] sm:$0xff] }
  0xdb   : > { %v842_v30 = vpop.permute.xlu0 %841  ;;  %v800_v55 = vpop.permute.xlu1 %799  ;;  %v2698_v48 = vld [vmem:[#allocation2 + $0x28] sm:$0xff]  ;;  %718 = vst.msk [vmem:[#allocation2 + $0x4c] sm:$0xf] %vm679_vm6, %v534_v51 }
  0xdc   : > { %v2682_v45 = vld [vmem:[#allocation2 + $0x28] sm:$0xff]  ;;  %907 = vst.msk [vmem:[#allocation2 + $0x84] sm:$0xf] %vm875_vm1, %v842_v30  ;;  %v2692_v37 = vld [vmem:[#allocation2 + $0x78] sm:$0xff]  ;;  %2644 = vmatmul.msk.bf16.gmra.mxu2 %vm1378_vm4, %v2698_v48  ;;  %v1082_v56 = vpop.permute.xlu2 %1081 }
  0xdd   : > { %v2666_v13 = vld [vmem:[#allocation2 + $0x28] sm:$0xff]  ;;  %886 = vst.msk [vmem:[#allocation2 + $0x30] sm:$0xf] %vm875_vm1, %v800_v55  ;;  %2484 = vmatmul.msk.bf16.gmra.mxu3 %vm1378_vm4, %v2692_v37  ;;  %2474 = vmatmul.msk.bf16.gmra.mxu0 %vm1378_vm4, %v2682_v45  ;;  %v1199_v26 = vld [vmem:[#allocation2 + $0x64] sm:$0xf] }
  0xde   : > { %1174 = vst.msk [vmem:[#allocation2 + $0x30] sm:$0xf] %vm1151_vm7, %v1076_v52  ;;  %2559 = vmatmul.msk.bf16.gmra.mxu1 %vm1378_vm4, %v2666_v13 }
  0xdf   : > { %717 = vst [vmem:[#allocation2 + $0x48] sm:$0xf] %v716_v49 }
  0xe0   : > { %722 = vst.msk [vmem:[#allocation2 + $0x54] sm:$0xf] %vm679_vm6, %v550_v24 }
  0xe1   : > { %319 = vst [vmem:[#allocation2 + $0x50] sm:$0x1] %v318_v47 }
  0xe3   : > { %v1078_v10 = vpop.permute.xlu0 %1077  ;;  %v1215_v8 = vld [vmem:[#allocation2 + $0x84] sm:$0xf]  ;;  %v1118_v36 = vpop.permute.xlu1 %1117 }
  0xe4   : > { %v1176_v46 = vsel %vm3299_vm9, %v1078_v10, %v1175_v58  ;;  %v1216_v4 = vsel %vm3299_vm9, %v1118_v36, %v1215_v8  ;;  %v1100_v35 = vpop.permute.xlu2 %1099  ;;  %v320_v10 = vld [vmem:[#allocation2 + $0x58] sm:$0x1]  ;;  %v372_v58 = vsel %vm3057_vm11, 0, %v371_v44 }
  0xe5   : > { %1177 = vst [vmem:[#allocation2 + $0x34] sm:$0xf] %v1176_v46  ;;  %v566_v46 = vsel %vm3078_vm13, %v558_v60, %v3495_v11  ;;  %v321_v5 = vsel %vm3016_vm5, 0, %v320_v10  ;;  %v2676_v44 = vld [vmem:[#allocation2 + $0x78] sm:$0xff] }
  0xe6   : > { %1217 = vst [vmem:[#allocation2 + $0x84] sm:$0xf] %v1216_v4 }
  0xe7   : > { %373 = vst [vmem:[#allocation2 + $0x5c] sm:$0x8] %v372_v58 }
  0xe8   : > { %726 = vst.msk [vmem:[#allocation2 + $0x5c] sm:$0xf] %vm679_vm6, %v566_v46 }
  0xe9   : > { %322 = vst [vmem:[#allocation2 + $0x58] sm:$0x1] %v321_v5 }
  0xeb   : > { %v1116_v53 = vpop.permute.xlu0 %1115  ;;  %v806_v3 = vpop.permute.xlu1 %805 }
  0xec   : > { %1214 = vst.msk [vmem:[#allocation2 + $0x80] sm:$0xf] %vm1151_vm7, %v1116_v53  ;;  %v2683_v27 = vld [vmem:[#allocation2 + $0x30] sm:$0xff]  ;;  %v1086_v6 = vpop.permute.xlu2 %1085 }
  0xed   : > { %v2667_v23 = vld [vmem:[#allocation2 + $0x30] sm:$0xff]  ;;  %889 = vst.msk [vmem:[#allocation2 + $0x3c] sm:$0xf] %vm875_vm1, %v806_v3  ;;  %2475 = vmatmul.msk.bf16.gmra.mxu0 %vm1378_vm4, %v2683_v27 }
  0xee   : > { %v2699_v25 = vld [vmem:[#allocation2 + $0x30] sm:$0xff]  ;;  %2560 = vmatmul.msk.bf16.gmra.mxu1 %vm1378_vm4, %v2667_v23 }
  0xef   : > { %2645 = vmatmul.msk.bf16.gmra.mxu2 %vm1378_vm4, %v2699_v25 }
  0xf0   : > { %v1669_v54 = vpop.f32.mrf.mxu1  ;;  %v723_v18 = vld [vmem:[#allocation2 + $0x58] sm:$0xf] }
  0xf1   : > { %v724_v34 = vsel %vm3045_vm8, %v3426_v15, %v723_v18 }
  0xf2   : > { %725 = vst [vmem:[#allocation2 + $0x58] sm:$0xf] %v724_v34 }
  0xf3   : > { %v804_v52 = vpop.permute.xlu0 %803  ;;  %v824_v31 = vpop.permute.xlu1 %823  ;;  %v2693_v28 = vld [vmem:[#allocation2 + $0x80] sm:$0xff] }
  0xf4   : > { %888 = vst.msk [vmem:[#allocation2 + $0x38] sm:$0xf] %vm875_vm1, %v804_v52  ;;  %v1179_v22 = vld [vmem:[#allocation2 + $0x3c] sm:$0xf]  ;;  %2485 = vmatmul.msk.bf16.gmra.mxu3 %vm1378_vm4, %v2693_v28  ;;  %v812_v0 = vpop.permute.xlu2 %811 }
  0xf5   : > { %898 = vst.msk [vmem:[#allocation2 + $0x60] sm:$0xf] %vm875_vm1, %v824_v31  ;;  %v1180_v61 = vsel %vm3299_vm9, %v1082_v56, %v1179_v22  ;;  %v719_v56 = vld [vmem:[#allocation2 + $0x50] sm:$0xf] }
  0xf6   : > { %1181 = vst [vmem:[#allocation2 + $0x3c] sm:$0xf] %v1180_v61  ;;  %v720_v50 = vsel %vm3045_vm8, %v3383_v41, %v719_v56 }
  0xf7   : > { %1198 = vst.msk [vmem:[#allocation2 + $0x60] sm:$0xf] %vm1151_vm7, %v1100_v35 }
  0xf8   : > { %892 = vst.msk [vmem:[#allocation2 + $0x48] sm:$0xf] %vm875_vm1, %v812_v0  ;;  %v1671_v41 = vpop.f32.mrf.mxu1 }
  0xf9   : > { %721 = vst [vmem:[#allocation2 + $0x50] sm:$0xf] %v720_v50 }
  0xfb   : > { %v1102_v16 = vpop.permute.xlu0 %1101  ;;  %v1080_v21 = vpop.permute.xlu1 %1079 }
  0xfc   : > { %v1200_v57 = vsel %vm3299_vm9, %v1102_v16, %v1199_v26  ;;  %1178 = vst.msk [vmem:[#allocation2 + $0x38] sm:$0xf] %vm1151_vm7, %v1080_v21  ;;  %v818_v37 = vpop.permute.xlu2 %817 }
  0xfd   : > { %1201 = vst [vmem:[#allocation2 + $0x64] sm:$0xf] %v1200_v57 }
  0xfe   : > { %895 = vst.msk [vmem:[#allocation2 + $0x54] sm:$0xf] %vm875_vm1, %v818_v37 }
 0x103   : > { %v810_v30 = vpop.permute.xlu0 %809  ;;  %v2684_v55 = vld [vmem:[#allocation2 + $0x38] sm:$0xff]  ;;  %v808_v13 = vpop.permute.xlu1 %807 }
 0x104   : > { %v2668_v48 = vld [vmem:[#allocation2 + $0x38] sm:$0xff]  ;;  %891 = vst.msk [vmem:[#allocation2 + $0x44] sm:$0xf] %vm875_vm1, %v810_v30  ;;  %v2673_v63 = vld [vmem:[#allocation2 + $0x60] sm:$0xff]  ;;  %2476 = vmatmul.msk.bf16.gmra.mxu0 %vm1378_vm4, %v2684_v55 }
 0x105   : > { %v2700_v45 = vld [vmem:[#allocation2 + $0x38] sm:$0xff]  ;;  %2561 = vmatmul.msk.bf16.gmra.mxu1 %vm1378_vm4, %v2668_v48  ;;  %890 = vst.msk [vmem:[#allocation2 + $0x40] sm:$0xf] %vm875_vm1, %v808_v13  ;;  %2566 = vmatmul.msk.bf16.vlgmr.msrb.gmra.mxu3 %vm1378_vm4, %v2673_v63  ;;  %v1191_v9 = vld [vmem:[#allocation2 + $0x54] sm:$0xf] }
 0x106   : > { %2646 = vmatmul.msk.bf16.gmra.mxu2 %vm1378_vm4, %v2700_v45  ;;  %v1092_v11 = vpop.permute.xlu2 %1091 }
 0x10b   : > { %v1183_v2 = vld [vmem:[#allocation2 + $0x44] sm:$0xf]  ;;  %v1084_v7 = vpop.permute.xlu0 %1083  ;;  %v814_v17 = vpop.permute.xlu1 %813 }
 0x10c   : > { %v1184_v33 = vsel %vm3299_vm9, %v1086_v6, %v1183_v2  ;;  %1182 = vst.msk [vmem:[#allocation2 + $0x40] sm:$0xf] %vm1151_vm7, %v1084_v7 }
 0x10d   : > { %1185 = vst [vmem:[#allocation2 + $0x44] sm:$0xf] %v1184_v33 }
 0x10e   : > { %893 = vst.msk [vmem:[#allocation2 + $0x4c] sm:$0xf] %vm875_vm1, %v814_v17 }
 0x10f   : > { %v1098_v62 = vpop.permute.xlu2 %1097 }
 0x113   : > { %v1090_v8 = vpop.permute.xlu0 %1089  ;;  %v1088_v36 = vpop.permute.xlu1 %1087 }
 0x114   : > { %v2685_v4 = vld [vmem:[#allocation2 + $0x40] sm:$0xff]  ;;  %1186 = vst.msk [vmem:[#allocation2 + $0x48] sm:$0xf] %vm1151_vm7, %v1088_v36 }
 0x115   : > { %v2669_v40 = vld [vmem:[#allocation2 + $0x40] sm:$0xff]  ;;  %v1187_v39 = vld [vmem:[#allocation2 + $0x4c] sm:$0xf]  ;;  %2477 = vmatmul.msk.bf16.gmra.mxu0 %vm1378_vm4, %v2685_v4  ;;  %2567 = vmatmul.msk.bf16.gmra.mxu3 %vm1378_vm4, %v2674_v19 }
 0x116   : > { %v2701_v35 = vld [vmem:[#allocation2 + $0x40] sm:$0xff]  ;;  %2562 = vmatmul.msk.bf16.gmra.mxu1 %vm1378_vm4, %v2669_v40  ;;  %v1188_v38 = vsel %vm3299_vm9, %v1090_v8, %v1187_v39 }
 0x117   : > { %2647 = vmatmul.msk.bf16.gmra.mxu2 %vm1378_vm4, %v2701_v35  ;;  %1189 = vst [vmem:[#allocation2 + $0x4c] sm:$0xf] %v1188_v38 }
 0x118   : > { %v1935_v53 = vpop.f32.mrf.mxu2 }
 0x11a   : > { %v1440_v3 = vpop.f32.mrf.mxu0 }
 0x11b   : > { %v1670_v12 = vadd.f32 %v1669_v54, %v1440_v3  ;;  %v816_v27 = vpop.permute.xlu0 %815  ;;  %v1094_v23 = vpop.permute.xlu1 %1093 }
 0x11c   : > { %894 = vst.msk [vmem:[#allocation2 + $0x50] sm:$0xf] %vm875_vm1, %v816_v27  ;;  %v1192_v25 = vsel %vm3299_vm9, %v1094_v23, %v1191_v9  ;;  %v1674_v1 = vpop.f32.mrf.mxu1  ;;  %v2707_v27 = vld [vmem:[#allocation2 + $0x70] sm:$0xff] }
 0x11d   : > { %v2015_v51 = vadd.f32 %v1935_v53, %v1670_v12  ;;  %1193 = vst [vmem:[#allocation2 + $0x54] sm:$0xf] %v1192_v25 }
 0x11e   : > { %1190 = vst.msk [vmem:[#allocation2 + $0x50] sm:$0xf] %vm1151_vm7, %v1092_v11  ;;  %v2686_v59 = vld [vmem:[#allocation2 + $0x48] sm:$0xff] }
 0x11f   : > { %v2047_v6 = vpack.c.bf16 %v2015_v51, %v2015_v51  ;;  %v2670_v52 = vld [vmem:[#allocation2 + $0x48] sm:$0xff]  ;;  %v2183_v0 = vmul.f32 %v2015_v51, %v2015_v51  ;;  %v2112_v26 = vsel %vm2111_vm0, %v2015_v51, 0.0 }
 0x120   : > { %v2702_v28 = vld [vmem:[#allocation2 + $0x48] sm:$0xff]  ;;  %v1937_v61 = vpop.f32.mrf.mxu2 }
 0x121   : > { %2079 = vst.msk [vmem:[%s3643_s12] sm:$0xf] %vm679_vm6, %v2047_v6  ;;  %v2215_v29 = vsel %vm2111_vm0, %v2183_v0, 0.0 }
 0x122   : > { %v1442_v31 = vpop.f32.mrf.mxu0 }
 0x123   : > { %v1672_v22 = vadd.f32 %v1671_v41, %v1442_v31  ;;  %v822_v32 = vpop.permute.xlu0 %821  ;;  %v820_v15 = vpop.permute.xlu1 %819 }
 0x124   : > { %897 = vst.msk [vmem:[#allocation2 + $0x5c] sm:$0xf] %vm875_vm1, %v822_v32  ;;  %v1676_v42 = vpop.f32.mrf.mxu1 }
 0x125   : > { %v2016_v16 = vadd.f32 %v1937_v61, %v1672_v22  ;;  %2478 = vmatmul.msk.bf16.gmra.mxu0 %vm1378_vm4, %v2686_v59  ;;  %896 = vst.msk [vmem:[#allocation2 + $0x58] sm:$0xf] %vm875_vm1, %v820_v15  ;;  %2568 = vmatmul.msk.bf16.gmra.mxu3 %vm1378_vm4, %v2675_v20  ;;  %v2687_v47 = vld [vmem:[#allocation2 + $0x50] sm:$0xff] }
 0x126   : > { %2563 = vmatmul.msk.bf16.gmra.mxu1 %vm1378_vm4, %v2670_v52  ;;  %v2671_v54 = vld [vmem:[#allocation2 + $0x50] sm:$0xff] }
 0x127   : > { %2648 = vmatmul.msk.bf16.gmra.mxu2 %vm1378_vm4, %v2702_v28  ;;  %v2048_v21 = vpack.c.bf16 %v2016_v16, %v2016_v16  ;;  %v2113_v49 = vsel %vm2111_vm0, %v2016_v16, 0.0  ;;  %v2184_v57 = vmul.f32 %v2016_v16, %v2016_v16  ;;  %v2703_v33 = vld [vmem:[#allocation2 + $0x50] sm:$0xff] }
 0x128   : > { %v2114_v43 = vadd.f32 %v2113_v49, %v2112_v26 }
 0x129   : > { %2080 = vst.msk [vmem:[%s3643_s12 + $0x4] sm:$0xf] %vm679_vm6, %v2048_v21  ;;  %v2216_v24 = vsel %vm2111_vm0, %v2184_v57, 0.0 }
 0x12a   : > { %v1445_v30 = vpop.f32.mrf.mxu0  ;;  %v2217_v55 = vadd.f32 %v2216_v24, %v2215_v29  ;;  %v2705_v29 = vld [vmem:[#allocation2 + $0x60] sm:$0xff]  ;;  %v2708_v24 = vld [vmem:[#allocation2 + $0x78] sm:$0xff] }
 0x12b   : > { %v1195_v48 = vld [vmem:[#allocation2 + $0x5c] sm:$0xf]  ;;  %v1096_v45 = vpop.permute.xlu0 %1095  ;;  %v1675_v63 = vadd.f32 %v1674_v1, %v1445_v30 }
 0x12c   : > { %v1196_v13 = vsel %vm3299_vm9, %v1098_v62, %v1195_v48  ;;  %1194 = vst.msk [vmem:[#allocation2 + $0x58] sm:$0xf] %vm1151_vm7, %v1096_v45  ;;  %v1679_v2 = vpop.f32.mrf.mxu1 }
 0x12d   : > { %1197 = vst [vmem:[#allocation2 + $0x5c] sm:$0xf] %v1196_v13 }
 0x130   : > { %v1940_v37 = vpop.f32.mrf.mxu2 }
 0x131   : > { %v2017_v7 = vadd.f32 %v1940_v37, %v1675_v63 }
 0x132   : > { %v1447_v17 = vpop.f32.mrf.mxu0 }
 0x133   : > { %v2049_v60 = vpack.c.bf16 %v2017_v7, %v2017_v7  ;;  %v2115_v56 = vsel %vm2111_vm0, %v2017_v7, 0.0  ;;  %v2185_v50 = vmul.f32 %v2017_v7, %v2017_v7  ;;  %v1677_v8 = vadd.f32 %v1676_v42, %v1447_v17  ;;  %v2689_v42 = vld [vmem:[#allocation2 + $0x60] sm:$0xff] }
 0x134   : > { %v2116_v10 = vadd.f32 %v2115_v56, %v2114_v43  ;;  %v1681_v4 = vpop.f32.mrf.mxu1  ;;  %v2688_v11 = vld [vmem:[#allocation2 + $0x58] sm:$0xff] }
 0x135   : > { %2479 = vmatmul.msk.bf16.gmra.mxu0 %vm1378_vm4, %v2687_v47  ;;  %2081 = vst.msk [vmem:[%s3643_s12 + $0x8] sm:$0xf] %vm679_vm6, %v2049_v60  ;;  %v2218_v14 = vsel %vm2111_vm0, %v2185_v50, 0.0  ;;  %2569 = vmatmul.msk.bf16.gmra.mxu3 %vm1378_vm4, %v2676_v44  ;;  %v2672_v53 = vld [vmem:[#allocation2 + $0x58] sm:$0xff]  ;;  %v2709_v60 = vld [vmem:[#allocation2 + $0x80] sm:$0xff] }
 0x136   : > { %2564 = vmatmul.msk.bf16.gmra.mxu1 %vm1378_vm4, %v2671_v54  ;;  %v2219_v58 = vadd.f32 %v2218_v14, %v2217_v55  ;;  %v2704_v12 = vld [vmem:[#allocation2 + $0x58] sm:$0xff] }
 0x137   : > { %2649 = vmatmul.msk.bf16.gmra.mxu2 %vm1378_vm4, %v2703_v33  ;;  %v3675_v38 = vpop.f32.mrf.mxu3  ;;  %v2706_v33 = vld [vmem:[#allocation2 + $0x68] sm:$0xff] }
 0x138   : > { %v1942_v36 = vpop.f32.mrf.mxu2 }
 0x139   : > { %v2018_v46 = vadd.f32 %v1942_v36, %v1677_v8 }
 0x13a   : > { %v1450_v5 = vpop.f32.mrf.mxu0 }
 0x13b   : > { %v2050_v40 = vpack.c.bf16 %v2018_v46, %v2018_v46  ;;  %v2117_v35 = vsel %vm2111_vm0, %v2018_v46, 0.0  ;;  %v2186_v41 = vmul.f32 %v2018_v46, %v2018_v46  ;;  %v1680_v23 = vadd.f32 %v1679_v2, %v1450_v5 }
 0x13c   : > { %v2118_v19 = vadd.f32 %v2117_v35, %v2116_v10  ;;  %v1684_v25 = vpop.f32.mrf.mxu1 }
 0x13d   : > { %2082 = vst.msk [vmem:[%s3643_s12 + $0xc] sm:$0xf] %vm679_vm6, %v2050_v40  ;;  %v2220_v39 = vsel %vm2111_vm0, %v2186_v41, 0.0 }
 0x13e   : > { %v2221_v9 = vadd.f32 %v2220_v39, %v2219_v58 }
 0x13f   : > { %v3681_v34 = vpop.f32.mrf.mxu3 }
 0x142   : > { %v1452_v3 = vpop.f32.mrf.mxu0 }
 0x143   : > { %v1682_v32 = vadd.f32 %v1681_v4, %v1452_v3 }
 0x144   : > { %v1686_v61 = vpop.f32.mrf.mxu1 }
 0x145   : > { %2480 = vmatmul.msk.bf16.gmra.mxu0 %vm1378_vm4, %v2688_v11  ;;  %2653 = vmatmul.msk.bf16.vlgmr.msra.gmra.mxu3 %vm1378_vm4, %v2707_v27 }
 0x146   : > { %2565 = vmatmul.msk.bf16.gmra.mxu1 %vm1378_vm4, %v2672_v53  ;;  %v2710_v53 = vld [vmem:[#allocation2 + $0x88] sm:$0xff] }
 0x147   : > { %2650 = vmatmul.msk.bf16.gmra.mxu2 %vm1378_vm4, %v2704_v12  ;;  %v1945_v18 = vpop.f32.mrf.mxu2 }
 0x148   : > { %v2019_v51 = vadd.f32 %v1945_v18, %v1680_v23  ;;  %v3688_v49 = vpop.f32.mrf.mxu3 }
 0x14a   : > { %v2051_v1 = vpack.c.bf16 %v2019_v51, %v2019_v51  ;;  %v2119_v6 = vsel %vm2111_vm0, %v2019_v51, 0.0  ;;  %v2187_v59 = vmul.f32 %v2019_v51, %v2019_v51  ;;  %v1455_v52 = vpop.f32.mrf.mxu0 }
 0x14b   : > { %v2120_v31 = vadd.f32 %v2119_v6, %v2118_v19  ;;  %v1685_v45 = vadd.f32 %v1684_v25, %v1455_v52 }
 0x14c   : > { %2083 = vst.msk [vmem:[%s3643_s12 + $0x10] sm:$0xf] %vm679_vm6, %v2051_v1  ;;  %v2222_v28 = vsel %vm2111_vm0, %v2187_v59, 0.0  ;;  %v1689_v30 = vpop.f32.mrf.mxu1 }
 0x14d   : > { %v2223_v22 = vadd.f32 %v2222_v28, %v2221_v9 }
 0x14f   : > { %v1947_v15 = vpop.f32.mrf.mxu2 }
 0x150   : > { %v2020_v20 = vadd.f32 %v1947_v15, %v1682_v32  ;;  %v3696_v48 = vpop.f32.mrf.mxu3 }
 0x152   : > { %v2052_v0 = vpack.c.bf16 %v2020_v20, %v2020_v20  ;;  %v2121_v16 = vsel %vm2111_vm0, %v2020_v20, 0.0  ;;  %v2188_v26 = vmul.f32 %v2020_v20, %v2020_v20  ;;  %v1457_v21 = vpop.f32.mrf.mxu0 }
 0x153   : > { %v2122_v57 = vadd.f32 %v2121_v16, %v2120_v31  ;;  %v1687_v10 = vadd.f32 %v1686_v61, %v1457_v21 }
 0x154   : > { %2084 = vst.msk [vmem:[%s3643_s12 + $0x14] sm:$0xf] %vm679_vm6, %v2052_v0  ;;  %v2224_v43 = vsel %vm2111_vm0, %v2188_v26, 0.0  ;;  %v1691_v7 = vpop.f32.mrf.mxu1 }
 0x155   : > { %v2225_v62 = vadd.f32 %v2224_v43, %v2223_v22  ;;  %2481 = vmatmul.msk.bf16.gmra.mxu0 %vm1378_vm4, %v2689_v42  ;;  %2654 = vmatmul.msk.bf16.gmra.mxu3 %vm1378_vm4, %v2708_v24 }
 0x157   : > { %2651 = vmatmul.msk.bf16.gmra.mxu2 %vm1378_vm4, %v2705_v29 }
 0x15a   : > { %v1460_v55 = vpop.f32.mrf.mxu0 }
 0x15b   : > { %v1690_v41 = vadd.f32 %v1689_v30, %v1460_v55 }
 0x15c   : > { %v1694_v35 = vpop.f32.mrf.mxu1 }
 0x15f   : > { %v1950_v13 = vpop.f32.mrf.mxu2 }
 0x160   : > { %v2021_v63 = vadd.f32 %v1950_v13, %v1685_v45  ;;  %v3702_v56 = vpop.f32.mrf.mxu3 }
 0x162   : > { %v2053_v37 = vpack.c.bf16 %v2021_v63, %v2021_v63  ;;  %v2123_v47 = vsel %vm2111_vm0, %v2021_v63, 0.0  ;;  %v2189_v54 = vmul.f32 %v2021_v63, %v2021_v63  ;;  %v1462_v44 = vpop.f32.mrf.mxu0 }
 0x163   : > { %v2124_v2 = vadd.f32 %v2123_v47, %v2122_v57  ;;  %v1692_v51 = vadd.f32 %v1691_v7, %v1462_v44 }
 0x164   : > { %2085 = vst.msk [vmem:[%s3643_s12 + $0x18] sm:$0xf] %vm679_vm6, %v2053_v37  ;;  %v2226_v17 = vsel %vm2111_vm0, %v2189_v54, 0.0  ;;  %v1696_v6 = vpop.f32.mrf.mxu1 }
 0x165   : > { %v2227_v50 = vadd.f32 %v2226_v17, %v2225_v62  ;;  %2655 = vmatmul.msk.bf16.gmra.mxu3 %vm1378_vm4, %v2709_v60 }
 0x167   : > { %2652 = vmatmul.msk.bf16.gmra.mxu2 %vm1378_vm4, %v2706_v33  ;;  %v1952_v14 = vpop.f32.mrf.mxu2 }
 0x168   : > { %v2022_v58 = vadd.f32 %v1952_v14, %v1687_v10  ;;  %v3710_v19 = vpop.f32.mrf.mxu3 }
 0x16a   : > { %v2054_v8 = vpack.c.bf16 %v2022_v58, %v2022_v58  ;;  %v2125_v36 = vsel %vm2111_vm0, %v2022_v58, 0.0  ;;  %v2190_v46 = vmul.f32 %v2022_v58, %v2022_v58  ;;  %v1465_v39 = vpop.f32.mrf.mxu0 }
 0x16b   : > { %v2126_v5 = vadd.f32 %v2125_v36, %v2124_v2  ;;  %v1695_v21 = vadd.f32 %v1694_v35, %v1465_v39 }
 0x16c   : > { %2086 = vst.msk [vmem:[%s3643_s12 + $0x1c] sm:$0xf] %vm679_vm6, %v2054_v8  ;;  %v2228_v4 = vsel %vm2111_vm0, %v2190_v46, 0.0  ;;  %v1699_v26 = vpop.f32.mrf.mxu1 }
 0x16d   : > { %v2229_v40 = vadd.f32 %v2228_v4, %v2227_v50 }
 0x172   : > { %v1955_v9 = vpop.f32.mrf.mxu2  ;;  %v1467_v52 = vpop.f32.mrf.mxu0 }
 0x173   : > { %v2023_v11 = vadd.f32 %v1955_v9, %v1690_v41  ;;  %v1697_v37 = vadd.f32 %v1696_v6, %v1467_v52 }
 0x174   : > { %v1701_v55 = vpop.f32.mrf.mxu1 }
 0x175   : > { %v2055_v3 = vpack.c.bf16 %v2023_v11, %v2023_v11  ;;  %v2127_v12 = vsel %vm2111_vm0, %v2023_v11, 0.0  ;;  %v2191_v27 = vmul.f32 %v2023_v11, %v2023_v11  ;;  %2656 = vmatmul.msk.bf16.gmra.mxu3 %vm1378_vm4, %v2710_v53 }
 0x176   : > { %v2128_v23 = vadd.f32 %v2127_v12, %v2126_v5 }
 0x177   : > { %2087 = vst.msk [vmem:[%s3643_s12 + $0x20] sm:$0xf] %vm679_vm6, %v2055_v3  ;;  %v2230_v25 = vsel %vm2111_vm0, %v2191_v27, 0.0  ;;  %v3717_v1 = vpop.f32.mrf.mxu3 }
 0x178   : > { %v2231_v18 = vadd.f32 %v2230_v25, %v2229_v40 }
 0x17a   : > { %v1957_v59 = vpop.f32.mrf.mxu2 }
 0x17b   : > { %v2024_v31 = vadd.f32 %v1957_v59, %v1692_v51 }
 0x17d   : > { %v2056_v28 = vpack.c.bf16 %v2024_v31, %v2024_v31  ;;  %v2129_v22 = vsel %vm2111_vm0, %v2024_v31, 0.0  ;;  %v2192_v32 = vmul.f32 %v2024_v31, %v2024_v31 }
 0x17e   : > { %v2130_v15 = vadd.f32 %v2129_v22, %v2128_v23 }
 0x17f   : > { %2088 = vst.msk [vmem:[%s3643_s12 + $0x24] sm:$0xf] %vm679_vm6, %v2056_v28  ;;  %v2232_v61 = vsel %vm2111_vm0, %v2192_v32, 0.0  ;;  %v3723_v0 = vpop.f32.mrf.mxu3 }
 0x180   : > { %v2233_v20 = vadd.f32 %v2232_v61, %v2231_v18 }
 0x181   : > { %v1470_v16 = vpop.f32.mrf.mxu0 }
 0x182   : > { %v1704_v50 = vpop.f32.mrf.mxu1  ;;  %v1700_v58 = vadd.f32 %v1699_v26, %v1470_v16 }
 0x188   : > { %v3725_v42 = vpop.f32.mrf.mxu3 }
 0x189   : > { %v1960_v57 = vpop.f32.mrf.mxu2  ;;  %v1472_v29 = vpop.f32.mrf.mxu0 }
 0x18a   : > { %v2025_v43 = vadd.f32 %v1960_v57, %v1695_v21  ;;  %v1706_v39 = vpop.f32.mrf.mxu1  ;;  %v1702_v53 = vadd.f32 %v1701_v55, %v1472_v29 }
 0x18c   : > { %v2057_v24 = vpack.c.bf16 %v2025_v43, %v2025_v43  ;;  %v2131_v62 = vsel %vm2111_vm0, %v2025_v43, 0.0  ;;  %v2193_v30 = vmul.f32 %v2025_v43, %v2025_v43 }
 0x18d   : > { %v2132_v45 = vadd.f32 %v2131_v62, %v2130_v15 }
 0x18e   : > { %2089 = vst.msk [vmem:[%s3643_s12 + $0x28] sm:$0xf] %vm679_vm6, %v2057_v24  ;;  %v2234_v13 = vsel %vm2111_vm0, %v2193_v30, 0.0 }
 0x18f   : > { %v2235_v63 = vadd.f32 %v2234_v13, %v2233_v20 }
 0x190   : > { %v3731_v54 = vpop.f32.mrf.mxu3 }
 0x191   : > { %v1962_v47 = vpop.f32.mrf.mxu2 }
 0x192   : > { %v2026_v2 = vadd.f32 %v1962_v47, %v1697_v37  ;;  %v1475_v7 = vpop.f32.mrf.mxu0 }
 0x193   : > { %v1705_v18 = vadd.f32 %v1704_v50, %v1475_v7  ;;  %v1709_v51 = vpop.f32.mrf.mxu1 }
 0x194   : > { %v2058_v17 = vpack.c.bf16 %v2026_v2, %v2026_v2  ;;  %v2133_v33 = vsel %vm2111_vm0, %v2026_v2, 0.0  ;;  %v2194_v60 = vmul.f32 %v2026_v2, %v2026_v2  ;;  %v1730_v2 = vadd.f32 %v3725_v42, %v3675_v38 }
 0x195   : > { %v2134_v44 = vadd.f32 %v2133_v33, %v2132_v45  ;;  %v1732_v38 = vadd.f32 %v3731_v54, %v3681_v34 }
 0x196   : > { %2090 = vst.msk [vmem:[%s3643_s12 + $0x2c] sm:$0xf] %vm679_vm6, %v2058_v17  ;;  %v2236_v10 = vsel %vm2111_vm0, %v2194_v60, 0.0 }
 0x197   : > { %v2237_v14 = vadd.f32 %v2236_v10, %v2235_v63 }
 0x198   : > { %v3737_v8 = vpop.f32.mrf.mxu3 }
 0x199   : > { %v1735_v34 = vadd.f32 %v3737_v8, %v3688_v49 }
 0x19a   : > { %v1965_v36 = vpop.f32.mrf.mxu2  ;;  %v1477_v35 = vpop.f32.mrf.mxu0 }
 0x19b   : > { %v2027_v46 = vadd.f32 %v1965_v36, %v1700_v58  ;;  %v1707_v28 = vadd.f32 %v1706_v39, %v1477_v35  ;;  %v1711_v61 = vpop.f32.mrf.mxu1 }
 0x19d   : > { %v2059_v5 = vpack.c.bf16 %v2027_v46, %v2027_v46  ;;  %v2135_v4 = vsel %vm2111_vm0, %v2027_v46, 0.0  ;;  %v2195_v40 = vmul.f32 %v2027_v46, %v2027_v46 }
 0x19e   : > { %v3740_v41 = vadd.f32 %v2135_v4, %v2134_v44 }
 0x19f   : > { %2091 = vst.msk [vmem:[%s3643_s12 + $0x30] sm:$0xf] %vm679_vm6, %v2059_v5  ;;  %v2238_v9 = vsel %vm2111_vm0, %v2195_v40, 0.0 }
 0x1a0   : > { %v3745_v11 = vadd.f32 %v2238_v9, %v2237_v14  ;;  %v3747_v3 = vpop.f32.mrf.mxu3 }
 0x1a2   : > { %v1967_v12 = vpop.f32.mrf.mxu2  ;;  %v1480_v25 = vpop.f32.mrf.mxu0 }
 0x1a3   : > { %v3749_v27 = vadd.f32 %v1967_v12, %v1702_v53  ;;  %v1710_v26 = vadd.f32 %v1709_v51, %v1480_v25  ;;  %v1714_v24 = vpop.f32.mrf.mxu1 }
 0x1a5   : > { %v2060_v23 = vpack.c.bf16 %v3749_v27, %v3749_v27  ;;  %v2137_v49 = vsel %vm2111_vm0, %v3749_v27, 0.0 }
 0x1a7   : > { %2092 = vst.msk [vmem:[%s3643_s12 + $0x34] sm:$0xf] %vm679_vm6, %v2060_v23 }
 0x1a8   : > { %v3755_v6 = vpop.f32.mrf.mxu3 }
 0x1aa   : > { %v1970_v59 = vpop.f32.mrf.mxu2  ;;  %v1482_v22 = vpop.f32.mrf.mxu0 }
 0x1ab   : > { %v3757_v52 = vadd.f32 %v1970_v59, %v1705_v18  ;;  %v1712_v30 = vadd.f32 %v1711_v61, %v1482_v22  ;;  %v1716_v47 = vpop.f32.mrf.mxu1  ;;  %v2196_v18 = vmul.f32 %v3749_v27, %v3749_v27 }
 0x1ad   : > { %v2061_v31 = vpack.c.bf16 %v3757_v52, %v3757_v52  ;;  %v2240_v22 = vsel %vm2111_vm0, %v2196_v18, 0.0 }
 0x1af   : > { %2093 = vst.msk [vmem:[%s3643_s12 + $0x38] sm:$0xf] %vm679_vm6, %v2061_v31  ;;  %v2197_v31 = vmul.f32 %v3757_v52, %v3757_v52 }
 0x1b0   : > { %v3763_v32 = vpop.f32.mrf.mxu3 }
 0x1b1   : > { %v2242_v27 = vsel %vm2111_vm0, %v2197_v31, 0.0 }
 0x1b2   : > { %v1972_v15 = vpop.f32.mrf.mxu2  ;;  %v1485_v43 = vpop.f32.mrf.mxu0 }
 0x1b3   : > { %v3765_v20 = vadd.f32 %v1972_v15, %v1707_v28  ;;  %v1715_v7 = vadd.f32 %v1714_v24, %v1485_v43  ;;  %v1719_v42 = vpop.f32.mrf.mxu1  ;;  %v1737_v28 = vadd.f32 %v3747_v3, %v3696_v48  ;;  %v2139_v15 = vsel %vm2111_vm0, %v3757_v52, 0.0 }
 0x1b4   : > { %v2241_v3 = vadd.f32 %v2240_v22, %v3745_v11 }
 0x1b5   : > { %v2062_v16 = vpack.c.bf16 %v3765_v20, %v3765_v20  ;;  %v2198_v8 = vmul.f32 %v3765_v20, %v3765_v20  ;;  %v2141_v43 = vsel %vm2111_vm0, %v3765_v20, 0.0 }
 0x1b7   : > { %2094 = vst.msk [vmem:[%s3643_s12 + $0x3c] sm:$0xf] %vm679_vm6, %v2062_v16  ;;  %v2138_v16 = vadd.f32 %v2137_v49, %v3740_v41 }
 0x1b8   : > { %v3771_v21 = vpop.f32.mrf.mxu3 }
 0x1b9   : > { %v2140_v52 = vadd.f32 %v2139_v15, %v2138_v16 }
 0x1ba   : > { %v1975_v57 = vpop.f32.mrf.mxu2  ;;  %v1487_v63 = vpop.f32.mrf.mxu0 }
 0x1bb   : > { %v3773_v29 = vadd.f32 %v1975_v57, %v1710_v26  ;;  %v1717_v58 = vadd.f32 %v1716_v47, %v1487_v63  ;;  %v1721_v25 = vpop.f32.mrf.mxu1  ;;  %v2243_v47 = vadd.f32 %v2242_v27, %v2241_v3 }
 0x1bd   : > { %v2063_v62 = vpack.c.bf16 %v3773_v29, %v3773_v29  ;;  %v2199_v24 = vmul.f32 %v3773_v29, %v3773_v29 }
 0x1bf   : > { %2095 = vst.msk [vmem:[%s3643_s12 + $0x40] sm:$0xf] %vm679_vm6, %v2063_v62 }
 0x1c0   : > { %v3779_v55 = vpop.f32.mrf.mxu3 }
 0x1c2   : > { %v1977_v45 = vpop.f32.mrf.mxu2  ;;  %v1490_v14 = vpop.f32.mrf.mxu0 }
 0x1c3   : > { %v3781_v13 = vadd.f32 %v1977_v45, %v1712_v30  ;;  %v1720_v54 = vadd.f32 %v1719_v42, %v1490_v14  ;;  %v2244_v30 = vsel %vm2111_vm0, %v2198_v8, 0.0  ;;  %v2143_v45 = vsel %vm2111_vm0, %v3773_v29, 0.0 }
 0x1c4   : > { %v2245_v29 = vadd.f32 %v2244_v30, %v2243_v47  ;;  %v1740_v14 = vadd.f32 %v3755_v6, %v3702_v56 }
 0x1c5   : > { %v2064_v37 = vpack.c.bf16 %v3781_v13, %v3781_v13  ;;  %v2200_v20 = vmul.f32 %v3781_v13, %v3781_v13 }
 0x1c7   : > { %2096 = vst.msk [vmem:[%s3643_s12 + $0x44] sm:$0xf] %vm679_vm6, %v2064_v37 }
 0x1c8   : > { %v1995_v33 = vpop.f32.mrf.mxu3 }
 0x1c9   : > { %v3791_v50 = vadd.f32 %v1995_v33, %v1730_v2  ;;  %v2142_v2 = vadd.f32 %v2141_v43, %v2140_v52  ;;  %v2145_v33 = vsel %vm2111_vm0, %v3781_v13, 0.0 }
 0x1ca   : > { %v1980_v17 = vpop.f32.mrf.mxu2  ;;  %v1492_v39 = vpop.f32.mrf.mxu0 }
 0x1cb   : > { %v3789_v60 = vadd.f32 %v1980_v17, %v1715_v7  ;;  %v2071_v10 = vpack.c.bf16 %v3791_v50, %v3791_v50  ;;  %v1722_v61 = vadd.f32 %v1721_v25, %v1492_v39  ;;  %v1724_v7 = vpop.f32.mrf.mxu1  ;;  %v2246_v17 = vsel %vm2111_vm0, %v2199_v24, 0.0 }
 0x1cd   : > { %v2065_v44 = vpack.c.bf16 %v3789_v60, %v3789_v60  ;;  %2103 = vst.msk [vmem:[%s3643_s12 + $0x60] sm:$0xf] %vm679_vm6, %v2071_v10  ;;  %v2201_v11 = vmul.f32 %v3789_v60, %v3789_v60  ;;  %v2147_v42 = vsel %vm2111_vm0, %v3789_v60, 0.0 }
 0x1cf   : > { %2097 = vst.msk [vmem:[%s3643_s12 + $0x48] sm:$0xf] %vm679_vm6, %v2065_v44  ;;  %v2144_v44 = vadd.f32 %v2143_v45, %v2142_v2  ;;  %v2250_v13 = vsel %vm2111_vm0, %v2201_v11, 0.0 }
 0x1d0   : > { %v1997_v46 = vpop.f32.mrf.mxu3 }
 0x1d1   : > { %v3803_v4 = vadd.f32 %v1997_v46, %v1732_v38  ;;  %v2248_v38 = vsel %vm2111_vm0, %v2200_v20, 0.0  ;;  %v2146_v46 = vadd.f32 %v2145_v33, %v2144_v44  ;;  %v1745_v44 = vadd.f32 %v3771_v21, %v3717_v1 }
 0x1d2   : > { %v1982_v36 = vpop.f32.mrf.mxu2  ;;  %v1495_v41 = vpop.f32.mrf.mxu0 }
 0x1d3   : > { %v2034_v5 = vadd.f32 %v1982_v36, %v1717_v58  ;;  %v2072_v35 = vpack.c.bf16 %v3803_v4, %v3803_v4  ;;  %v1725_v58 = vadd.f32 %v1724_v7, %v1495_v41  ;;  %v2247_v36 = vadd.f32 %v2246_v17, %v2245_v29  ;;  %v1726_v22 = vpop.f32.mrf.mxu1 }
 0x1d4   : > { %v2148_v6 = vadd.f32 %v2147_v42, %v2146_v46  ;;  %v2207_v41 = vmul.f32 %v3791_v50, %v3791_v50  ;;  %v2159_v7 = vsel %vm2111_vm0, %v3791_v50, 0.0  ;;  %v2208_v11 = vmul.f32 %v3803_v4, %v3803_v4 }
 0x1d5   : > { %v2066_v40 = vpack.c.bf16 %v2034_v5, %v2034_v5  ;;  %2104 = vst.msk [vmem:[%s3643_s12 + $0x64] sm:$0xf] %vm679_vm6, %v2072_v35  ;;  %v2202_v10 = vmul.f32 %v2034_v5, %v2034_v5  ;;  %v2249_v56 = vadd.f32 %v2248_v38, %v2247_v36 }
 0x1d6   : > { %v2264_v36 = vsel %vm2111_vm0, %v2208_v11, 0.0 }
 0x1d7   : > { %2098 = vst.msk [vmem:[%s3643_s12 + $0x4c] sm:$0xf] %vm679_vm6, %v2066_v40 }
 0x1d8   : > { %v2000_v53 = vpop.f32.mrf.mxu3 }
 0x1d9   : > { %v3813_v23 = vadd.f32 %v2000_v53, %v1735_v34  ;;  %v2149_v34 = vsel %vm2111_vm0, %v2034_v5, 0.0  ;;  %v2252_v53 = vsel %vm2111_vm0, %v2202_v10, 0.0  ;;  %v2262_v10 = vsel %vm2111_vm0, %v2207_v41, 0.0 }
 0x1da   : > { %v1985_v9 = vpop.f32.mrf.mxu2  ;;  %v2150_v31 = vadd.f32 %v2149_v34, %v2148_v6  ;;  %v1497_v5 = vpop.f32.mrf.mxu0 }
 0x1db   : > { %v2035_v12 = vadd.f32 %v1985_v9, %v1720_v54  ;;  %v2073_v59 = vpack.c.bf16 %v3813_v23, %v3813_v23  ;;  %v1727_v16 = vadd.f32 %v1726_v22, %v1497_v5  ;;  %v2209_v50 = vmul.f32 %v3813_v23, %v3813_v23 }
 0x1dc   : > { %v2163_v46 = vsel %vm2111_vm0, %v3813_v23, 0.0 }
 0x1dd   : > { %v2067_v51 = vpack.c.bf16 %v2035_v12, %v2035_v12  ;;  %2105 = vst.msk [vmem:[%s3643_s12 + $0x68] sm:$0xf] %vm679_vm6, %v2073_v59  ;;  %v2203_v54 = vmul.f32 %v2035_v12, %v2035_v12  ;;  %v2151_v60 = vsel %vm2111_vm0, %v2035_v12, 0.0  ;;  %v2251_v59 = vadd.f32 %v2250_v13, %v2249_v56 }
 0x1de   : > { %v1742_v12 = vadd.f32 %v3763_v32, %v3710_v19 }
 0x1df   : > { %2099 = vst.msk [vmem:[%s3643_s12 + $0x50] sm:$0xf] %vm679_vm6, %v2067_v51  ;;  %v2254_v49 = vsel %vm2111_vm0, %v2203_v54, 0.0  ;;  %v2253_v15 = vadd.f32 %v2252_v53, %v2251_v59 }
 0x1e0   : > { %v2002_v57 = vpop.f32.mrf.mxu3 }
 0x1e1   : > { %v3840_v48 = vadd.f32 %v2002_v57, %v1737_v28  ;;  %v2255_v57 = vadd.f32 %v2254_v49, %v2253_v15 }
 0x1e2   : > { %v1987_v26 = vpop.f32.mrf.mxu2 }
 0x1e3   : > { %v2036_v62 = vadd.f32 %v1987_v26, %v1722_v61  ;;  %v2074_v37 = vpack.c.bf16 %v3840_v48, %v3840_v48  ;;  %v2152_v61 = vadd.f32 %v2151_v60, %v2150_v31  ;;  %v2210_v1 = vmul.f32 %v3840_v48, %v3840_v48 }
 0x1e5   : > { %v2068_v63 = vpack.c.bf16 %v2036_v62, %v2036_v62  ;;  %2106 = vst.msk [vmem:[%s3643_s12 + $0x6c] sm:$0xf] %vm679_vm6, %v2074_v37  ;;  %v2204_v25 = vmul.f32 %v2036_v62, %v2036_v62  ;;  %v2153_v8 = vsel %vm2111_vm0, %v2036_v62, 0.0  ;;  %v2268_v6 = vsel %vm2111_vm0, %v2210_v1, 0.0 }
 0x1e6   : > { %v2154_v43 = vadd.f32 %v2153_v8, %v2152_v61 }
 0x1e7   : > { %2100 = vst.msk [vmem:[%s3643_s12 + $0x54] sm:$0xf] %vm679_vm6, %v2068_v63  ;;  %v2256_v27 = vsel %vm2111_vm0, %v2204_v25, 0.0 }
 0x1e8   : > { %v2005_v35 = vpop.f32.mrf.mxu3  ;;  %v2257_v45 = vadd.f32 %v2256_v27, %v2255_v57 }
 0x1e9   : > { %v3866_v9 = vadd.f32 %v2005_v35, %v1740_v14  ;;  %v2161_v14 = vsel %vm2111_vm0, %v3803_v4, 0.0  ;;  %v2266_v4 = vsel %vm2111_vm0, %v2209_v50, 0.0  ;;  %v2165_v35 = vsel %vm2111_vm0, %v3840_v48, 0.0 }
 0x1ea   : > { %v1990_v40 = vpop.f32.mrf.mxu2 }
 0x1eb   : > { %v2037_v39 = vadd.f32 %v1990_v40, %v1725_v58  ;;  %v2075_v51 = vpack.c.bf16 %v3866_v9, %v3866_v9  ;;  %v2211_v34 = vmul.f32 %v3866_v9, %v3866_v9  ;;  %v2167_v23 = vsel %vm2111_vm0, %v3866_v9, 0.0 }
 0x1ed   : > { %v2069_v18 = vpack.c.bf16 %v2037_v39, %v2037_v39  ;;  %v2205_v28 = vmul.f32 %v2037_v39, %v2037_v39  ;;  %2107 = vst.msk [vmem:[%s3643_s12 + $0x70] sm:$0xf] %vm679_vm6, %v2075_v51  ;;  %v2155_v26 = vsel %vm2111_vm0, %v2037_v39, 0.0  ;;  %v2270_v48 = vsel %vm2111_vm0, %v2211_v34, 0.0 }
 0x1ee   : > { %v2156_v19 = vadd.f32 %v2155_v26, %v2154_v43 }
 0x1ef   : > { %2101 = vst.msk [vmem:[%s3643_s12 + $0x58] sm:$0xf] %vm679_vm6, %v2069_v18  ;;  %v2258_v3 = vsel %vm2111_vm0, %v2205_v28, 0.0  ;;  %v1747_v18 = vadd.f32 %v3779_v55, %v3723_v0 }
 0x1f0   : > { %v2007_v62 = vpop.f32.mrf.mxu3  ;;  %v2259_v47 = vadd.f32 %v2258_v3, %v2257_v45 }
 0x1f1   : > { %v2044_v30 = vadd.f32 %v2007_v62, %v1742_v12 }
 0x1f2   : > { %v1992_v24 = vpop.f32.mrf.mxu2 }
 0x1f3   : > { %v2038_v52 = vadd.f32 %v1992_v24, %v1727_v16  ;;  %v2076_v37 = vpack.c.bf16 %v2044_v30, %v2044_v30  ;;  %v2212_v53 = vmul.f32 %v2044_v30, %v2044_v30  ;;  %v2169_v51 = vsel %vm2111_vm0, %v2044_v30, 0.0 }
 0x1f5   : > { %v2070_v32 = vpack.c.bf16 %v2038_v52, %v2038_v52  ;;  %v2157_v20 = vsel %vm2111_vm0, %v2038_v52, 0.0  ;;  %v2206_v63 = vmul.f32 %v2038_v52, %v2038_v52  ;;  %2108 = vst.msk [vmem:[%s3643_s12 + $0x74] sm:$0xf] %vm679_vm6, %v2076_v37  ;;  %v2272_v8 = vsel %vm2111_vm0, %v2212_v53, 0.0 }
 0x1f6   : > { %v2158_v2 = vadd.f32 %v2157_v20, %v2156_v19 }
 0x1f7   : > { %2102 = vst.msk [vmem:[%s3643_s12 + $0x5c] sm:$0xf] %vm679_vm6, %v2070_v32  ;;  %v2260_v17 = vsel %vm2111_vm0, %v2206_v63, 0.0 }
 0x1f8   : > { %v2160_v33 = vadd.f32 %v2159_v7, %v2158_v2  ;;  %v2261_v29 = vadd.f32 %v2260_v17, %v2259_v47  ;;  %v2010_v58 = vpop.f32.mrf.mxu3 }
 0x1f9   : > { %v2045_v21 = vadd.f32 %v2010_v58, %v1745_v44 }
 0x1fa   : > { %v2162_v38 = vadd.f32 %v2161_v14, %v2160_v33  ;;  %v2263_v42 = vadd.f32 %v2262_v10, %v2261_v29 }
 0x1fb   : > { %v2077_v54 = vpack.c.bf16 %v2045_v21, %v2045_v21  ;;  %v2213_v59 = vmul.f32 %v2045_v21, %v2045_v21  ;;  %v2171_v9 = vsel %vm2111_vm0, %v2045_v21, 0.0 }
 0x1fc   : > { %v2265_v13 = vadd.f32 %v2264_v36, %v2263_v42  ;;  %v2164_v40 = vadd.f32 %v2163_v46, %v2162_v38 }
 0x1fd   : > { %2109 = vst.msk [vmem:[%s3643_s12 + $0x78] sm:$0xf] %vm679_vm6, %v2077_v54  ;;  %v2274_v61 = vsel %vm2111_vm0, %v2213_v59, 0.0 }
 0x1fe   : > { %v2166_v39 = vadd.f32 %v2165_v35, %v2164_v40  ;;  %v2267_v56 = vadd.f32 %v2266_v4, %v2265_v13 }
 0x200   : > { %v2168_v60 = vadd.f32 %v2167_v23, %v2166_v39  ;;  %v2269_v25 = vadd.f32 %v2268_v6, %v2267_v56  ;;  %v2012_v49 = vpop.f32.mrf.mxu3 }
 0x201   : > { %v2046_v28 = vadd.f32 %v2012_v49, %v1747_v18 }
 0x202   : > { %v2170_v31 = vadd.f32 %v2169_v51, %v2168_v60  ;;  %v2271_v5 = vadd.f32 %v2270_v48, %v2269_v25 }
 0x203   : > { %v2078_v12 = vpack.c.bf16 %v2046_v28, %v2046_v28  ;;  %v2173_v0 = vsel %vm2111_vm0, %v2046_v28, 0.0  ;;  %v2214_v55 = vmul.f32 %v2046_v28, %v2046_v28 }
 0x204   : > { %v2273_v22 = vadd.f32 %v2272_v8, %v2271_v5  ;;  %v2172_v15 = vadd.f32 %v2171_v9, %v2170_v31 }
 0x205   : > { %2110 = vst.msk [vmem:[%s3643_s12 + $0x7c] sm:$0xf] %vm679_vm6, %v2078_v12  ;;  %v2276_v26 = vsel %vm2111_vm0, %v2214_v55, 0.0 }
 0x206   : > { %v2275_v16 = vadd.f32 %v2274_v61, %v2273_v22  ;;  %v2174_v27 = vadd.f32 %v2173_v0, %v2172_v15 }
 0x208   : > { %v2175_v57 = vrot.slane %v2174_v27, 4  ;;  %v2277_v43 = vadd.f32 %v2276_v26, %v2275_v16 }
 0x20a   : > { %v2176_v24 = vadd.f32 %v2175_v57, %v2174_v27  ;;  %v2278_v62 = vrot.slane %v2277_v43, 4 }
 0x20c   : > { %v2177_v3 = vrot.slane %v2176_v24, 2  ;;  %v2279_v52 = vadd.f32 %v2278_v62, %v2277_v43 }
 0x20e   : > { %v2178_v30 = vadd.f32 %v2177_v3, %v2176_v24  ;;  %v2280_v41 = vrot.slane %v2279_v52, 2 }
 0x210   : > { %v2179_v45 = vrot.slane %v2178_v30, 1  ;;  %v2281_v19 = vadd.f32 %v2280_v41, %v2279_v52 }
 0x212   : > { %v2180_v32 = vadd.f32 %v2179_v45, %v2178_v30  ;;  %v2282_v20 = vrot.slane %v2281_v19, 1 }
 0x214   : > { %2182 = vst.msk [vmem:[%s211_s17] sm:$0x1] %vm287_vm3, %v2180_v32  ;;  %v2283_v63 = vadd.f32 %v2282_v20, %v2281_v19 }
 0x216   : > { %2284 = vst.msk [vmem:[%s214_s20] sm:$0x1] %vm287_vm3, %v2283_v63 }
 0x217 PF: > { %s15_s15 = sadd.s32 1, %s2735_s15  }
 0x218   : > { %p12_p4 = scmp.ge.s32.totalorder %s15_s15, 4  }
 0x21a   :  { %14 = sbr.rel (!%p12_p4) target bundleno = 1 (0x1), region = 87 }

</bundles_post_ra>
